<compile_context>
chip_gen: v6e
topology: v6e:2x2x1
jax: 0.10.0
libtpu: 0.0.40
codegen_flags: <defaults>
</compile_context>

<pallas_src>
import jax
import jax.numpy as jnp
from jax import lax
from jax.experimental import pallas as pl
from jax.experimental.pallas import tpu as pltpu


def _round_up(n, m):
    return ((n + m - 1) // m) * m


def _largest_divisor_leq(n, target):
    t = max(1, min(n, target))
    while n % t:
        t -= 1
    return t


def _sigmoid(x):
    # sigmoid(x) = 0.5 * tanh(0.5 x) + 0.5  (single EUP tanh + VPU fma)
    return 0.5 * jnp.tanh(0.5 * x) + 0.5


# ----------------------------- Pallas kernel --------------------------------
def _bilstm_kernel(embf_ref, embb_ref, wih_ref, whh_ref, b_ref,
                   outf_ref, outb_ref, h_ref, c_ref,
                   gxf_sc, gxb_sc, hf_sc, cf_sc, hb_sc, cb_sc):
    # embf_ref/embb_ref: (Tc, Bp, E)   wih_ref: (2, E, 4Hp)
    # whh_ref: (2, Hp, 4Hp)            b_ref:   (2, 1, 4Hp)
    # outf_ref/outb_ref: (Tc, Bp, Hp)  h_ref/c_ref: (2, Bp, Hp)
    # gx*_sc: (Tc, Bp, 4Hp)            h*/c*_sc: (Bp, Hp)
    chunk = pl.program_id(0)
    Tc, Bp, E = embf_ref.shape
    Hp = whh_ref.shape[1]

    # State carried across time-chunks lives in VMEM scratch; reset at chunk 0.
    @pl.when(chunk == 0)
    def _():
        hf_sc[...] = jnp.zeros_like(hf_sc)
        cf_sc[...] = jnp.zeros_like(cf_sc)
        hb_sc[...] = jnp.zeros_like(hb_sc)
        cb_sc[...] = jnp.zeros_like(cb_sc)

    # Hoisted input projections for the whole chunk (one big MXU matmul per
    # direction, bias added once instead of per timestep).
    xf = embf_ref[...].reshape(Tc * Bp, E)
    xb = embb_ref[...].reshape(Tc * Bp, E)
    gxf_sc[...] = (jnp.dot(xf, wih_ref[0], preferred_element_type=jnp.float32)
                   + b_ref[0]).reshape(Tc, Bp, 4 * Hp)
    gxb_sc[...] = (jnp.dot(xb, wih_ref[1], preferred_element_type=jnp.float32)
                   + b_ref[1]).reshape(Tc, Bp, 4 * Hp)

    whh_f = whh_ref[0]
    whh_b = whh_ref[1]

    def cell(g, c):
        i_g = _sigmoid(g[:, 0 * Hp:1 * Hp])
        f_g = _sigmoid(g[:, 1 * Hp:2 * Hp])
        g_g = jnp.tanh(g[:, 2 * Hp:3 * Hp])
        o_g = _sigmoid(g[:, 3 * Hp:4 * Hp])
        c_new = f_g * c + i_g * g_g
        h_new = o_g * jnp.tanh(c_new)
        return h_new, c_new

    def step(s, carry):
        hf, cf, hb, cb = carry
        # Forward walks local time 0..Tc-1; backward walks Tc-1..0.  The
        # backward chunk block is already the reversed-order original-time
        # block (index_map), so writing at `tb` leaves its output pre-aligned.
        tb = Tc - 1 - s
        gf = gxf_sc[s] + jnp.dot(hf, whh_f, preferred_element_type=jnp.float32)
        gb = gxb_sc[tb] + jnp.dot(hb, whh_b, preferred_element_type=jnp.float32)
        hf, cf = cell(gf, cf)
        hb, cb = cell(gb, cb)
        outf_ref[s] = hf
        outb_ref[tb] = hb
        return hf, cf, hb, cb

    init = (hf_sc[...], cf_sc[...], hb_sc[...], cb_sc[...])
    hf, cf, hb, cb = lax.fori_loop(0, Tc, step, init, unroll=min(Tc, 8))

    # Persist state for the next chunk and emit final (h, c) per direction
    # (constant output block index across chunks -> last chunk's value wins).
    hf_sc[...] = hf
    cf_sc[...] = cf
    hb_sc[...] = hb
    cb_sc[...] = cb
    h_ref[0] = hf
    h_ref[1] = hb
    c_ref[0] = cf
    c_ref[1] = cb


def _bilstm_pallas(emb, w_ih, w_hh, b, *, time_chunk_target=64):
    """emb: (T, Bp, E) shared by both directions (NOT reversed/stacked).
    w_ih: (2, E, 4Hp); w_hh: (2, Hp, 4Hp); b: (2, 1, 4Hp)."""
    T, Bp, E = emb.shape
    Hp = w_hh.shape[1]
    Tc = _largest_divisor_leq(T, time_chunk_target)
    nC = T // Tc

    out_shapes = (
        jax.ShapeDtypeStruct((T, Bp, Hp), jnp.float32),    # forward outputs
        jax.ShapeDtypeStruct((T, Bp, Hp), jnp.float32),    # backward outputs
        jax.ShapeDtypeStruct((2, Bp, Hp), jnp.float32),    # final hidden
        jax.ShapeDtypeStruct((2, Bp, Hp), jnp.float32),    # final cell
    )
    grid_spec = pltpu.PrefetchScalarGridSpec(
        num_scalar_prefetch=0,
        grid=(nC,),
        in_specs=[
            pl.BlockSpec((Tc, Bp, E), lambda c: (c, 0, 0)),            # fwd chunk
            pl.BlockSpec((Tc, Bp, E), lambda c: (nC - 1 - c, 0, 0)),   # bwd chunk
            pl.BlockSpec((2, E, 4 * Hp), lambda c: (0, 0, 0)),
            pl.BlockSpec((2, Hp, 4 * Hp), lambda c: (0, 0, 0)),
            pl.BlockSpec((2, 1, 4 * Hp), lambda c: (0, 0, 0)),
        ],
        out_specs=[
            pl.BlockSpec((Tc, Bp, Hp), lambda c: (c, 0, 0)),
            pl.BlockSpec((Tc, Bp, Hp), lambda c: (nC - 1 - c, 0, 0)),
            pl.BlockSpec((2, Bp, Hp), lambda c: (0, 0, 0)),
            pl.BlockSpec((2, Bp, Hp), lambda c: (0, 0, 0)),
        ],
        scratch_shapes=[
            pltpu.VMEM((Tc, Bp, 4 * Hp), jnp.float32),   # hoisted fwd gates
            pltpu.VMEM((Tc, Bp, 4 * Hp), jnp.float32),   # hoisted bwd gates
            pltpu.VMEM((Bp, Hp), jnp.float32),           # h fwd (carried)
            pltpu.VMEM((Bp, Hp), jnp.float32),           # c fwd (carried)
            pltpu.VMEM((Bp, Hp), jnp.float32),           # h bwd (carried)
            pltpu.VMEM((Bp, Hp), jnp.float32),           # c bwd (carried)
        ],
    )
    return pl.pallas_call(
        _bilstm_kernel,
        out_shape=out_shapes,
        grid_spec=grid_spec,
        compiler_params=pltpu.CompilerParams(
            dimension_semantics=("arbitrary",),
            vmem_limit_bytes=32 * 1024 * 1024),
    )(emb, emb, w_ih, w_hh, b)


# ------------------------------- Encoder -------------------------------------
def encoder_forward(x, params):
    """x: (B, T) int32 token ids. Returns (outputs, hidden, cell) like the
    PyTorch Encoder: outputs (B, T, 2H), hidden (B, 2H), cell (B, 2H)."""
    emb_table = params["embedding"]                      # (V, E)
    embedded = jnp.take(emb_table, x, axis=0)            # (B, T, E)
    # TODO(synk): nn.Dropout is identity in eval mode; training-mode dropout
    # (random masking) is intentionally not implemented here.

    B, T, E = embedded.shape
    H = params["w_hh"].shape[1]
    Bp = _round_up(B, 8)                                  # sublane padding
    Hp = _round_up(H, 128)                                # lane padding / gate

    # Pad parameters so each gate occupies full 128-lane tiles.  Padded
    # weights / bias are zero -> padded hidden lanes stay exactly 0.
    w_ih = params["w_ih"].reshape(2, E, 4, H)
    w_ih = jnp.pad(w_ih, ((0, 0), (0, 0), (0, 0), (0, Hp - H)))
    w_ih = w_ih.reshape(2, E, 4 * Hp)
    w_hh = params["w_hh"].reshape(2, H, 4, H)
    w_hh = jnp.pad(w_hh, ((0, 0), (0, Hp - H), (0, 0), (0, Hp - H)))
    w_hh = w_hh.reshape(2, Hp, 4 * Hp)
    b = params["b"].reshape(2, 1, 4, H)
    b = jnp.pad(b, ((0, 0), (0, 0), (0, 0), (0, Hp - H)))
    b = b.reshape(2, 1, 4 * Hp)

    # One shared time-major stream; backward reversal happens inside the kernel.
    emb_tm = jnp.transpose(embedded, (1, 0, 2))           # (T, B, E)
    emb_tm = jnp.pad(emb_tm, ((0, 0), (0, Bp - B), (0, 0)))

    out_fwd_p, out_bwd_p, h_last, c_last = _bilstm_pallas(emb_tm, w_ih, w_hh, b)

    out_fwd = jnp.transpose(out_fwd_p[:, :B, :H], (1, 0, 2))     # (B, T, H)
    out_bwd = jnp.transpose(out_bwd_p[:, :B, :H], (1, 0, 2))     # pre-aligned
    outputs = jnp.concatenate([out_fwd, out_bwd], axis=-1)       # (B, T, 2H)
    hidden = jnp.concatenate([h_last[0, :B, :H], h_last[1, :B, :H]], axis=1)
    cell = jnp.concatenate([c_last[0, :B, :H], c_last[1, :B, :H]], axis=1)
    return outputs, hidden, cell


def init_params(key, vocab, embed_dim, hidden_dim):
    kE, kih0, khh0, kbi0, kbh0, kih1, khh1, kbi1, kbh1 = jax.random.split(key, 9)
    bound = 1.0 / jnp.sqrt(hidden_dim)
    emb = 0.1 * jax.random.normal(kE, (vocab, embed_dim), jnp.float32)
    emb = emb.at[0].set(0.0)  # padding_idx = 0 (machine_vocab[PAD_TOKEN] stand-in)

    def u(k, shape):
        return jax.random.uniform(k, shape, jnp.float32, -bound, bound)

    w_ih = jnp.stack([u(kih0, (embed_dim, 4 * hidden_dim)),
                      u(kih1, (embed_dim, 4 * hidden_dim))])        # (2, E, 4H)
    w_hh = jnp.stack([u(khh0, (hidden_dim, 4 * hidden_dim)),
                      u(khh1, (hidden_dim, 4 * hidden_dim))])       # (2, H, 4H)
    b = jnp.stack([(u(kbi0, (4 * hidden_dim,)) + u(kbh0, (4 * hidden_dim,)))[None, :],
                   (u(kbi1, (4 * hidden_dim,)) + u(kbh1, (4 * hidden_dim,)))[None, :]])
    return {"embedding": emb, "w_ih": w_ih, "w_hh": w_hh, "b": b}


# --------------------------- pure-JAX reference -------------------------------
def _lstm_ref_dir(emb, w_ih, w_hh, b):
    B, T, E = emb.shape
    H = w_hh.shape[0]

    def step(carry, x_t):
        h, c = carry
        g = x_t @ w_ih + h @ w_hh + b
        i = jax.nn.sigmoid(g[:, :H])
        f = jax.nn.sigmoid(g[:, H:2 * H])
        gg = jnp.tanh(g[:, 2 * H:3 * H])
        o = jax.nn.sigmoid(g[:, 3 * H:])
        c = f * c + i * gg
        h = o * jnp.tanh(c)
        return (h, c), h

    init = (jnp.zeros((B, H), jnp.float32), jnp.zeros((B, H), jnp.float32))
    (h, c), outs = lax.scan(step, init, jnp.swapaxes(emb, 0, 1))
    return jnp.swapaxes(outs, 0, 1), h, c


def encoder_ref(x, params):
    embedded = jnp.take(params["embedding"], x, axis=0)
    of, hf, cf = _lstm_ref_dir(embedded, params["w_ih"][0], params["w_hh"][0],
                               params["b"][0, 0])
    ob, hb, cb = _lstm_ref_dir(embedded[:, ::-1, :], params["w_ih"][1],
                               params["w_hh"][1], params["b"][1, 0])
    outputs = jnp.concatenate([of, ob[:, ::-1, :]], axis=-1)
    hidden = jnp.concatenate([hf, hb], axis=1)
    cell = jnp.concatenate([cf, cb], axis=1)
    return outputs, hidden, cell


if __name__ == "__main__":
    B, T = 2, 8
    VOCAB, EMBED, HIDDEN = 16, 32, 32

    key = jax.random.PRNGKey(0)
    kp, kx = jax.random.split(key)
    params = init_params(kp, VOCAB, EMBED, HIDDEN)
    x = jax.random.randint(kx, (B, T), 0, VOCAB, dtype=jnp.int32)

    outputs, hidden, cell = jax.block_until_ready(encoder_forward(x, params))
    ref_out, ref_hid, ref_cell = jax.block_until_ready(encoder_ref(x, params))

    assert outputs.shape == (B, T, 2 * HIDDEN)
    assert hidden.shape == (B, 2 * HIDDEN)
    assert cell.shape == (B, 2 * HIDDEN)
    assert jnp.allclose(outputs, ref_out, atol=2e-4, rtol=2e-4)
    assert jnp.allclose(hidden, ref_hid, atol=2e-4, rtol=2e-4)
    assert jnp.allclose(cell, ref_cell, atol=2e-4, rtol=2e-4)

    print("KERNEL_OK")
</pallas_src>

<mosaic_0001>
module attributes {stable_mosaic.version = 11 : i64} {
  func.func @_bilstm_kernel(%arg0: i32, %arg1: memref<8x8x32xf32, #tpu.memory_space<vmem>>, %arg2: memref<8x8x32xf32, #tpu.memory_space<vmem>>, %arg3: memref<2x32x512xf32, #tpu.memory_space<vmem>>, %arg4: memref<2x128x512xf32, #tpu.memory_space<vmem>>, %arg5: memref<2x1x512xf32, #tpu.memory_space<vmem>>, %arg6: memref<8x8x128xf32, #tpu.memory_space<vmem>>, %arg7: memref<8x8x128xf32, #tpu.memory_space<vmem>>, %arg8: memref<2x8x128xf32, #tpu.memory_space<vmem>>, %arg9: memref<2x8x128xf32, #tpu.memory_space<vmem>>, %arg10: memref<8x8x512xf32, #tpu.memory_space<vmem>>, %arg11: memref<8x8x512xf32, #tpu.memory_space<vmem>>, %arg12: memref<8x128xf32, #tpu.memory_space<vmem>>, %arg13: memref<8x128xf32, #tpu.memory_space<vmem>>, %arg14: memref<8x128xf32, #tpu.memory_space<vmem>>, %arg15: memref<8x128xf32, #tpu.memory_space<vmem>>) attributes {dimension_semantics = [#tpu.dimension_semantics<arbitrary>], iteration_bounds = array<i64: 1>, scalar_prefetch = 0 : i64, scratch_operands = 6 : i64, tpu.core_type = #tpu.core_type<tc>, window_params = [{transform_indices = @transform_0, window_bounds = array<i64: 8, 8, 32>}, {transform_indices = @transform_1, window_bounds = array<i64: 8, 8, 32>}, {pipeline_mode = #tpu.pipeline_mode<synchronous>, transform_indices = @transform_2, window_bounds = array<i64: 2, 32, 512>}, {pipeline_mode = #tpu.pipeline_mode<synchronous>, transform_indices = @transform_3, window_bounds = array<i64: 2, 128, 512>}, {pipeline_mode = #tpu.pipeline_mode<synchronous>, transform_indices = @transform_4, window_bounds = array<i64: 2, 1, 512>}, {transform_indices = @transform_5, window_bounds = array<i64: 8, 8, 128>}, {transform_indices = @transform_6, window_bounds = array<i64: 8, 8, 128>}, {pipeline_mode = #tpu.pipeline_mode<synchronous>, transform_indices = @transform_7, window_bounds = array<i64: 2, 8, 128>}, {pipeline_mode = #tpu.pipeline_mode<synchronous>, transform_indices = @transform_8, window_bounds = array<i64: 2, 8, 128>}]} {
    %c0_i32 = arith.constant 0 : i32
    %0 = arith.cmpi eq, %arg0, %c0_i32 : i32
    %1 = arith.extui %0 : i1 to i32
    %c0_i32_0 = arith.constant 0 : i32
    %2 = arith.cmpi ne, %1, %c0_i32_0 : i32
    scf.if %2 {
      %cst_291 = arith.constant 0.000000e+00 : f32
      %697 = vector.broadcast %cst_291 : f32 to vector<8x128xf32>
      %c0_292 = arith.constant 0 : index
      %c0_293 = arith.constant 0 : index
      %698 = vector.load %arg12[%c0_292, %c0_293] : memref<8x128xf32, #tpu.memory_space<vmem>>, vector<8x128xf32>
      tpu.vector_store %arg12[%c0_292, %c0_293], %697 {strides = array<i32>} : memref<8x128xf32, #tpu.memory_space<vmem>>, vector<8x128xf32>,
      %cst_294 = arith.constant 0.000000e+00 : f32
      %699 = vector.broadcast %cst_294 : f32 to vector<8x128xf32>
      %c0_295 = arith.constant 0 : index
      %c0_296 = arith.constant 0 : index
      %700 = vector.load %arg13[%c0_295, %c0_296] : memref<8x128xf32, #tpu.memory_space<vmem>>, vector<8x128xf32>
      tpu.vector_store %arg13[%c0_295, %c0_296], %699 {strides = array<i32>} : memref<8x128xf32, #tpu.memory_space<vmem>>, vector<8x128xf32>,
      %cst_297 = arith.constant 0.000000e+00 : f32
      %701 = vector.broadcast %cst_297 : f32 to vector<8x128xf32>
      %c0_298 = arith.constant 0 : index
      %c0_299 = arith.constant 0 : index
      %702 = vector.load %arg14[%c0_298, %c0_299] : memref<8x128xf32, #tpu.memory_space<vmem>>, vector<8x128xf32>
      tpu.vector_store %arg14[%c0_298, %c0_299], %701 {strides = array<i32>} : memref<8x128xf32, #tpu.memory_space<vmem>>, vector<8x128xf32>,
      %cst_300 = arith.constant 0.000000e+00 : f32
      %703 = vector.broadcast %cst_300 : f32 to vector<8x128xf32>
      %c0_301 = arith.constant 0 : index
      %c0_302 = arith.constant 0 : index
      %704 = vector.load %arg15[%c0_301, %c0_302] : memref<8x128xf32, #tpu.memory_space<vmem>>, vector<8x128xf32>
      tpu.vector_store %arg15[%c0_301, %c0_302], %703 {strides = array<i32>} : memref<8x128xf32, #tpu.memory_space<vmem>>, vector<8x128xf32>,
    } else {
    }
    %c0 = arith.constant 0 : index
    %c0_1 = arith.constant 0 : index
    %c0_2 = arith.constant 0 : index
    %3 = vector.load %arg1[%c0, %c0_1, %c0_2] : memref<8x8x32xf32, #tpu.memory_space<vmem>>, vector<8x8x32xf32>
    %4 = vector.shape_cast %3 : vector<8x8x32xf32> to vector<64x32xf32>
    %c0_3 = arith.constant 0 : index
    %c0_4 = arith.constant 0 : index
    %c0_5 = arith.constant 0 : index
    %5 = vector.load %arg2[%c0_3, %c0_4, %c0_5] : memref<8x8x32xf32, #tpu.memory_space<vmem>>, vector<8x8x32xf32>
    %6 = vector.shape_cast %5 : vector<8x8x32xf32> to vector<64x32xf32>
    %c0_6 = arith.constant 0 : index
    %c0_7 = arith.constant 0 : index
    %c0_8 = arith.constant 0 : index
    %7 = vector.load %arg3[%c0_6, %c0_7, %c0_8] : memref<2x32x512xf32, #tpu.memory_space<vmem>>, vector<1x32x512xf32>
    %8 = vector.shape_cast %7 : vector<1x32x512xf32> to vector<32x512xf32>
    %cst = arith.constant dense<0.000000e+00> : vector<64x512xf32>
    %9 = tpu.matmul %4, %8, %cst {dimension_numbers = #tpu.dot_dimension_numbers<[1], [0], [0], [1], [0, 0, 1, 1], [], []>} : vector<64x32xf32>, vector<32x512xf32>, vector<64x512xf32> -> vector<64x512xf32>
    %c0_9 = arith.constant 0 : index
    %c0_10 = arith.constant 0 : index
    %c0_11 = arith.constant 0 : index
    %10 = vector.load %arg5[%c0_9, %c0_10, %c0_11] : memref<2x1x512xf32, #tpu.memory_space<vmem>>, vector<1x1x512xf32>
    %11 = vector.shape_cast %10 : vector<1x1x512xf32> to vector<1x512xf32>
    %12 = vector.broadcast %11 : vector<1x512xf32> to vector<64x512xf32>
    %13 = arith.addf %9, %12 : vector<64x512xf32>
    %14 = vector.shape_cast %13 : vector<64x512xf32> to vector<8x8x512xf32>
    %c0_12 = arith.constant 0 : index
    %c0_13 = arith.constant 0 : index
    %c0_14 = arith.constant 0 : index
    %15 = vector.load %arg10[%c0_12, %c0_13, %c0_14] : memref<8x8x512xf32, #tpu.memory_space<vmem>>, vector<8x8x512xf32>
    tpu.vector_store %arg10[%c0_12, %c0_13, %c0_14], %14 {strides = array<i32>} : memref<8x8x512xf32, #tpu.memory_space<vmem>>, vector<8x8x512xf32>,
    %c1 = arith.constant 1 : index
    %c0_15 = arith.constant 0 : index
    %c0_16 = arith.constant 0 : index
    %16 = vector.load %arg3[%c1, %c0_15, %c0_16] : memref<2x32x512xf32, #tpu.memory_space<vmem>>, vector<1x32x512xf32>
    %17 = vector.shape_cast %16 : vector<1x32x512xf32> to vector<32x512xf32>
    %cst_17 = arith.constant dense<0.000000e+00> : vector<64x512xf32>
    %18 = tpu.matmul %6, %17, %cst_17 {dimension_numbers = #tpu.dot_dimension_numbers<[1], [0], [0], [1], [0, 0, 1, 1], [], []>} : vector<64x32xf32>, vector<32x512xf32>, vector<64x512xf32> -> vector<64x512xf32>
    %c1_18 = arith.constant 1 : index
    %c0_19 = arith.constant 0 : index
    %c0_20 = arith.constant 0 : index
    %19 = vector.load %arg5[%c1_18, %c0_19, %c0_20] : memref<2x1x512xf32, #tpu.memory_space<vmem>>, vector<1x1x512xf32>
    %20 = vector.shape_cast %19 : vector<1x1x512xf32> to vector<1x512xf32>
    %21 = vector.broadcast %20 : vector<1x512xf32> to vector<64x512xf32>
    %22 = arith.addf %18, %21 : vector<64x512xf32>
    %23 = vector.shape_cast %22 : vector<64x512xf32> to vector<8x8x512xf32>
    %c0_21 = arith.constant 0 : index
    %c0_22 = arith.constant 0 : index
    %c0_23 = arith.constant 0 : index
    %24 = vector.load %arg11[%c0_21, %c0_22, %c0_23] : memref<8x8x512xf32, #tpu.memory_space<vmem>>, vector<8x8x512xf32>
    tpu.vector_store %arg11[%c0_21, %c0_22, %c0_23], %23 {strides = array<i32>} : memref<8x8x512xf32, #tpu.memory_space<vmem>>, vector<8x8x512xf32>,
    %c0_24 = arith.constant 0 : index
    %c0_25 = arith.constant 0 : index
    %c0_26 = arith.constant 0 : index
    %25 = vector.load %arg4[%c0_24, %c0_25, %c0_26] : memref<2x128x512xf32, #tpu.memory_space<vmem>>, vector<1x128x512xf32>
    %26 = vector.shape_cast %25 : vector<1x128x512xf32> to vector<128x512xf32>
    %c1_27 = arith.constant 1 : index
    %c0_28 = arith.constant 0 : index
    %c0_29 = arith.constant 0 : index
    %27 = vector.load %arg4[%c1_27, %c0_28, %c0_29] : memref<2x128x512xf32, #tpu.memory_space<vmem>>, vector<1x128x512xf32>
    %28 = vector.shape_cast %27 : vector<1x128x512xf32> to vector<128x512xf32>
    %c0_30 = arith.constant 0 : index
    %c0_31 = arith.constant 0 : index
    %29 = vector.load %arg12[%c0_30, %c0_31] : memref<8x128xf32, #tpu.memory_space<vmem>>, vector<8x128xf32>
    %c0_32 = arith.constant 0 : index
    %c0_33 = arith.constant 0 : index
    %30 = vector.load %arg13[%c0_32, %c0_33] : memref<8x128xf32, #tpu.memory_space<vmem>>, vector<8x128xf32>
    %c0_34 = arith.constant 0 : index
    %c0_35 = arith.constant 0 : index
    %31 = vector.load %arg14[%c0_34, %c0_35] : memref<8x128xf32, #tpu.memory_space<vmem>>, vector<8x128xf32>
    %c0_36 = arith.constant 0 : index
    %c0_37 = arith.constant 0 : index
    %32 = vector.load %arg15[%c0_36, %c0_37] : memref<8x128xf32, #tpu.memory_space<vmem>>, vector<8x128xf32>
    %c0_i32_38 = arith.constant 0 : i32
    %c7_i32 = arith.constant 7 : i32
    %33 = arith.subi %c7_i32, %c0_i32_38 : i32
    %34 = arith.index_cast %c0_i32_38 : i32 to index
    %c0_39 = arith.constant 0 : index
    %c0_40 = arith.constant 0 : index
    %35 = vector.load %arg10[%34, %c0_39, %c0_40] : memref<8x8x512xf32, #tpu.memory_space<vmem>>, vector<1x8x512xf32>
    %36 = vector.shape_cast %35 : vector<1x8x512xf32> to vector<8x512xf32>
    %cst_41 = arith.constant dense<0.000000e+00> : vector<8x512xf32>
    %37 = tpu.matmul %29, %26, %cst_41 {dimension_numbers = #tpu.dot_dimension_numbers<[1], [0], [0], [1], [0, 0, 1, 1], [], []>} : vector<8x128xf32>, vector<128x512xf32>, vector<8x512xf32> -> vector<8x512xf32>
    %38 = arith.addf %36, %37 : vector<8x512xf32>
    %39 = arith.index_cast %33 : i32 to index
    %c0_42 = arith.constant 0 : index
    %c0_43 = arith.constant 0 : index
    %40 = vector.load %arg11[%39, %c0_42, %c0_43] : memref<8x8x512xf32, #tpu.memory_space<vmem>>, vector<1x8x512xf32>
    %41 = vector.shape_cast %40 : vector<1x8x512xf32> to vector<8x512xf32>
    %cst_44 = arith.constant dense<0.000000e+00> : vector<8x512xf32>
    %42 = tpu.matmul %31, %28, %cst_44 {dimension_numbers = #tpu.dot_dimension_numbers<[1], [0], [0], [1], [0, 0, 1, 1], [], []>} : vector<8x128xf32>, vector<128x512xf32>, vector<8x512xf32> -> vector<8x512xf32>
    %43 = arith.addf %41, %42 : vector<8x512xf32>
    %44 = vector.extract_strided_slice %38 {offsets = [0, 0], sizes = [8, 128], strides = [1, 1]} : vector<8x512xf32> to vector<8x128xf32>
    %cst_45 = arith.constant 5.000000e-01 : f32
    %45 = vector.broadcast %cst_45 : f32 to vector<8x128xf32>
    %46 = arith.mulf %45, %44 : vector<8x128xf32>
    %47 = math.tanh %46 : vector<8x128xf32>
    %cst_46 = arith.constant 5.000000e-01 : f32
    %48 = vector.broadcast %cst_46 : f32 to vector<8x128xf32>
    %49 = arith.mulf %48, %47 : vector<8x128xf32>
    %cst_47 = arith.constant 5.000000e-01 : f32
    %50 = vector.broadcast %cst_47 : f32 to vector<8x128xf32>
    %51 = arith.addf %49, %50 : vector<8x128xf32>
    %52 = vector.extract_strided_slice %38 {offsets = [0, 128], sizes = [8, 128], strides = [1, 1]} : vector<8x512xf32> to vector<8x128xf32>
    %cst_48 = arith.constant 5.000000e-01 : f32
    %53 = vector.broadcast %cst_48 : f32 to vector<8x128xf32>
    %54 = arith.mulf %53, %52 : vector<8x128xf32>
    %55 = math.tanh %54 : vector<8x128xf32>
    %cst_49 = arith.constant 5.000000e-01 : f32
    %56 = vector.broadcast %cst_49 : f32 to vector<8x128xf32>
    %57 = arith.mulf %56, %55 : vector<8x128xf32>
    %cst_50 = arith.constant 5.000000e-01 : f32
    %58 = vector.broadcast %cst_50 : f32 to vector<8x128xf32>
    %59 = arith.addf %57, %58 : vector<8x128xf32>
    %60 = vector.extract_strided_slice %38 {offsets = [0, 256], sizes = [8, 128], strides = [1, 1]} : vector<8x512xf32> to vector<8x128xf32>
    %61 = math.tanh %60 : vector<8x128xf32>
    %62 = vector.extract_strided_slice %38 {offsets = [0, 384], sizes = [8, 128], strides = [1, 1]} : vector<8x512xf32> to vector<8x128xf32>
    %cst_51 = arith.constant 5.000000e-01 : f32
    %63 = vector.broadcast %cst_51 : f32 to vector<8x128xf32>
    %64 = arith.mulf %63, %62 : vector<8x128xf32>
    %65 = math.tanh %64 : vector<8x128xf32>
    %cst_52 = arith.constant 5.000000e-01 : f32
    %66 = vector.broadcast %cst_52 : f32 to vector<8x128xf32>
    %67 = arith.mulf %66, %65 : vector<8x128xf32>
    %cst_53 = arith.constant 5.000000e-01 : f32
    %68 = vector.broadcast %cst_53 : f32 to vector<8x128xf32>
    %69 = arith.addf %67, %68 : vector<8x128xf32>
    %70 = arith.mulf %59, %30 : vector<8x128xf32>
    %71 = arith.mulf %51, %61 : vector<8x128xf32>
    %72 = arith.addf %70, %71 : vector<8x128xf32>
    %73 = math.tanh %72 : vector<8x128xf32>
    %74 = arith.mulf %69, %73 : vector<8x128xf32>
    %75 = vector.extract_strided_slice %43 {offsets = [0, 0], sizes = [8, 128], strides = [1, 1]} : vector<8x512xf32> to vector<8x128xf32>
    %cst_54 = arith.constant 5.000000e-01 : f32
    %76 = vector.broadcast %cst_54 : f32 to vector<8x128xf32>
    %77 = arith.mulf %76, %75 : vector<8x128xf32>
    %78 = math.tanh %77 : vector<8x128xf32>
    %cst_55 = arith.constant 5.000000e-01 : f32
    %79 = vector.broadcast %cst_55 : f32 to vector<8x128xf32>
    %80 = arith.mulf %79, %78 : vector<8x128xf32>
    %cst_56 = arith.constant 5.000000e-01 : f32
    %81 = vector.broadcast %cst_56 : f32 to vector<8x128xf32>
    %82 = arith.addf %80, %81 : vector<8x128xf32>
    %83 = vector.extract_strided_slice %43 {offsets = [0, 128], sizes = [8, 128], strides = [1, 1]} : vector<8x512xf32> to vector<8x128xf32>
    %cst_57 = arith.constant 5.000000e-01 : f32
    %84 = vector.broadcast %cst_57 : f32 to vector<8x128xf32>
    %85 = arith.mulf %84, %83 : vector<8x128xf32>
    %86 = math.tanh %85 : vector<8x128xf32>
    %cst_58 = arith.constant 5.000000e-01 : f32
    %87 = vector.broadcast %cst_58 : f32 to vector<8x128xf32>
    %88 = arith.mulf %87, %86 : vector<8x128xf32>
    %cst_59 = arith.constant 5.000000e-01 : f32
    %89 = vector.broadcast %cst_59 : f32 to vector<8x128xf32>
    %90 = arith.addf %88, %89 : vector<8x128xf32>
    %91 = vector.extract_strided_slice %43 {offsets = [0, 256], sizes = [8, 128], strides = [1, 1]} : vector<8x512xf32> to vector<8x128xf32>
    %92 = math.tanh %91 : vector<8x128xf32>
    %93 = vector.extract_strided_slice %43 {offsets = [0, 384], sizes = [8, 128], strides = [1, 1]} : vector<8x512xf32> to vector<8x128xf32>
    %cst_60 = arith.constant 5.000000e-01 : f32
    %94 = vector.broadcast %cst_60 : f32 to vector<8x128xf32>
    %95 = arith.mulf %94, %93 : vector<8x128xf32>
    %96 = math.tanh %95 : vector<8x128xf32>
    %cst_61 = arith.constant 5.000000e-01 : f32
    %97 = vector.broadcast %cst_61 : f32 to vector<8x128xf32>
    %98 = arith.mulf %97, %96 : vector<8x128xf32>
    %cst_62 = arith.constant 5.000000e-01 : f32
    %99 = vector.broadcast %cst_62 : f32 to vector<8x128xf32>
    %100 = arith.addf %98, %99 : vector<8x128xf32>
    %101 = arith.mulf %90, %32 : vector<8x128xf32>
    %102 = arith.mulf %82, %92 : vector<8x128xf32>
    %103 = arith.addf %101, %102 : vector<8x128xf32>
    %104 = math.tanh %103 : vector<8x128xf32>
    %105 = arith.mulf %100, %104 : vector<8x128xf32>
    %106 = arith.index_cast %c0_i32_38 : i32 to index
    %c0_63 = arith.constant 0 : index
    %c0_64 = arith.constant 0 : index
    %107 = vector.load %arg6[%106, %c0_63, %c0_64] : memref<8x8x128xf32, #tpu.memory_space<vmem>>, vector<1x8x128xf32>
    %108 = vector.shape_cast %107 : vector<1x8x128xf32> to vector<8x128xf32>
    %109 = vector.shape_cast %74 : vector<8x128xf32> to vector<1x8x128xf32>
    tpu.vector_store %arg6[%106, %c0_63, %c0_64], %109 {strides = array<i32>} : memref<8x8x128xf32, #tpu.memory_space<vmem>>, vector<1x8x128xf32>,
    %110 = arith.index_cast %33 : i32 to index
    %c0_65 = arith.constant 0 : index
    %c0_66 = arith.constant 0 : index
    %111 = vector.load %arg7[%110, %c0_65, %c0_66] : memref<8x8x128xf32, #tpu.memory_space<vmem>>, vector<1x8x128xf32>
    %112 = vector.shape_cast %111 : vector<1x8x128xf32> to vector<8x128xf32>
    %113 = vector.shape_cast %105 : vector<8x128xf32> to vector<1x8x128xf32>
    tpu.vector_store %arg7[%110, %c0_65, %c0_66], %113 {strides = array<i32>} : memref<8x8x128xf32, #tpu.memory_space<vmem>>, vector<1x8x128xf32>,
    %c1_i32 = arith.constant 1 : i32
    %c7_i32_67 = arith.constant 7 : i32
    %114 = arith.subi %c7_i32_67, %c1_i32 : i32
    %115 = arith.index_cast %c1_i32 : i32 to index
    %c0_68 = arith.constant 0 : index
    %c0_69 = arith.constant 0 : index
    %116 = vector.load %arg10[%115, %c0_68, %c0_69] : memref<8x8x512xf32, #tpu.memory_space<vmem>>, vector<1x8x512xf32>
    %117 = vector.shape_cast %116 : vector<1x8x512xf32> to vector<8x512xf32>
    %cst_70 = arith.constant dense<0.000000e+00> : vector<8x512xf32>
    %118 = tpu.matmul %74, %26, %cst_70 {dimension_numbers = #tpu.dot_dimension_numbers<[1], [0], [0], [1], [0, 0, 1, 1], [], []>} : vector<8x128xf32>, vector<128x512xf32>, vector<8x512xf32> -> vector<8x512xf32>
    %119 = arith.addf %117, %118 : vector<8x512xf32>
    %120 = arith.index_cast %114 : i32 to index
    %c0_71 = arith.constant 0 : index
    %c0_72 = arith.constant 0 : index
    %121 = vector.load %arg11[%120, %c0_71, %c0_72] : memref<8x8x512xf32, #tpu.memory_space<vmem>>, vector<1x8x512xf32>
    %122 = vector.shape_cast %121 : vector<1x8x512xf32> to vector<8x512xf32>
    %cst_73 = arith.constant dense<0.000000e+00> : vector<8x512xf32>
    %123 = tpu.matmul %105, %28, %cst_73 {dimension_numbers = #tpu.dot_dimension_numbers<[1], [0], [0], [1], [0, 0, 1, 1], [], []>} : vector<8x128xf32>, vector<128x512xf32>, vector<8x512xf32> -> vector<8x512xf32>
    %124 = arith.addf %122, %123 : vector<8x512xf32>
    %125 = vector.extract_strided_slice %119 {offsets = [0, 0], sizes = [8, 128], strides = [1, 1]} : vector<8x512xf32> to vector<8x128xf32>
    %cst_74 = arith.constant 5.000000e-01 : f32
    %126 = vector.broadcast %cst_74 : f32 to vector<8x128xf32>
    %127 = arith.mulf %126, %125 : vector<8x128xf32>
    %128 = math.tanh %127 : vector<8x128xf32>
    %cst_75 = arith.constant 5.000000e-01 : f32
    %129 = vector.broadcast %cst_75 : f32 to vector<8x128xf32>
    %130 = arith.mulf %129, %128 : vector<8x128xf32>
    %cst_76 = arith.constant 5.000000e-01 : f32
    %131 = vector.broadcast %cst_76 : f32 to vector<8x128xf32>
    %132 = arith.addf %130, %131 : vector<8x128xf32>
    %133 = vector.extract_strided_slice %119 {offsets = [0, 128], sizes = [8, 128], strides = [1, 1]} : vector<8x512xf32> to vector<8x128xf32>
    %cst_77 = arith.constant 5.000000e-01 : f32
    %134 = vector.broadcast %cst_77 : f32 to vector<8x128xf32>
    %135 = arith.mulf %134, %133 : vector<8x128xf32>
    %136 = math.tanh %135 : vector<8x128xf32>
    %cst_78 = arith.constant 5.000000e-01 : f32
    %137 = vector.broadcast %cst_78 : f32 to vector<8x128xf32>
    %138 = arith.mulf %137, %136 : vector<8x128xf32>
    %cst_79 = arith.constant 5.000000e-01 : f32
    %139 = vector.broadcast %cst_79 : f32 to vector<8x128xf32>
    %140 = arith.addf %138, %139 : vector<8x128xf32>
    %141 = vector.extract_strided_slice %119 {offsets = [0, 256], sizes = [8, 128], strides = [1, 1]} : vector<8x512xf32> to vector<8x128xf32>
    %142 = math.tanh %141 : vector<8x128xf32>
    %143 = vector.extract_strided_slice %119 {offsets = [0, 384], sizes = [8, 128], strides = [1, 1]} : vector<8x512xf32> to vector<8x128xf32>
    %cst_80 = arith.constant 5.000000e-01 : f32
    %144 = vector.broadcast %cst_80 : f32 to vector<8x128xf32>
    %145 = arith.mulf %144, %143 : vector<8x128xf32>
    %146 = math.tanh %145 : vector<8x128xf32>
    %cst_81 = arith.constant 5.000000e-01 : f32
    %147 = vector.broadcast %cst_81 : f32 to vector<8x128xf32>
    %148 = arith.mulf %147, %146 : vector<8x128xf32>
    %cst_82 = arith.constant 5.000000e-01 : f32
    %149 = vector.broadcast %cst_82 : f32 to vector<8x128xf32>
    %150 = arith.addf %148, %149 : vector<8x128xf32>
    %151 = arith.mulf %140, %72 : vector<8x128xf32>
    %152 = arith.mulf %132, %142 : vector<8x128xf32>
    %153 = arith.addf %151, %152 : vector<8x128xf32>
    %154 = math.tanh %153 : vector<8x128xf32>
    %155 = arith.mulf %150, %154 : vector<8x128xf32>
    %156 = vector.extract_strided_slice %124 {offsets = [0, 0], sizes = [8, 128], strides = [1, 1]} : vector<8x512xf32> to vector<8x128xf32>
    %cst_83 = arith.constant 5.000000e-01 : f32
    %157 = vector.broadcast %cst_83 : f32 to vector<8x128xf32>
    %158 = arith.mulf %157, %156 : vector<8x128xf32>
    %159 = math.tanh %158 : vector<8x128xf32>
    %cst_84 = arith.constant 5.000000e-01 : f32
    %160 = vector.broadcast %cst_84 : f32 to vector<8x128xf32>
    %161 = arith.mulf %160, %159 : vector<8x128xf32>
    %cst_85 = arith.constant 5.000000e-01 : f32
    %162 = vector.broadcast %cst_85 : f32 to vector<8x128xf32>
    %163 = arith.addf %161, %162 : vector<8x128xf32>
    %164 = vector.extract_strided_slice %124 {offsets = [0, 128], sizes = [8, 128], strides = [1, 1]} : vector<8x512xf32> to vector<8x128xf32>
    %cst_86 = arith.constant 5.000000e-01 : f32
    %165 = vector.broadcast %cst_86 : f32 to vector<8x128xf32>
    %166 = arith.mulf %165, %164 : vector<8x128xf32>
    %167 = math.tanh %166 : vector<8x128xf32>
    %cst_87 = arith.constant 5.000000e-01 : f32
    %168 = vector.broadcast %cst_87 : f32 to vector<8x128xf32>
    %169 = arith.mulf %168, %167 : vector<8x128xf32>
    %cst_88 = arith.constant 5.000000e-01 : f32
    %170 = vector.broadcast %cst_88 : f32 to vector<8x128xf32>
    %171 = arith.addf %169, %170 : vector<8x128xf32>
    %172 = vector.extract_strided_slice %124 {offsets = [0, 256], sizes = [8, 128], strides = [1, 1]} : vector<8x512xf32> to vector<8x128xf32>
    %173 = math.tanh %172 : vector<8x128xf32>
    %174 = vector.extract_strided_slice %124 {offsets = [0, 384], sizes = [8, 128], strides = [1, 1]} : vector<8x512xf32> to vector<8x128xf32>
    %cst_89 = arith.constant 5.000000e-01 : f32
    %175 = vector.broadcast %cst_89 : f32 to vector<8x128xf32>
    %176 = arith.mulf %175, %174 : vector<8x128xf32>
    %177 = math.tanh %176 : vector<8x128xf32>
    %cst_90 = arith.constant 5.000000e-01 : f32
    %178 = vector.broadcast %cst_90 : f32 to vector<8x128xf32>
    %179 = arith.mulf %178, %177 : vector<8x128xf32>
    %cst_91 = arith.constant 5.000000e-01 : f32
    %180 = vector.broadcast %cst_91 : f32 to vector<8x128xf32>
    %181 = arith.addf %179, %180 : vector<8x128xf32>
    %182 = arith.mulf %171, %103 : vector<8x128xf32>
    %183 = arith.mulf %163, %173 : vector<8x128xf32>
    %184 = arith.addf %182, %183 : vector<8x128xf32>
    %185 = math.tanh %184 : vector<8x128xf32>
    %186 = arith.mulf %181, %185 : vector<8x128xf32>
    %187 = arith.index_cast %c1_i32 : i32 to index
    %c0_92 = arith.constant 0 : index
    %c0_93 = arith.constant 0 : index
    %188 = vector.load %arg6[%187, %c0_92, %c0_93] : memref<8x8x128xf32, #tpu.memory_space<vmem>>, vector<1x8x128xf32>
    %189 = vector.shape_cast %188 : vector<1x8x128xf32> to vector<8x128xf32>
    %190 = vector.shape_cast %155 : vector<8x128xf32> to vector<1x8x128xf32>
    tpu.vector_store %arg6[%187, %c0_92, %c0_93], %190 {strides = array<i32>} : memref<8x8x128xf32, #tpu.memory_space<vmem>>, vector<1x8x128xf32>,
    %191 = arith.index_cast %114 : i32 to index
    %c0_94 = arith.constant 0 : index
    %c0_95 = arith.constant 0 : index
    %192 = vector.load %arg7[%191, %c0_94, %c0_95] : memref<8x8x128xf32, #tpu.memory_space<vmem>>, vector<1x8x128xf32>
    %193 = vector.shape_cast %192 : vector<1x8x128xf32> to vector<8x128xf32>
    %194 = vector.shape_cast %186 : vector<8x128xf32> to vector<1x8x128xf32>
    tpu.vector_store %arg7[%191, %c0_94, %c0_95], %194 {strides = array<i32>} : memref<8x8x128xf32, #tpu.memory_space<vmem>>, vector<1x8x128xf32>,
    %c2_i32 = arith.constant 2 : i32
    %c7_i32_96 = arith.constant 7 : i32
    %195 = arith.subi %c7_i32_96, %c2_i32 : i32
    %196 = arith.index_cast %c2_i32 : i32 to index
    %c0_97 = arith.constant 0 : index
    %c0_98 = arith.constant 0 : index
    %197 = vector.load %arg10[%196, %c0_97, %c0_98] : memref<8x8x512xf32, #tpu.memory_space<vmem>>, vector<1x8x512xf32>
    %198 = vector.shape_cast %197 : vector<1x8x512xf32> to vector<8x512xf32>
    %cst_99 = arith.constant dense<0.000000e+00> : vector<8x512xf32>
    %199 = tpu.matmul %155, %26, %cst_99 {dimension_numbers = #tpu.dot_dimension_numbers<[1], [0], [0], [1], [0, 0, 1, 1], [], []>} : vector<8x128xf32>, vector<128x512xf32>, vector<8x512xf32> -> vector<8x512xf32>
    %200 = arith.addf %198, %199 : vector<8x512xf32>
    %201 = arith.index_cast %195 : i32 to index
    %c0_100 = arith.constant 0 : index
    %c0_101 = arith.constant 0 : index
    %202 = vector.load %arg11[%201, %c0_100, %c0_101] : memref<8x8x512xf32, #tpu.memory_space<vmem>>, vector<1x8x512xf32>
    %203 = vector.shape_cast %202 : vector<1x8x512xf32> to vector<8x512xf32>
    %cst_102 = arith.constant dense<0.000000e+00> : vector<8x512xf32>
    %204 = tpu.matmul %186, %28, %cst_102 {dimension_numbers = #tpu.dot_dimension_numbers<[1], [0], [0], [1], [0, 0, 1, 1], [], []>} : vector<8x128xf32>, vector<128x512xf32>, vector<8x512xf32> -> vector<8x512xf32>
    %205 = arith.addf %203, %204 : vector<8x512xf32>
    %206 = vector.extract_strided_slice %200 {offsets = [0, 0], sizes = [8, 128], strides = [1, 1]} : vector<8x512xf32> to vector<8x128xf32>
    %cst_103 = arith.constant 5.000000e-01 : f32
    %207 = vector.broadcast %cst_103 : f32 to vector<8x128xf32>
    %208 = arith.mulf %207, %206 : vector<8x128xf32>
    %209 = math.tanh %208 : vector<8x128xf32>
    %cst_104 = arith.constant 5.000000e-01 : f32
    %210 = vector.broadcast %cst_104 : f32 to vector<8x128xf32>
    %211 = arith.mulf %210, %209 : vector<8x128xf32>
    %cst_105 = arith.constant 5.000000e-01 : f32
    %212 = vector.broadcast %cst_105 : f32 to vector<8x128xf32>
    %213 = arith.addf %211, %212 : vector<8x128xf32>
    %214 = vector.extract_strided_slice %200 {offsets = [0, 128], sizes = [8, 128], strides = [1, 1]} : vector<8x512xf32> to vector<8x128xf32>
    %cst_106 = arith.constant 5.000000e-01 : f32
    %215 = vector.broadcast %cst_106 : f32 to vector<8x128xf32>
    %216 = arith.mulf %215, %214 : vector<8x128xf32>
    %217 = math.tanh %216 : vector<8x128xf32>
    %cst_107 = arith.constant 5.000000e-01 : f32
    %218 = vector.broadcast %cst_107 : f32 to vector<8x128xf32>
    %219 = arith.mulf %218, %217 : vector<8x128xf32>
    %cst_108 = arith.constant 5.000000e-01 : f32
    %220 = vector.broadcast %cst_108 : f32 to vector<8x128xf32>
    %221 = arith.addf %219, %220 : vector<8x128xf32>
    %222 = vector.extract_strided_slice %200 {offsets = [0, 256], sizes = [8, 128], strides = [1, 1]} : vector<8x512xf32> to vector<8x128xf32>
    %223 = math.tanh %222 : vector<8x128xf32>
    %224 = vector.extract_strided_slice %200 {offsets = [0, 384], sizes = [8, 128], strides = [1, 1]} : vector<8x512xf32> to vector<8x128xf32>
    %cst_109 = arith.constant 5.000000e-01 : f32
    %225 = vector.broadcast %cst_109 : f32 to vector<8x128xf32>
    %226 = arith.mulf %225, %224 : vector<8x128xf32>
    %227 = math.tanh %226 : vector<8x128xf32>
    %cst_110 = arith.constant 5.000000e-01 : f32
    %228 = vector.broadcast %cst_110 : f32 to vector<8x128xf32>
    %229 = arith.mulf %228, %227 : vector<8x128xf32>
    %cst_111 = arith.constant 5.000000e-01 : f32
    %230 = vector.broadcast %cst_111 : f32 to vector<8x128xf32>
    %231 = arith.addf %229, %230 : vector<8x128xf32>
    %232 = arith.mulf %221, %153 : vector<8x128xf32>
    %233 = arith.mulf %213, %223 : vector<8x128xf32>
    %234 = arith.addf %232, %233 : vector<8x128xf32>
    %235 = math.tanh %234 : vector<8x128xf32>
    %236 = arith.mulf %231, %235 : vector<8x128xf32>
    %237 = vector.extract_strided_slice %205 {offsets = [0, 0], sizes = [8, 128], strides = [1, 1]} : vector<8x512xf32> to vector<8x128xf32>
    %cst_112 = arith.constant 5.000000e-01 : f32
    %238 = vector.broadcast %cst_112 : f32 to vector<8x128xf32>
    %239 = arith.mulf %238, %237 : vector<8x128xf32>
    %240 = math.tanh %239 : vector<8x128xf32>
    %cst_113 = arith.constant 5.000000e-01 : f32
    %241 = vector.broadcast %cst_113 : f32 to vector<8x128xf32>
    %242 = arith.mulf %241, %240 : vector<8x128xf32>
    %cst_114 = arith.constant 5.000000e-01 : f32
    %243 = vector.broadcast %cst_114 : f32 to vector<8x128xf32>
    %244 = arith.addf %242, %243 : vector<8x128xf32>
    %245 = vector.extract_strided_slice %205 {offsets = [0, 128], sizes = [8, 128], strides = [1, 1]} : vector<8x512xf32> to vector<8x128xf32>
    %cst_115 = arith.constant 5.000000e-01 : f32
    %246 = vector.broadcast %cst_115 : f32 to vector<8x128xf32>
    %247 = arith.mulf %246, %245 : vector<8x128xf32>
    %248 = math.tanh %247 : vector<8x128xf32>
    %cst_116 = arith.constant 5.000000e-01 : f32
    %249 = vector.broadcast %cst_116 : f32 to vector<8x128xf32>
    %250 = arith.mulf %249, %248 : vector<8x128xf32>
    %cst_117 = arith.constant 5.000000e-01 : f32
    %251 = vector.broadcast %cst_117 : f32 to vector<8x128xf32>
    %252 = arith.addf %250, %251 : vector<8x128xf32>
    %253 = vector.extract_strided_slice %205 {offsets = [0, 256], sizes = [8, 128], strides = [1, 1]} : vector<8x512xf32> to vector<8x128xf32>
    %254 = math.tanh %253 : vector<8x128xf32>
    %255 = vector.extract_strided_slice %205 {offsets = [0, 384], sizes = [8, 128], strides = [1, 1]} : vector<8x512xf32> to vector<8x128xf32>
    %cst_118 = arith.constant 5.000000e-01 : f32
    %256 = vector.broadcast %cst_118 : f32 to vector<8x128xf32>
    %257 = arith.mulf %256, %255 : vector<8x128xf32>
    %258 = math.tanh %257 : vector<8x128xf32>
    %cst_119 = arith.constant 5.000000e-01 : f32
    %259 = vector.broadcast %cst_119 : f32 to vector<8x128xf32>
    %260 = arith.mulf %259, %258 : vector<8x128xf32>
    %cst_120 = arith.constant 5.000000e-01 : f32
    %261 = vector.broadcast %cst_120 : f32 to vector<8x128xf32>
    %262 = arith.addf %260, %261 : vector<8x128xf32>
    %263 = arith.mulf %252, %184 : vector<8x128xf32>
    %264 = arith.mulf %244, %254 : vector<8x128xf32>
    %265 = arith.addf %263, %264 : vector<8x128xf32>
    %266 = math.tanh %265 : vector<8x128xf32>
    %267 = arith.mulf %262, %266 : vector<8x128xf32>
    %268 = arith.index_cast %c2_i32 : i32 to index
    %c0_121 = arith.constant 0 : index
    %c0_122 = arith.constant 0 : index
    %269 = vector.load %arg6[%268, %c0_121, %c0_122] : memref<8x8x128xf32, #tpu.memory_space<vmem>>, vector<1x8x128xf32>
    %270 = vector.shape_cast %269 : vector<1x8x128xf32> to vector<8x128xf32>
    %271 = vector.shape_cast %236 : vector<8x128xf32> to vector<1x8x128xf32>
    tpu.vector_store %arg6[%268, %c0_121, %c0_122], %271 {strides = array<i32>} : memref<8x8x128xf32, #tpu.memory_space<vmem>>, vector<1x8x128xf32>,
    %272 = arith.index_cast %195 : i32 to index
    %c0_123 = arith.constant 0 : index
    %c0_124 = arith.constant 0 : index
    %273 = vector.load %arg7[%272, %c0_123, %c0_124] : memref<8x8x128xf32, #tpu.memory_space<vmem>>, vector<1x8x128xf32>
    %274 = vector.shape_cast %273 : vector<1x8x128xf32> to vector<8x128xf32>
    %275 = vector.shape_cast %267 : vector<8x128xf32> to vector<1x8x128xf32>
    tpu.vector_store %arg7[%272, %c0_123, %c0_124], %275 {strides = array<i32>} : memref<8x8x128xf32, #tpu.memory_space<vmem>>, vector<1x8x128xf32>,
    %c3_i32 = arith.constant 3 : i32
    %c7_i32_125 = arith.constant 7 : i32
    %276 = arith.subi %c7_i32_125, %c3_i32 : i32
    %277 = arith.index_cast %c3_i32 : i32 to index
    %c0_126 = arith.constant 0 : index
    %c0_127 = arith.constant 0 : index
    %278 = vector.load %arg10[%277, %c0_126, %c0_127] : memref<8x8x512xf32, #tpu.memory_space<vmem>>, vector<1x8x512xf32>
    %279 = vector.shape_cast %278 : vector<1x8x512xf32> to vector<8x512xf32>
    %cst_128 = arith.constant dense<0.000000e+00> : vector<8x512xf32>
    %280 = tpu.matmul %236, %26, %cst_128 {dimension_numbers = #tpu.dot_dimension_numbers<[1], [0], [0], [1], [0, 0, 1, 1], [], []>} : vector<8x128xf32>, vector<128x512xf32>, vector<8x512xf32> -> vector<8x512xf32>
    %281 = arith.addf %279, %280 : vector<8x512xf32>
    %282 = arith.index_cast %276 : i32 to index
    %c0_129 = arith.constant 0 : index
    %c0_130 = arith.constant 0 : index
    %283 = vector.load %arg11[%282, %c0_129, %c0_130] : memref<8x8x512xf32, #tpu.memory_space<vmem>>, vector<1x8x512xf32>
    %284 = vector.shape_cast %283 : vector<1x8x512xf32> to vector<8x512xf32>
    %cst_131 = arith.constant dense<0.000000e+00> : vector<8x512xf32>
    %285 = tpu.matmul %267, %28, %cst_131 {dimension_numbers = #tpu.dot_dimension_numbers<[1], [0], [0], [1], [0, 0, 1, 1], [], []>} : vector<8x128xf32>, vector<128x512xf32>, vector<8x512xf32> -> vector<8x512xf32>
    %286 = arith.addf %284, %285 : vector<8x512xf32>
    %287 = vector.extract_strided_slice %281 {offsets = [0, 0], sizes = [8, 128], strides = [1, 1]} : vector<8x512xf32> to vector<8x128xf32>
    %cst_132 = arith.constant 5.000000e-01 : f32
    %288 = vector.broadcast %cst_132 : f32 to vector<8x128xf32>
    %289 = arith.mulf %288, %287 : vector<8x128xf32>
    %290 = math.tanh %289 : vector<8x128xf32>
    %cst_133 = arith.constant 5.000000e-01 : f32
    %291 = vector.broadcast %cst_133 : f32 to vector<8x128xf32>
    %292 = arith.mulf %291, %290 : vector<8x128xf32>
    %cst_134 = arith.constant 5.000000e-01 : f32
    %293 = vector.broadcast %cst_134 : f32 to vector<8x128xf32>
    %294 = arith.addf %292, %293 : vector<8x128xf32>
    %295 = vector.extract_strided_slice %281 {offsets = [0, 128], sizes = [8, 128], strides = [1, 1]} : vector<8x512xf32> to vector<8x128xf32>
    %cst_135 = arith.constant 5.000000e-01 : f32
    %296 = vector.broadcast %cst_135 : f32 to vector<8x128xf32>
    %297 = arith.mulf %296, %295 : vector<8x128xf32>
    %298 = math.tanh %297 : vector<8x128xf32>
    %cst_136 = arith.constant 5.000000e-01 : f32
    %299 = vector.broadcast %cst_136 : f32 to vector<8x128xf32>
    %300 = arith.mulf %299, %298 : vector<8x128xf32>
    %cst_137 = arith.constant 5.000000e-01 : f32
    %301 = vector.broadcast %cst_137 : f32 to vector<8x128xf32>
    %302 = arith.addf %300, %301 : vector<8x128xf32>
    %303 = vector.extract_strided_slice %281 {offsets = [0, 256], sizes = [8, 128], strides = [1, 1]} : vector<8x512xf32> to vector<8x128xf32>
    %304 = math.tanh %303 : vector<8x128xf32>
    %305 = vector.extract_strided_slice %281 {offsets = [0, 384], sizes = [8, 128], strides = [1, 1]} : vector<8x512xf32> to vector<8x128xf32>
    %cst_138 = arith.constant 5.000000e-01 : f32
    %306 = vector.broadcast %cst_138 : f32 to vector<8x128xf32>
    %307 = arith.mulf %306, %305 : vector<8x128xf32>
    %308 = math.tanh %307 : vector<8x128xf32>
    %cst_139 = arith.constant 5.000000e-01 : f32
    %309 = vector.broadcast %cst_139 : f32 to vector<8x128xf32>
    %310 = arith.mulf %309, %308 : vector<8x128xf32>
    %cst_140 = arith.constant 5.000000e-01 : f32
    %311 = vector.broadcast %cst_140 : f32 to vector<8x128xf32>
    %312 = arith.addf %310, %311 : vector<8x128xf32>
    %313 = arith.mulf %302, %234 : vector<8x128xf32>
    %314 = arith.mulf %294, %304 : vector<8x128xf32>
    %315 = arith.addf %313, %314 : vector<8x128xf32>
    %316 = math.tanh %315 : vector<8x128xf32>
    %317 = arith.mulf %312, %316 : vector<8x128xf32>
    %318 = vector.extract_strided_slice %286 {offsets = [0, 0], sizes = [8, 128], strides = [1, 1]} : vector<8x512xf32> to vector<8x128xf32>
    %cst_141 = arith.constant 5.000000e-01 : f32
    %319 = vector.broadcast %cst_141 : f32 to vector<8x128xf32>
    %320 = arith.mulf %319, %318 : vector<8x128xf32>
    %321 = math.tanh %320 : vector<8x128xf32>
    %cst_142 = arith.constant 5.000000e-01 : f32
    %322 = vector.broadcast %cst_142 : f32 to vector<8x128xf32>
    %323 = arith.mulf %322, %321 : vector<8x128xf32>
    %cst_143 = arith.constant 5.000000e-01 : f32
    %324 = vector.broadcast %cst_143 : f32 to vector<8x128xf32>
    %325 = arith.addf %323, %324 : vector<8x128xf32>
    %326 = vector.extract_strided_slice %286 {offsets = [0, 128], sizes = [8, 128], strides = [1, 1]} : vector<8x512xf32> to vector<8x128xf32>
    %cst_144 = arith.constant 5.000000e-01 : f32
    %327 = vector.broadcast %cst_144 : f32 to vector<8x128xf32>
    %328 = arith.mulf %327, %326 : vector<8x128xf32>
    %329 = math.tanh %328 : vector<8x128xf32>
    %cst_145 = arith.constant 5.000000e-01 : f32
    %330 = vector.broadcast %cst_145 : f32 to vector<8x128xf32>
    %331 = arith.mulf %330, %329 : vector<8x128xf32>
    %cst_146 = arith.constant 5.000000e-01 : f32
    %332 = vector.broadcast %cst_146 : f32 to vector<8x128xf32>
    %333 = arith.addf %331, %332 : vector<8x128xf32>
    %334 = vector.extract_strided_slice %286 {offsets = [0, 256], sizes = [8, 128], strides = [1, 1]} : vector<8x512xf32> to vector<8x128xf32>
    %335 = math.tanh %334 : vector<8x128xf32>
    %336 = vector.extract_strided_slice %286 {offsets = [0, 384], sizes = [8, 128], strides = [1, 1]} : vector<8x512xf32> to vector<8x128xf32>
    %cst_147 = arith.constant 5.000000e-01 : f32
    %337 = vector.broadcast %cst_147 : f32 to vector<8x128xf32>
    %338 = arith.mulf %337, %336 : vector<8x128xf32>
    %339 = math.tanh %338 : vector<8x128xf32>
    %cst_148 = arith.constant 5.000000e-01 : f32
    %340 = vector.broadcast %cst_148 : f32 to vector<8x128xf32>
    %341 = arith.mulf %340, %339 : vector<8x128xf32>
    %cst_149 = arith.constant 5.000000e-01 : f32
    %342 = vector.broadcast %cst_149 : f32 to vector<8x128xf32>
    %343 = arith.addf %341, %342 : vector<8x128xf32>
    %344 = arith.mulf %333, %265 : vector<8x128xf32>
    %345 = arith.mulf %325, %335 : vector<8x128xf32>
    %346 = arith.addf %344, %345 : vector<8x128xf32>
    %347 = math.tanh %346 : vector<8x128xf32>
    %348 = arith.mulf %343, %347 : vector<8x128xf32>
    %349 = arith.index_cast %c3_i32 : i32 to index
    %c0_150 = arith.constant 0 : index
    %c0_151 = arith.constant 0 : index
    %350 = vector.load %arg6[%349, %c0_150, %c0_151] : memref<8x8x128xf32, #tpu.memory_space<vmem>>, vector<1x8x128xf32>
    %351 = vector.shape_cast %350 : vector<1x8x128xf32> to vector<8x128xf32>
    %352 = vector.shape_cast %317 : vector<8x128xf32> to vector<1x8x128xf32>
    tpu.vector_store %arg6[%349, %c0_150, %c0_151], %352 {strides = array<i32>} : memref<8x8x128xf32, #tpu.memory_space<vmem>>, vector<1x8x128xf32>,
    %353 = arith.index_cast %276 : i32 to index
    %c0_152 = arith.constant 0 : index
    %c0_153 = arith.constant 0 : index
    %354 = vector.load %arg7[%353, %c0_152, %c0_153] : memref<8x8x128xf32, #tpu.memory_space<vmem>>, vector<1x8x128xf32>
    %355 = vector.shape_cast %354 : vector<1x8x128xf32> to vector<8x128xf32>
    %356 = vector.shape_cast %348 : vector<8x128xf32> to vector<1x8x128xf32>
    tpu.vector_store %arg7[%353, %c0_152, %c0_153], %356 {strides = array<i32>} : memref<8x8x128xf32, #tpu.memory_space<vmem>>, vector<1x8x128xf32>,
    %c4_i32 = arith.constant 4 : i32
    %c7_i32_154 = arith.constant 7 : i32
    %357 = arith.subi %c7_i32_154, %c4_i32 : i32
    %358 = arith.index_cast %c4_i32 : i32 to index
    %c0_155 = arith.constant 0 : index
    %c0_156 = arith.constant 0 : index
    %359 = vector.load %arg10[%358, %c0_155, %c0_156] : memref<8x8x512xf32, #tpu.memory_space<vmem>>, vector<1x8x512xf32>
    %360 = vector.shape_cast %359 : vector<1x8x512xf32> to vector<8x512xf32>
    %cst_157 = arith.constant dense<0.000000e+00> : vector<8x512xf32>
    %361 = tpu.matmul %317, %26, %cst_157 {dimension_numbers = #tpu.dot_dimension_numbers<[1], [0], [0], [1], [0, 0, 1, 1], [], []>} : vector<8x128xf32>, vector<128x512xf32>, vector<8x512xf32> -> vector<8x512xf32>
    %362 = arith.addf %360, %361 : vector<8x512xf32>
    %363 = arith.index_cast %357 : i32 to index
    %c0_158 = arith.constant 0 : index
    %c0_159 = arith.constant 0 : index
    %364 = vector.load %arg11[%363, %c0_158, %c0_159] : memref<8x8x512xf32, #tpu.memory_space<vmem>>, vector<1x8x512xf32>
    %365 = vector.shape_cast %364 : vector<1x8x512xf32> to vector<8x512xf32>
    %cst_160 = arith.constant dense<0.000000e+00> : vector<8x512xf32>
    %366 = tpu.matmul %348, %28, %cst_160 {dimension_numbers = #tpu.dot_dimension_numbers<[1], [0], [0], [1], [0, 0, 1, 1], [], []>} : vector<8x128xf32>, vector<128x512xf32>, vector<8x512xf32> -> vector<8x512xf32>
    %367 = arith.addf %365, %366 : vector<8x512xf32>
    %368 = vector.extract_strided_slice %362 {offsets = [0, 0], sizes = [8, 128], strides = [1, 1]} : vector<8x512xf32> to vector<8x128xf32>
    %cst_161 = arith.constant 5.000000e-01 : f32
    %369 = vector.broadcast %cst_161 : f32 to vector<8x128xf32>
    %370 = arith.mulf %369, %368 : vector<8x128xf32>
    %371 = math.tanh %370 : vector<8x128xf32>
    %cst_162 = arith.constant 5.000000e-01 : f32
    %372 = vector.broadcast %cst_162 : f32 to vector<8x128xf32>
    %373 = arith.mulf %372, %371 : vector<8x128xf32>
    %cst_163 = arith.constant 5.000000e-01 : f32
    %374 = vector.broadcast %cst_163 : f32 to vector<8x128xf32>
    %375 = arith.addf %373, %374 : vector<8x128xf32>
    %376 = vector.extract_strided_slice %362 {offsets = [0, 128], sizes = [8, 128], strides = [1, 1]} : vector<8x512xf32> to vector<8x128xf32>
    %cst_164 = arith.constant 5.000000e-01 : f32
    %377 = vector.broadcast %cst_164 : f32 to vector<8x128xf32>
    %378 = arith.mulf %377, %376 : vector<8x128xf32>
    %379 = math.tanh %378 : vector<8x128xf32>
    %cst_165 = arith.constant 5.000000e-01 : f32
    %380 = vector.broadcast %cst_165 : f32 to vector<8x128xf32>
    %381 = arith.mulf %380, %379 : vector<8x128xf32>
    %cst_166 = arith.constant 5.000000e-01 : f32
    %382 = vector.broadcast %cst_166 : f32 to vector<8x128xf32>
    %383 = arith.addf %381, %382 : vector<8x128xf32>
    %384 = vector.extract_strided_slice %362 {offsets = [0, 256], sizes = [8, 128], strides = [1, 1]} : vector<8x512xf32> to vector<8x128xf32>
    %385 = math.tanh %384 : vector<8x128xf32>
    %386 = vector.extract_strided_slice %362 {offsets = [0, 384], sizes = [8, 128], strides = [1, 1]} : vector<8x512xf32> to vector<8x128xf32>
    %cst_167 = arith.constant 5.000000e-01 : f32
    %387 = vector.broadcast %cst_167 : f32 to vector<8x128xf32>
    %388 = arith.mulf %387, %386 : vector<8x128xf32>
    %389 = math.tanh %388 : vector<8x128xf32>
    %cst_168 = arith.constant 5.000000e-01 : f32
    %390 = vector.broadcast %cst_168 : f32 to vector<8x128xf32>
    %391 = arith.mulf %390, %389 : vector<8x128xf32>
    %cst_169 = arith.constant 5.000000e-01 : f32
    %392 = vector.broadcast %cst_169 : f32 to vector<8x128xf32>
    %393 = arith.addf %391, %392 : vector<8x128xf32>
    %394 = arith.mulf %383, %315 : vector<8x128xf32>
    %395 = arith.mulf %375, %385 : vector<8x128xf32>
    %396 = arith.addf %394, %395 : vector<8x128xf32>
    %397 = math.tanh %396 : vector<8x128xf32>
    %398 = arith.mulf %393, %397 : vector<8x128xf32>
    %399 = vector.extract_strided_slice %367 {offsets = [0, 0], sizes = [8, 128], strides = [1, 1]} : vector<8x512xf32> to vector<8x128xf32>
    %cst_170 = arith.constant 5.000000e-01 : f32
    %400 = vector.broadcast %cst_170 : f32 to vector<8x128xf32>
    %401 = arith.mulf %400, %399 : vector<8x128xf32>
    %402 = math.tanh %401 : vector<8x128xf32>
    %cst_171 = arith.constant 5.000000e-01 : f32
    %403 = vector.broadcast %cst_171 : f32 to vector<8x128xf32>
    %404 = arith.mulf %403, %402 : vector<8x128xf32>
    %cst_172 = arith.constant 5.000000e-01 : f32
    %405 = vector.broadcast %cst_172 : f32 to vector<8x128xf32>
    %406 = arith.addf %404, %405 : vector<8x128xf32>
    %407 = vector.extract_strided_slice %367 {offsets = [0, 128], sizes = [8, 128], strides = [1, 1]} : vector<8x512xf32> to vector<8x128xf32>
    %cst_173 = arith.constant 5.000000e-01 : f32
    %408 = vector.broadcast %cst_173 : f32 to vector<8x128xf32>
    %409 = arith.mulf %408, %407 : vector<8x128xf32>
    %410 = math.tanh %409 : vector<8x128xf32>
    %cst_174 = arith.constant 5.000000e-01 : f32
    %411 = vector.broadcast %cst_174 : f32 to vector<8x128xf32>
    %412 = arith.mulf %411, %410 : vector<8x128xf32>
    %cst_175 = arith.constant 5.000000e-01 : f32
    %413 = vector.broadcast %cst_175 : f32 to vector<8x128xf32>
    %414 = arith.addf %412, %413 : vector<8x128xf32>
    %415 = vector.extract_strided_slice %367 {offsets = [0, 256], sizes = [8, 128], strides = [1, 1]} : vector<8x512xf32> to vector<8x128xf32>
    %416 = math.tanh %415 : vector<8x128xf32>
    %417 = vector.extract_strided_slice %367 {offsets = [0, 384], sizes = [8, 128], strides = [1, 1]} : vector<8x512xf32> to vector<8x128xf32>
    %cst_176 = arith.constant 5.000000e-01 : f32
    %418 = vector.broadcast %cst_176 : f32 to vector<8x128xf32>
    %419 = arith.mulf %418, %417 : vector<8x128xf32>
    %420 = math.tanh %419 : vector<8x128xf32>
    %cst_177 = arith.constant 5.000000e-01 : f32
    %421 = vector.broadcast %cst_177 : f32 to vector<8x128xf32>
    %422 = arith.mulf %421, %420 : vector<8x128xf32>
    %cst_178 = arith.constant 5.000000e-01 : f32
    %423 = vector.broadcast %cst_178 : f32 to vector<8x128xf32>
    %424 = arith.addf %422, %423 : vector<8x128xf32>
    %425 = arith.mulf %414, %346 : vector<8x128xf32>
    %426 = arith.mulf %406, %416 : vector<8x128xf32>
    %427 = arith.addf %425, %426 : vector<8x128xf32>
    %428 = math.tanh %427 : vector<8x128xf32>
    %429 = arith.mulf %424, %428 : vector<8x128xf32>
    %430 = arith.index_cast %c4_i32 : i32 to index
    %c0_179 = arith.constant 0 : index
    %c0_180 = arith.constant 0 : index
    %431 = vector.load %arg6[%430, %c0_179, %c0_180] : memref<8x8x128xf32, #tpu.memory_space<vmem>>, vector<1x8x128xf32>
    %432 = vector.shape_cast %431 : vector<1x8x128xf32> to vector<8x128xf32>
    %433 = vector.shape_cast %398 : vector<8x128xf32> to vector<1x8x128xf32>
    tpu.vector_store %arg6[%430, %c0_179, %c0_180], %433 {strides = array<i32>} : memref<8x8x128xf32, #tpu.memory_space<vmem>>, vector<1x8x128xf32>,
    %434 = arith.index_cast %357 : i32 to index
    %c0_181 = arith.constant 0 : index
    %c0_182 = arith.constant 0 : index
    %435 = vector.load %arg7[%434, %c0_181, %c0_182] : memref<8x8x128xf32, #tpu.memory_space<vmem>>, vector<1x8x128xf32>
    %436 = vector.shape_cast %435 : vector<1x8x128xf32> to vector<8x128xf32>
    %437 = vector.shape_cast %429 : vector<8x128xf32> to vector<1x8x128xf32>
    tpu.vector_store %arg7[%434, %c0_181, %c0_182], %437 {strides = array<i32>} : memref<8x8x128xf32, #tpu.memory_space<vmem>>, vector<1x8x128xf32>,
    %c5_i32 = arith.constant 5 : i32
    %c7_i32_183 = arith.constant 7 : i32
    %438 = arith.subi %c7_i32_183, %c5_i32 : i32
    %439 = arith.index_cast %c5_i32 : i32 to index
    %c0_184 = arith.constant 0 : index
    %c0_185 = arith.constant 0 : index
    %440 = vector.load %arg10[%439, %c0_184, %c0_185] : memref<8x8x512xf32, #tpu.memory_space<vmem>>, vector<1x8x512xf32>
    %441 = vector.shape_cast %440 : vector<1x8x512xf32> to vector<8x512xf32>
    %cst_186 = arith.constant dense<0.000000e+00> : vector<8x512xf32>
    %442 = tpu.matmul %398, %26, %cst_186 {dimension_numbers = #tpu.dot_dimension_numbers<[1], [0], [0], [1], [0, 0, 1, 1], [], []>} : vector<8x128xf32>, vector<128x512xf32>, vector<8x512xf32> -> vector<8x512xf32>
    %443 = arith.addf %441, %442 : vector<8x512xf32>
    %444 = arith.index_cast %438 : i32 to index
    %c0_187 = arith.constant 0 : index
    %c0_188 = arith.constant 0 : index
    %445 = vector.load %arg11[%444, %c0_187, %c0_188] : memref<8x8x512xf32, #tpu.memory_space<vmem>>, vector<1x8x512xf32>
    %446 = vector.shape_cast %445 : vector<1x8x512xf32> to vector<8x512xf32>
    %cst_189 = arith.constant dense<0.000000e+00> : vector<8x512xf32>
    %447 = tpu.matmul %429, %28, %cst_189 {dimension_numbers = #tpu.dot_dimension_numbers<[1], [0], [0], [1], [0, 0, 1, 1], [], []>} : vector<8x128xf32>, vector<128x512xf32>, vector<8x512xf32> -> vector<8x512xf32>
    %448 = arith.addf %446, %447 : vector<8x512xf32>
    %449 = vector.extract_strided_slice %443 {offsets = [0, 0], sizes = [8, 128], strides = [1, 1]} : vector<8x512xf32> to vector<8x128xf32>
    %cst_190 = arith.constant 5.000000e-01 : f32
    %450 = vector.broadcast %cst_190 : f32 to vector<8x128xf32>
    %451 = arith.mulf %450, %449 : vector<8x128xf32>
    %452 = math.tanh %451 : vector<8x128xf32>
    %cst_191 = arith.constant 5.000000e-01 : f32
    %453 = vector.broadcast %cst_191 : f32 to vector<8x128xf32>
    %454 = arith.mulf %453, %452 : vector<8x128xf32>
    %cst_192 = arith.constant 5.000000e-01 : f32
    %455 = vector.broadcast %cst_192 : f32 to vector<8x128xf32>
    %456 = arith.addf %454, %455 : vector<8x128xf32>
    %457 = vector.extract_strided_slice %443 {offsets = [0, 128], sizes = [8, 128], strides = [1, 1]} : vector<8x512xf32> to vector<8x128xf32>
    %cst_193 = arith.constant 5.000000e-01 : f32
    %458 = vector.broadcast %cst_193 : f32 to vector<8x128xf32>
    %459 = arith.mulf %458, %457 : vector<8x128xf32>
    %460 = math.tanh %459 : vector<8x128xf32>
    %cst_194 = arith.constant 5.000000e-01 : f32
    %461 = vector.broadcast %cst_194 : f32 to vector<8x128xf32>
    %462 = arith.mulf %461, %460 : vector<8x128xf32>
    %cst_195 = arith.constant 5.000000e-01 : f32
    %463 = vector.broadcast %cst_195 : f32 to vector<8x128xf32>
    %464 = arith.addf %462, %463 : vector<8x128xf32>
    %465 = vector.extract_strided_slice %443 {offsets = [0, 256], sizes = [8, 128], strides = [1, 1]} : vector<8x512xf32> to vector<8x128xf32>
    %466 = math.tanh %465 : vector<8x128xf32>
    %467 = vector.extract_strided_slice %443 {offsets = [0, 384], sizes = [8, 128], strides = [1, 1]} : vector<8x512xf32> to vector<8x128xf32>
    %cst_196 = arith.constant 5.000000e-01 : f32
    %468 = vector.broadcast %cst_196 : f32 to vector<8x128xf32>
    %469 = arith.mulf %468, %467 : vector<8x128xf32>
    %470 = math.tanh %469 : vector<8x128xf32>
    %cst_197 = arith.constant 5.000000e-01 : f32
    %471 = vector.broadcast %cst_197 : f32 to vector<8x128xf32>
    %472 = arith.mulf %471, %470 : vector<8x128xf32>
    %cst_198 = arith.constant 5.000000e-01 : f32
    %473 = vector.broadcast %cst_198 : f32 to vector<8x128xf32>
    %474 = arith.addf %472, %473 : vector<8x128xf32>
    %475 = arith.mulf %464, %396 : vector<8x128xf32>
    %476 = arith.mulf %456, %466 : vector<8x128xf32>
    %477 = arith.addf %475, %476 : vector<8x128xf32>
    %478 = math.tanh %477 : vector<8x128xf32>
    %479 = arith.mulf %474, %478 : vector<8x128xf32>
    %480 = vector.extract_strided_slice %448 {offsets = [0, 0], sizes = [8, 128], strides = [1, 1]} : vector<8x512xf32> to vector<8x128xf32>
    %cst_199 = arith.constant 5.000000e-01 : f32
    %481 = vector.broadcast %cst_199 : f32 to vector<8x128xf32>
    %482 = arith.mulf %481, %480 : vector<8x128xf32>
    %483 = math.tanh %482 : vector<8x128xf32>
    %cst_200 = arith.constant 5.000000e-01 : f32
    %484 = vector.broadcast %cst_200 : f32 to vector<8x128xf32>
    %485 = arith.mulf %484, %483 : vector<8x128xf32>
    %cst_201 = arith.constant 5.000000e-01 : f32
    %486 = vector.broadcast %cst_201 : f32 to vector<8x128xf32>
    %487 = arith.addf %485, %486 : vector<8x128xf32>
    %488 = vector.extract_strided_slice %448 {offsets = [0, 128], sizes = [8, 128], strides = [1, 1]} : vector<8x512xf32> to vector<8x128xf32>
    %cst_202 = arith.constant 5.000000e-01 : f32
    %489 = vector.broadcast %cst_202 : f32 to vector<8x128xf32>
    %490 = arith.mulf %489, %488 : vector<8x128xf32>
    %491 = math.tanh %490 : vector<8x128xf32>
    %cst_203 = arith.constant 5.000000e-01 : f32
    %492 = vector.broadcast %cst_203 : f32 to vector<8x128xf32>
    %493 = arith.mulf %492, %491 : vector<8x128xf32>
    %cst_204 = arith.constant 5.000000e-01 : f32
    %494 = vector.broadcast %cst_204 : f32 to vector<8x128xf32>
    %495 = arith.addf %493, %494 : vector<8x128xf32>
    %496 = vector.extract_strided_slice %448 {offsets = [0, 256], sizes = [8, 128], strides = [1, 1]} : vector<8x512xf32> to vector<8x128xf32>
    %497 = math.tanh %496 : vector<8x128xf32>
    %498 = vector.extract_strided_slice %448 {offsets = [0, 384], sizes = [8, 128], strides = [1, 1]} : vector<8x512xf32> to vector<8x128xf32>
    %cst_205 = arith.constant 5.000000e-01 : f32
    %499 = vector.broadcast %cst_205 : f32 to vector<8x128xf32>
    %500 = arith.mulf %499, %498 : vector<8x128xf32>
    %501 = math.tanh %500 : vector<8x128xf32>
    %cst_206 = arith.constant 5.000000e-01 : f32
    %502 = vector.broadcast %cst_206 : f32 to vector<8x128xf32>
    %503 = arith.mulf %502, %501 : vector<8x128xf32>
    %cst_207 = arith.constant 5.000000e-01 : f32
    %504 = vector.broadcast %cst_207 : f32 to vector<8x128xf32>
    %505 = arith.addf %503, %504 : vector<8x128xf32>
    %506 = arith.mulf %495, %427 : vector<8x128xf32>
    %507 = arith.mulf %487, %497 : vector<8x128xf32>
    %508 = arith.addf %506, %507 : vector<8x128xf32>
    %509 = math.tanh %508 : vector<8x128xf32>
    %510 = arith.mulf %505, %509 : vector<8x128xf32>
    %511 = arith.index_cast %c5_i32 : i32 to index
    %c0_208 = arith.constant 0 : index
    %c0_209 = arith.constant 0 : index
    %512 = vector.load %arg6[%511, %c0_208, %c0_209] : memref<8x8x128xf32, #tpu.memory_space<vmem>>, vector<1x8x128xf32>
    %513 = vector.shape_cast %512 : vector<1x8x128xf32> to vector<8x128xf32>
    %514 = vector.shape_cast %479 : vector<8x128xf32> to vector<1x8x128xf32>
    tpu.vector_store %arg6[%511, %c0_208, %c0_209], %514 {strides = array<i32>} : memref<8x8x128xf32, #tpu.memory_space<vmem>>, vector<1x8x128xf32>,
    %515 = arith.index_cast %438 : i32 to index
    %c0_210 = arith.constant 0 : index
    %c0_211 = arith.constant 0 : index
    %516 = vector.load %arg7[%515, %c0_210, %c0_211] : memref<8x8x128xf32, #tpu.memory_space<vmem>>, vector<1x8x128xf32>
    %517 = vector.shape_cast %516 : vector<1x8x128xf32> to vector<8x128xf32>
    %518 = vector.shape_cast %510 : vector<8x128xf32> to vector<1x8x128xf32>
    tpu.vector_store %arg7[%515, %c0_210, %c0_211], %518 {strides = array<i32>} : memref<8x8x128xf32, #tpu.memory_space<vmem>>, vector<1x8x128xf32>,
    %c6_i32 = arith.constant 6 : i32
    %c7_i32_212 = arith.constant 7 : i32
    %519 = arith.subi %c7_i32_212, %c6_i32 : i32
    %520 = arith.index_cast %c6_i32 : i32 to index
    %c0_213 = arith.constant 0 : index
    %c0_214 = arith.constant 0 : index
    %521 = vector.load %arg10[%520, %c0_213, %c0_214] : memref<8x8x512xf32, #tpu.memory_space<vmem>>, vector<1x8x512xf32>
    %522 = vector.shape_cast %521 : vector<1x8x512xf32> to vector<8x512xf32>
    %cst_215 = arith.constant dense<0.000000e+00> : vector<8x512xf32>
    %523 = tpu.matmul %479, %26, %cst_215 {dimension_numbers = #tpu.dot_dimension_numbers<[1], [0], [0], [1], [0, 0, 1, 1], [], []>} : vector<8x128xf32>, vector<128x512xf32>, vector<8x512xf32> -> vector<8x512xf32>
    %524 = arith.addf %522, %523 : vector<8x512xf32>
    %525 = arith.index_cast %519 : i32 to index
    %c0_216 = arith.constant 0 : index
    %c0_217 = arith.constant 0 : index
    %526 = vector.load %arg11[%525, %c0_216, %c0_217] : memref<8x8x512xf32, #tpu.memory_space<vmem>>, vector<1x8x512xf32>
    %527 = vector.shape_cast %526 : vector<1x8x512xf32> to vector<8x512xf32>
    %cst_218 = arith.constant dense<0.000000e+00> : vector<8x512xf32>
    %528 = tpu.matmul %510, %28, %cst_218 {dimension_numbers = #tpu.dot_dimension_numbers<[1], [0], [0], [1], [0, 0, 1, 1], [], []>} : vector<8x128xf32>, vector<128x512xf32>, vector<8x512xf32> -> vector<8x512xf32>
    %529 = arith.addf %527, %528 : vector<8x512xf32>
    %530 = vector.extract_strided_slice %524 {offsets = [0, 0], sizes = [8, 128], strides = [1, 1]} : vector<8x512xf32> to vector<8x128xf32>
    %cst_219 = arith.constant 5.000000e-01 : f32
    %531 = vector.broadcast %cst_219 : f32 to vector<8x128xf32>
    %532 = arith.mulf %531, %530 : vector<8x128xf32>
    %533 = math.tanh %532 : vector<8x128xf32>
    %cst_220 = arith.constant 5.000000e-01 : f32
    %534 = vector.broadcast %cst_220 : f32 to vector<8x128xf32>
    %535 = arith.mulf %534, %533 : vector<8x128xf32>
    %cst_221 = arith.constant 5.000000e-01 : f32
    %536 = vector.broadcast %cst_221 : f32 to vector<8x128xf32>
    %537 = arith.addf %535, %536 : vector<8x128xf32>
    %538 = vector.extract_strided_slice %524 {offsets = [0, 128], sizes = [8, 128], strides = [1, 1]} : vector<8x512xf32> to vector<8x128xf32>
    %cst_222 = arith.constant 5.000000e-01 : f32
    %539 = vector.broadcast %cst_222 : f32 to vector<8x128xf32>
    %540 = arith.mulf %539, %538 : vector<8x128xf32>
    %541 = math.tanh %540 : vector<8x128xf32>
    %cst_223 = arith.constant 5.000000e-01 : f32
    %542 = vector.broadcast %cst_223 : f32 to vector<8x128xf32>
    %543 = arith.mulf %542, %541 : vector<8x128xf32>
    %cst_224 = arith.constant 5.000000e-01 : f32
    %544 = vector.broadcast %cst_224 : f32 to vector<8x128xf32>
    %545 = arith.addf %543, %544 : vector<8x128xf32>
    %546 = vector.extract_strided_slice %524 {offsets = [0, 256], sizes = [8, 128], strides = [1, 1]} : vector<8x512xf32> to vector<8x128xf32>
    %547 = math.tanh %546 : vector<8x128xf32>
    %548 = vector.extract_strided_slice %524 {offsets = [0, 384], sizes = [8, 128], strides = [1, 1]} : vector<8x512xf32> to vector<8x128xf32>
    %cst_225 = arith.constant 5.000000e-01 : f32
    %549 = vector.broadcast %cst_225 : f32 to vector<8x128xf32>
    %550 = arith.mulf %549, %548 : vector<8x128xf32>
    %551 = math.tanh %550 : vector<8x128xf32>
    %cst_226 = arith.constant 5.000000e-01 : f32
    %552 = vector.broadcast %cst_226 : f32 to vector<8x128xf32>
    %553 = arith.mulf %552, %551 : vector<8x128xf32>
    %cst_227 = arith.constant 5.000000e-01 : f32
    %554 = vector.broadcast %cst_227 : f32 to vector<8x128xf32>
    %555 = arith.addf %553, %554 : vector<8x128xf32>
    %556 = arith.mulf %545, %477 : vector<8x128xf32>
    %557 = arith.mulf %537, %547 : vector<8x128xf32>
    %558 = arith.addf %556, %557 : vector<8x128xf32>
    %559 = math.tanh %558 : vector<8x128xf32>
    %560 = arith.mulf %555, %559 : vector<8x128xf32>
    %561 = vector.extract_strided_slice %529 {offsets = [0, 0], sizes = [8, 128], strides = [1, 1]} : vector<8x512xf32> to vector<8x128xf32>
    %cst_228 = arith.constant 5.000000e-01 : f32
    %562 = vector.broadcast %cst_228 : f32 to vector<8x128xf32>
    %563 = arith.mulf %562, %561 : vector<8x128xf32>
    %564 = math.tanh %563 : vector<8x128xf32>
    %cst_229 = arith.constant 5.000000e-01 : f32
    %565 = vector.broadcast %cst_229 : f32 to vector<8x128xf32>
    %566 = arith.mulf %565, %564 : vector<8x128xf32>
    %cst_230 = arith.constant 5.000000e-01 : f32
    %567 = vector.broadcast %cst_230 : f32 to vector<8x128xf32>
    %568 = arith.addf %566, %567 : vector<8x128xf32>
    %569 = vector.extract_strided_slice %529 {offsets = [0, 128], sizes = [8, 128], strides = [1, 1]} : vector<8x512xf32> to vector<8x128xf32>
    %cst_231 = arith.constant 5.000000e-01 : f32
    %570 = vector.broadcast %cst_231 : f32 to vector<8x128xf32>
    %571 = arith.mulf %570, %569 : vector<8x128xf32>
    %572 = math.tanh %571 : vector<8x128xf32>
    %cst_232 = arith.constant 5.000000e-01 : f32
    %573 = vector.broadcast %cst_232 : f32 to vector<8x128xf32>
    %574 = arith.mulf %573, %572 : vector<8x128xf32>
    %cst_233 = arith.constant 5.000000e-01 : f32
    %575 = vector.broadcast %cst_233 : f32 to vector<8x128xf32>
    %576 = arith.addf %574, %575 : vector<8x128xf32>
    %577 = vector.extract_strided_slice %529 {offsets = [0, 256], sizes = [8, 128], strides = [1, 1]} : vector<8x512xf32> to vector<8x128xf32>
    %578 = math.tanh %577 : vector<8x128xf32>
    %579 = vector.extract_strided_slice %529 {offsets = [0, 384], sizes = [8, 128], strides = [1, 1]} : vector<8x512xf32> to vector<8x128xf32>
    %cst_234 = arith.constant 5.000000e-01 : f32
    %580 = vector.broadcast %cst_234 : f32 to vector<8x128xf32>
    %581 = arith.mulf %580, %579 : vector<8x128xf32>
    %582 = math.tanh %581 : vector<8x128xf32>
    %cst_235 = arith.constant 5.000000e-01 : f32
    %583 = vector.broadcast %cst_235 : f32 to vector<8x128xf32>
    %584 = arith.mulf %583, %582 : vector<8x128xf32>
    %cst_236 = arith.constant 5.000000e-01 : f32
    %585 = vector.broadcast %cst_236 : f32 to vector<8x128xf32>
    %586 = arith.addf %584, %585 : vector<8x128xf32>
    %587 = arith.mulf %576, %508 : vector<8x128xf32>
    %588 = arith.mulf %568, %578 : vector<8x128xf32>
    %589 = arith.addf %587, %588 : vector<8x128xf32>
    %590 = math.tanh %589 : vector<8x128xf32>
    %591 = arith.mulf %586, %590 : vector<8x128xf32>
    %592 = arith.index_cast %c6_i32 : i32 to index
    %c0_237 = arith.constant 0 : index
    %c0_238 = arith.constant 0 : index
    %593 = vector.load %arg6[%592, %c0_237, %c0_238] : memref<8x8x128xf32, #tpu.memory_space<vmem>>, vector<1x8x128xf32>
    %594 = vector.shape_cast %593 : vector<1x8x128xf32> to vector<8x128xf32>
    %595 = vector.shape_cast %560 : vector<8x128xf32> to vector<1x8x128xf32>
    tpu.vector_store %arg6[%592, %c0_237, %c0_238], %595 {strides = array<i32>} : memref<8x8x128xf32, #tpu.memory_space<vmem>>, vector<1x8x128xf32>,
    %596 = arith.index_cast %519 : i32 to index
    %c0_239 = arith.constant 0 : index
    %c0_240 = arith.constant 0 : index
    %597 = vector.load %arg7[%596, %c0_239, %c0_240] : memref<8x8x128xf32, #tpu.memory_space<vmem>>, vector<1x8x128xf32>
    %598 = vector.shape_cast %597 : vector<1x8x128xf32> to vector<8x128xf32>
    %599 = vector.shape_cast %591 : vector<8x128xf32> to vector<1x8x128xf32>
    tpu.vector_store %arg7[%596, %c0_239, %c0_240], %599 {strides = array<i32>} : memref<8x8x128xf32, #tpu.memory_space<vmem>>, vector<1x8x128xf32>,
    %c7_i32_241 = arith.constant 7 : i32
    %c7_i32_242 = arith.constant 7 : i32
    %600 = arith.subi %c7_i32_242, %c7_i32_241 : i32
    %601 = arith.index_cast %c7_i32_241 : i32 to index
    %c0_243 = arith.constant 0 : index
    %c0_244 = arith.constant 0 : index
    %602 = vector.load %arg10[%601, %c0_243, %c0_244] : memref<8x8x512xf32, #tpu.memory_space<vmem>>, vector<1x8x512xf32>
    %603 = vector.shape_cast %602 : vector<1x8x512xf32> to vector<8x512xf32>
    %cst_245 = arith.constant dense<0.000000e+00> : vector<8x512xf32>
    %604 = tpu.matmul %560, %26, %cst_245 {dimension_numbers = #tpu.dot_dimension_numbers<[1], [0], [0], [1], [0, 0, 1, 1], [], []>} : vector<8x128xf32>, vector<128x512xf32>, vector<8x512xf32> -> vector<8x512xf32>
    %605 = arith.addf %603, %604 : vector<8x512xf32>
    %606 = arith.index_cast %600 : i32 to index
    %c0_246 = arith.constant 0 : index
    %c0_247 = arith.constant 0 : index
    %607 = vector.load %arg11[%606, %c0_246, %c0_247] : memref<8x8x512xf32, #tpu.memory_space<vmem>>, vector<1x8x512xf32>
    %608 = vector.shape_cast %607 : vector<1x8x512xf32> to vector<8x512xf32>
    %cst_248 = arith.constant dense<0.000000e+00> : vector<8x512xf32>
    %609 = tpu.matmul %591, %28, %cst_248 {dimension_numbers = #tpu.dot_dimension_numbers<[1], [0], [0], [1], [0, 0, 1, 1], [], []>} : vector<8x128xf32>, vector<128x512xf32>, vector<8x512xf32> -> vector<8x512xf32>
    %610 = arith.addf %608, %609 : vector<8x512xf32>
    %611 = vector.extract_strided_slice %605 {offsets = [0, 0], sizes = [8, 128], strides = [1, 1]} : vector<8x512xf32> to vector<8x128xf32>
    %cst_249 = arith.constant 5.000000e-01 : f32
    %612 = vector.broadcast %cst_249 : f32 to vector<8x128xf32>
    %613 = arith.mulf %612, %611 : vector<8x128xf32>
    %614 = math.tanh %613 : vector<8x128xf32>
    %cst_250 = arith.constant 5.000000e-01 : f32
    %615 = vector.broadcast %cst_250 : f32 to vector<8x128xf32>
    %616 = arith.mulf %615, %614 : vector<8x128xf32>
    %cst_251 = arith.constant 5.000000e-01 : f32
    %617 = vector.broadcast %cst_251 : f32 to vector<8x128xf32>
    %618 = arith.addf %616, %617 : vector<8x128xf32>
    %619 = vector.extract_strided_slice %605 {offsets = [0, 128], sizes = [8, 128], strides = [1, 1]} : vector<8x512xf32> to vector<8x128xf32>
    %cst_252 = arith.constant 5.000000e-01 : f32
    %620 = vector.broadcast %cst_252 : f32 to vector<8x128xf32>
    %621 = arith.mulf %620, %619 : vector<8x128xf32>
    %622 = math.tanh %621 : vector<8x128xf32>
    %cst_253 = arith.constant 5.000000e-01 : f32
    %623 = vector.broadcast %cst_253 : f32 to vector<8x128xf32>
    %624 = arith.mulf %623, %622 : vector<8x128xf32>
    %cst_254 = arith.constant 5.000000e-01 : f32
    %625 = vector.broadcast %cst_254 : f32 to vector<8x128xf32>
    %626 = arith.addf %624, %625 : vector<8x128xf32>
    %627 = vector.extract_strided_slice %605 {offsets = [0, 256], sizes = [8, 128], strides = [1, 1]} : vector<8x512xf32> to vector<8x128xf32>
    %628 = math.tanh %627 : vector<8x128xf32>
    %629 = vector.extract_strided_slice %605 {offsets = [0, 384], sizes = [8, 128], strides = [1, 1]} : vector<8x512xf32> to vector<8x128xf32>
    %cst_255 = arith.constant 5.000000e-01 : f32
    %630 = vector.broadcast %cst_255 : f32 to vector<8x128xf32>
    %631 = arith.mulf %630, %629 : vector<8x128xf32>
    %632 = math.tanh %631 : vector<8x128xf32>
    %cst_256 = arith.constant 5.000000e-01 : f32
    %633 = vector.broadcast %cst_256 : f32 to vector<8x128xf32>
    %634 = arith.mulf %633, %632 : vector<8x128xf32>
    %cst_257 = arith.constant 5.000000e-01 : f32
    %635 = vector.broadcast %cst_257 : f32 to vector<8x128xf32>
    %636 = arith.addf %634, %635 : vector<8x128xf32>
    %637 = arith.mulf %626, %558 : vector<8x128xf32>
    %638 = arith.mulf %618, %628 : vector<8x128xf32>
    %639 = arith.addf %637, %638 : vector<8x128xf32>
    %640 = math.tanh %639 : vector<8x128xf32>
    %641 = arith.mulf %636, %640 : vector<8x128xf32>
    %642 = vector.extract_strided_slice %610 {offsets = [0, 0], sizes = [8, 128], strides = [1, 1]} : vector<8x512xf32> to vector<8x128xf32>
    %cst_258 = arith.constant 5.000000e-01 : f32
    %643 = vector.broadcast %cst_258 : f32 to vector<8x128xf32>
    %644 = arith.mulf %643, %642 : vector<8x128xf32>
    %645 = math.tanh %644 : vector<8x128xf32>
    %cst_259 = arith.constant 5.000000e-01 : f32
    %646 = vector.broadcast %cst_259 : f32 to vector<8x128xf32>
    %647 = arith.mulf %646, %645 : vector<8x128xf32>
    %cst_260 = arith.constant 5.000000e-01 : f32
    %648 = vector.broadcast %cst_260 : f32 to vector<8x128xf32>
    %649 = arith.addf %647, %648 : vector<8x128xf32>
    %650 = vector.extract_strided_slice %610 {offsets = [0, 128], sizes = [8, 128], strides = [1, 1]} : vector<8x512xf32> to vector<8x128xf32>
    %cst_261 = arith.constant 5.000000e-01 : f32
    %651 = vector.broadcast %cst_261 : f32 to vector<8x128xf32>
    %652 = arith.mulf %651, %650 : vector<8x128xf32>
    %653 = math.tanh %652 : vector<8x128xf32>
    %cst_262 = arith.constant 5.000000e-01 : f32
    %654 = vector.broadcast %cst_262 : f32 to vector<8x128xf32>
    %655 = arith.mulf %654, %653 : vector<8x128xf32>
    %cst_263 = arith.constant 5.000000e-01 : f32
    %656 = vector.broadcast %cst_263 : f32 to vector<8x128xf32>
    %657 = arith.addf %655, %656 : vector<8x128xf32>
    %658 = vector.extract_strided_slice %610 {offsets = [0, 256], sizes = [8, 128], strides = [1, 1]} : vector<8x512xf32> to vector<8x128xf32>
    %659 = math.tanh %658 : vector<8x128xf32>
    %660 = vector.extract_strided_slice %610 {offsets = [0, 384], sizes = [8, 128], strides = [1, 1]} : vector<8x512xf32> to vector<8x128xf32>
    %cst_264 = arith.constant 5.000000e-01 : f32
    %661 = vector.broadcast %cst_264 : f32 to vector<8x128xf32>
    %662 = arith.mulf %661, %660 : vector<8x128xf32>
    %663 = math.tanh %662 : vector<8x128xf32>
    %cst_265 = arith.constant 5.000000e-01 : f32
    %664 = vector.broadcast %cst_265 : f32 to vector<8x128xf32>
    %665 = arith.mulf %664, %663 : vector<8x128xf32>
    %cst_266 = arith.constant 5.000000e-01 : f32
    %666 = vector.broadcast %cst_266 : f32 to vector<8x128xf32>
    %667 = arith.addf %665, %666 : vector<8x128xf32>
    %668 = arith.mulf %657, %589 : vector<8x128xf32>
    %669 = arith.mulf %649, %659 : vector<8x128xf32>
    %670 = arith.addf %668, %669 : vector<8x128xf32>
    %671 = math.tanh %670 : vector<8x128xf32>
    %672 = arith.mulf %667, %671 : vector<8x128xf32>
    %673 = arith.index_cast %c7_i32_241 : i32 to index
    %c0_267 = arith.constant 0 : index
    %c0_268 = arith.constant 0 : index
    %674 = vector.load %arg6[%673, %c0_267, %c0_268] : memref<8x8x128xf32, #tpu.memory_space<vmem>>, vector<1x8x128xf32>
    %675 = vector.shape_cast %674 : vector<1x8x128xf32> to vector<8x128xf32>
    %676 = vector.shape_cast %641 : vector<8x128xf32> to vector<1x8x128xf32>
    tpu.vector_store %arg6[%673, %c0_267, %c0_268], %676 {strides = array<i32>} : memref<8x8x128xf32, #tpu.memory_space<vmem>>, vector<1x8x128xf32>,
    %677 = arith.index_cast %600 : i32 to index
    %c0_269 = arith.constant 0 : index
    %c0_270 = arith.constant 0 : index
    %678 = vector.load %arg7[%677, %c0_269, %c0_270] : memref<8x8x128xf32, #tpu.memory_space<vmem>>, vector<1x8x128xf32>
    %679 = vector.shape_cast %678 : vector<1x8x128xf32> to vector<8x128xf32>
    %680 = vector.shape_cast %672 : vector<8x128xf32> to vector<1x8x128xf32>
    tpu.vector_store %arg7[%677, %c0_269, %c0_270], %680 {strides = array<i32>} : memref<8x8x128xf32, #tpu.memory_space<vmem>>, vector<1x8x128xf32>,
    %c8_i32 = arith.constant 8 : i32
    %c0_271 = arith.constant 0 : index
    %c0_272 = arith.constant 0 : index
    %681 = vector.load %arg12[%c0_271, %c0_272] : memref<8x128xf32, #tpu.memory_space<vmem>>, vector<8x128xf32>
    tpu.vector_store %arg12[%c0_271, %c0_272], %641 {strides = array<i32>} : memref<8x128xf32, #tpu.memory_space<vmem>>, vector<8x128xf32>,
    %c0_273 = arith.constant 0 : index
    %c0_274 = arith.constant 0 : index
    %682 = vector.load %arg13[%c0_273, %c0_274] : memref<8x128xf32, #tpu.memory_space<vmem>>, vector<8x128xf32>
    tpu.vector_store %arg13[%c0_273, %c0_274], %639 {strides = array<i32>} : memref<8x128xf32, #tpu.memory_space<vmem>>, vector<8x128xf32>,
    %c0_275 = arith.constant 0 : index
    %c0_276 = arith.constant 0 : index
    %683 = vector.load %arg14[%c0_275, %c0_276] : memref<8x128xf32, #tpu.memory_space<vmem>>, vector<8x128xf32>
    tpu.vector_store %arg14[%c0_275, %c0_276], %672 {strides = array<i32>} : memref<8x128xf32, #tpu.memory_space<vmem>>, vector<8x128xf32>,
    %c0_277 = arith.constant 0 : index
    %c0_278 = arith.constant 0 : index
    %684 = vector.load %arg15[%c0_277, %c0_278] : memref<8x128xf32, #tpu.memory_space<vmem>>, vector<8x128xf32>
    tpu.vector_store %arg15[%c0_277, %c0_278], %670 {strides = array<i32>} : memref<8x128xf32, #tpu.memory_space<vmem>>, vector<8x128xf32>,
    %c0_279 = arith.constant 0 : index
    %c0_280 = arith.constant 0 : index
    %c0_281 = arith.constant 0 : index
    %685 = vector.load %arg8[%c0_279, %c0_280, %c0_281] : memref<2x8x128xf32, #tpu.memory_space<vmem>>, vector<1x8x128xf32>
    %686 = vector.shape_cast %685 : vector<1x8x128xf32> to vector<8x128xf32>
    %687 = vector.shape_cast %641 : vector<8x128xf32> to vector<1x8x128xf32>
    tpu.vector_store %arg8[%c0_279, %c0_280, %c0_281], %687 {strides = array<i32>} : memref<2x8x128xf32, #tpu.memory_space<vmem>>, vector<1x8x128xf32>,
    %c1_282 = arith.constant 1 : index
    %c0_283 = arith.constant 0 : index
    %c0_284 = arith.constant 0 : index
    %688 = vector.load %arg8[%c1_282, %c0_283, %c0_284] : memref<2x8x128xf32, #tpu.memory_space<vmem>>, vector<1x8x128xf32>
    %689 = vector.shape_cast %688 : vector<1x8x128xf32> to vector<8x128xf32>
    %690 = vector.shape_cast %672 : vector<8x128xf32> to vector<1x8x128xf32>
    tpu.vector_store %arg8[%c1_282, %c0_283, %c0_284], %690 {strides = array<i32>} : memref<2x8x128xf32, #tpu.memory_space<vmem>>, vector<1x8x128xf32>,
    %c0_285 = arith.constant 0 : index
    %c0_286 = arith.constant 0 : index
    %c0_287 = arith.constant 0 : index
    %691 = vector.load %arg9[%c0_285, %c0_286, %c0_287] : memref<2x8x128xf32, #tpu.memory_space<vmem>>, vector<1x8x128xf32>
    %692 = vector.shape_cast %691 : vector<1x8x128xf32> to vector<8x128xf32>
    %693 = vector.shape_cast %639 : vector<8x128xf32> to vector<1x8x128xf32>
    tpu.vector_store %arg9[%c0_285, %c0_286, %c0_287], %693 {strides = array<i32>} : memref<2x8x128xf32, #tpu.memory_space<vmem>>, vector<1x8x128xf32>,
    %c1_288 = arith.constant 1 : index
    %c0_289 = arith.constant 0 : index
    %c0_290 = arith.constant 0 : index
    %694 = vector.load %arg9[%c1_288, %c0_289, %c0_290] : memref<2x8x128xf32, #tpu.memory_space<vmem>>, vector<1x8x128xf32>
    %695 = vector.shape_cast %694 : vector<1x8x128xf32> to vector<8x128xf32>
    %696 = vector.shape_cast %670 : vector<8x128xf32> to vector<1x8x128xf32>
    tpu.vector_store %arg9[%c1_288, %c0_289, %c0_290], %696 {strides = array<i32>} : memref<2x8x128xf32, #tpu.memory_space<vmem>>, vector<1x8x128xf32>,
    return
  }
  func.func @transform_0(%arg0: i32) -> (i32, i32, i32) {
    %c0_i32 = arith.constant 0 : i32
    %c0_i32_0 = arith.constant 0 : i32
    %c0_i32_1 = arith.constant 0 : i32
    return %arg0, %c0_i32, %c0_i32_0 : i32, i32, i32
  }
  func.func @transform_1(%arg0: i32) -> (i32, i32, i32) {
    %c0_i32 = arith.constant 0 : i32
    %0 = arith.subi %c0_i32, %arg0 : i32
    %c0_i32_0 = arith.constant 0 : i32
    %c0_i32_1 = arith.constant 0 : i32
    %c0_i32_2 = arith.constant 0 : i32
    return %0, %c0_i32_0, %c0_i32_1 : i32, i32, i32
  }
  func.func @transform_2(%arg0: i32) -> (i32, i32, i32) {
    %c0_i32 = arith.constant 0 : i32
    %c0_i32_0 = arith.constant 0 : i32
    %c0_i32_1 = arith.constant 0 : i32
    %c0_i32_2 = arith.constant 0 : i32
    return %c0_i32, %c0_i32_0, %c0_i32_1 : i32, i32, i32
  }
  func.func @transform_3(%arg0: i32) -> (i32, i32, i32) {
    %c0_i32 = arith.constant 0 : i32
    %c0_i32_0 = arith.constant 0 : i32
    %c0_i32_1 = arith.constant 0 : i32
    %c0_i32_2 = arith.constant 0 : i32
    return %c0_i32, %c0_i32_0, %c0_i32_1 : i32, i32, i32
  }
  func.func @transform_4(%arg0: i32) -> (i32, i32, i32) {
    %c0_i32 = arith.constant 0 : i32
    %c0_i32_0 = arith.constant 0 : i32
    %c0_i32_1 = arith.constant 0 : i32
    %c0_i32_2 = arith.constant 0 : i32
    return %c0_i32, %c0_i32_0, %c0_i32_1 : i32, i32, i32
  }
  func.func @transform_5(%arg0: i32) -> (i32, i32, i32) {
    %c0_i32 = arith.constant 0 : i32
    %c0_i32_0 = arith.constant 0 : i32
    %c0_i32_1 = arith.constant 0 : i32
    return %arg0, %c0_i32, %c0_i32_0 : i32, i32, i32
  }
  func.func @transform_6(%arg0: i32) -> (i32, i32, i32) {
    %c0_i32 = arith.constant 0 : i32
    %0 = arith.subi %c0_i32, %arg0 : i32
    %c0_i32_0 = arith.constant 0 : i32
    %c0_i32_1 = arith.constant 0 : i32
    %c0_i32_2 = arith.constant 0 : i32
    return %0, %c0_i32_0, %c0_i32_1 : i32, i32, i32
  }
  func.func @transform_7(%arg0: i32) -> (i32, i32, i32) {
    %c0_i32 = arith.constant 0 : i32
    %c0_i32_0 = arith.constant 0 : i32
    %c0_i32_1 = arith.constant 0 : i32
    %c0_i32_2 = arith.constant 0 : i32
    return %c0_i32, %c0_i32_0, %c0_i32_1 : i32, i32, i32
  }
  func.func @transform_8(%arg0: i32) -> (i32, i32, i32) {
    %c0_i32 = arith.constant 0 : i32
    %c0_i32_0 = arith.constant 0 : i32
    %c0_i32_1 = arith.constant 0 : i32
    %c0_i32_2 = arith.constant 0 : i32
    return %c0_i32, %c0_i32_0, %c0_i32_1 : i32, i32, i32
  }
}

</mosaic_0001>

<bundles_post_ra>
// kernel: tpu_custom_call.1
= control target key start
LH: loop header
LB: loop body
LE: loop exit
PB: predicated region body
PF: predicated region fallthrough
CT: control target
= control target key end

     0   :  { %14 = vsyncpa [#allocation9], 0  ;;  %s6711_s0 = inlined_call_operand.hbm [shape: f32[8,8,32], index: 0, kind: input, shape index: {}]   ;;  %s6712_s1 = inlined_call_operand.hbm [shape: f32[8,8,32], index: 1, kind: input, shape index: {}]   ;;  %s6713_s2 = inlined_call_operand.hbm [shape: f32[2,32,512], index: 2, kind: input, shape index: {}]   ;;  %s6714_s3 = inlined_call_operand.hbm [shape: f32[2,128,512], index: 3, kind: input, shape index: {}]   ;;  %s6715_s4 = inlined_call_operand.hbm [shape: f32[2,1,512], index: 4, kind: input, shape index: {}]   ;;  %s6716_s5 = inlined_call_operand.hbm [shape: f32[8,8,128], index: 5, kind: output, shape index: {0}]   ;;  %s6717_s6 = inlined_call_operand.hbm [shape: f32[8,8,128], index: 6, kind: output, shape index: {1}]   ;;  %s6718_s7 = inlined_call_operand.hbm [shape: f32[2,8,128], index: 7, kind: output, shape index: {2}]   ;;  %s6719_s8 = inlined_call_operand.hbm [shape: f32[2,8,128], index: 8, kind: output, shape index: {3}]  }
   0x1   :  { %15 = vsyncpa [#allocation12], 0 }
   0x2   :  { %16 = vsyncpa [#allocation15], 0 }
   0x3   :  { %17 = vsyncpa [#allocation10], 0 }
   0x4   :  { %18 = vsyncpa [#allocation19], 0 }
   0x5   :  { %19 = vsyncpa [#allocation22], 0  ;;  %s4375_s27 = smov [#allocation11]  }
   0x6   :  { %s41_s28 = sshll.u32 %s4375_s27, 4  ;;  %s42_s28 = int_to_ptr.vmem [resolvable:$true] %s41_s28 }
   0x7   :  { %s4191_s29 = scalar_lea.vmem %s42_s28, 1024  ;;  %p4196_p1 = scmp.lt.s32.totalorder %s42_s28, %s42_s28 }
   0x8   :  { %p4192_p0 = scmp.ne.s32.totalorder %s42_s28, %s4191_s29  ;;  %p4197_p2 = scmp.lt.s32.totalorder %s4191_s29, %s4191_s29 }
   0xa   :  { %p4198_p3 = por %p4197_p2, %p4196_p1 }
   0xc   :  { %p4199_p4 = pnand %p4198_p3, %p4192_p0 }
   0xe   :  { %4202 = shalt.err (!%p4199_p4)
}
   0xf   :  { %s4376_s30 = smov 128   ;;  %s4377_s9 = smov 8  }
  0x10   :  { %47 = dma.hbm_to_vmem [thread:$0]  %s6712_s1, 1024, %s42_s28, [#allocation12], %s4376_s30, %s4376_s30, %s4377_s9  }
  0x11   :  { %s4378_s12 = smov [#allocation14]   ;;  %s4379_s14 = smov [#allocation8]  }
  0x12   :  { %s65_s13 = sshll.u32 %s4378_s12, 4  ;;  %s25_s15 = sshll.u32 %s4379_s14, 4  ;;  %s66_s13 = int_to_ptr.vmem [resolvable:$true] %s65_s13  ;;  %s26_s15 = int_to_ptr.vmem [resolvable:$true] %s25_s15 }
  0x13   :  { %s4211_s16 = scalar_lea.vmem %s66_s13, 16384  ;;  %p4216_p6 = scmp.lt.s32.totalorder %s66_s13, %s66_s13 }
  0x14   :  { %p4212_p5 = scmp.ne.s32.totalorder %s66_s13, %s4211_s16  ;;  %p4217_p7 = scmp.lt.s32.totalorder %s4211_s16, %s4211_s16 }
  0x16   :  { %p4218_p8 = por %p4217_p7, %p4216_p6 }
  0x18   :  { %p4219_p9 = pnand %p4218_p8, %p4212_p5 }
  0x1a   :  { %4222 = shalt.err (!%p4219_p9)
}
  0x1b   :  { %s4380_s17 = smov 512   ;;  %s4381_s18 = smov 32  }
  0x1c   :  { %71 = dma.hbm_to_vmem [thread:$0]  %s6714_s3, 16384, %s66_s13, [#allocation15], %s4380_s17, %s4380_s17, %s4381_s18  }
  0x1d   :  { %s4231_s1 = scalar_lea.vmem %s26_s15, 1024  ;;  %p4236_p11 = scmp.lt.s32.totalorder %s26_s15, %s26_s15 }
  0x1e   :  { %p4232_p10 = scmp.ne.s32.totalorder %s26_s15, %s4231_s1  ;;  %p4237_p12 = scmp.lt.s32.totalorder %s4231_s1, %s4231_s1 }
  0x20   :  { %p4238_p13 = por %p4237_p12, %p4236_p11 }
  0x22   :  { %p4239_p0 = pnand %p4238_p13, %p4232_p10 }
  0x24   :  { %4242 = shalt.err (!%p4239_p0)
}
  0x25   :  { %31 = dma.hbm_to_vmem [thread:$0]  %s6711_s0, 1024, %s26_s15, [#allocation9], %s4376_s30, %s4376_s30, %s4377_s9  }
  0x26   :  { %s4382_s23 = smov [#allocation13]   ;;  %s4383_s25 = smov [#allocation16]  }
  0x27   :  { %s53_s24 = sshll.u32 %s4382_s23, 4  ;;  %s77_s3 = sshll.u32 %s4383_s25, 4  ;;  %s54_s24 = int_to_ptr.vmem [resolvable:$true] %s53_s24  ;;  %s78_s3 = int_to_ptr.vmem [resolvable:$true] %s77_s3 }
  0x28   :  { %s4251_s26 = scalar_lea.vmem %s54_s24, 4096  ;;  %p4256_p2 = scmp.lt.s32.totalorder %s54_s24, %s54_s24 }
  0x29   :  { %p4252_p1 = scmp.ne.s32.totalorder %s54_s24, %s4251_s26  ;;  %p4257_p3 = scmp.lt.s32.totalorder %s4251_s26, %s4251_s26 }
  0x2b   :  { %p4258_p4 = por %p4257_p3, %p4256_p2 }
  0x2d   :  { %p4259_p5 = pnand %p4258_p4, %p4252_p1 }
  0x2f   :  { %4262 = shalt.err (!%p4259_p5)
}
  0x30   :  { %59 = dma.hbm_to_vmem [thread:$0]  %s6713_s2, 4096, %s54_s24, [#allocation12], %s4380_s17, %s4380_s17, %s4381_s18  }
  0x31   :  { %s4271_s29 = scalar_lea.vmem %s78_s3, 128  ;;  %p4276_p7 = scmp.lt.s32.totalorder %s78_s3, %s78_s3 }
  0x32   :  { %p4272_p6 = scmp.ne.s32.totalorder %s78_s3, %s4271_s29  ;;  %p4277_p8 = scmp.lt.s32.totalorder %s4271_s29, %s4271_s29 }
  0x34   :  { %p4278_p9 = por %p4277_p8, %p4276_p7 }
  0x36   :  { %p4279_p10 = pnand %p4278_p9, %p4272_p6 }
  0x38   :  { %4282 = shalt.err (!%p4279_p10)
}
  0x39   :  { %s4384_s0 = smov 64   ;;  %s4385_s10 = smov 4  }
  0x3a   :  { %83 = dma.hbm_to_vmem [thread:$0]  %s6715_s4, 128, %s78_s3, [#allocation15], %s4384_s0, %s4384_s0, %s4385_s10  }
  0x3b   :  { %4363 = dma.done.wait [#allocation9], 1024  }
  0x3c   :  { %4364 = vsyncadd [#allocation9], 4294966272 }
  0x3d   :  { %4365 = dma.done.wait [#allocation12], 5120  }
  0x3e   :  { %4366 = vsyncadd [#allocation12], 4294962176 }
  0x3f   :  { %4367 = dma.done.wait [#allocation15], 16512  }
  0x40   :  { %4368 = vsyncadd [#allocation15], 4294950784  ;;  %v6722_v0 = vmov 0.0   ;;  %v140_v1 = vld [vmem:[#allocation13 + $0x68] sm:$0xff]  ;;  %v142_v2 = vld [vmem:[#allocation13 + $0x78] sm:$0xff]  ;;  %vm165_vm0 = vcmask 261120  }
  0x41   :  { %254 = vmatprep.mubr.f32.mxu0 %v6722_v0  ;;  %367 = vmatprep.mubr.f32.mxu1 %v6722_v0  ;;  %v139_v3 = vld [vmem:[#allocation13 + $0x60] sm:$0xff]  ;;  %v141_v4 = vld [vmem:[#allocation13 + $0x70] sm:$0xff]  ;;  %v136_v5 = vld [vmem:[#allocation13 + $0x48] sm:$0xff]  ;;  %s4387_s2 = smov [#allocation17]  }
  0x42   :  { %214 = vmatprep.subr.mxu0 %v140_v1  ;;  %327 = vmatprep.subr.mxu1 %v142_v2  ;;  %v138_v6 = vld [vmem:[#allocation13 + $0x58] sm:$0xff]  ;;  %v135_v7 = vld [vmem:[#allocation13 + $0x40] sm:$0xff]  ;;  %v137_v8 = vld [vmem:[#allocation13 + $0x50] sm:$0xff]  ;;  %s3650_s4 = sshll.u32 %s4387_s2, 4  ;;  %s3651_s4 = int_to_ptr.vmem [resolvable:$true] %s3650_s4 }
  0x43   :  { %215 = vmatpush1.msra.mxu0 %v139_v3  ;;  %328 = vmatpush1.msra.mxu1 %v141_v4  ;;  %v132_v9 = vld [vmem:[#allocation13 + $0x28] sm:$0xff]  ;;  %v134_v10 = vld [vmem:[#allocation13 + $0x38] sm:$0xff]  ;;  %v131_v11 = vld [vmem:[#allocation13 + $0x20] sm:$0xff]  ;;  %s4283_s13 = scalar_lea.vmem %s3651_s4, 1024  ;;  %p4288_p12 = scmp.lt.s32.totalorder %s3651_s4, %s3651_s4 }
  0x44   :  { %216 = vmatprep.subr.mxu0 %v136_v5  ;;  %329 = vmatprep.subr.mxu1 %v138_v6  ;;  %v133_v12 = vld [vmem:[#allocation13 + $0x30] sm:$0xff]  ;;  %v128_v13 = vld [vmem:[#allocation13 + $0x8] sm:$0xff]  ;;  %v130_v14 = vld [vmem:[#allocation13 + $0x18] sm:$0xff]  ;;  %p4284_p11 = scmp.ne.s32.totalorder %s3651_s4, %s4283_s13  ;;  %p4289_p13 = scmp.lt.s32.totalorder %s4283_s13, %s4283_s13 }
  0x45   :  { %217 = vmatpush1.msra.mxu0 %v135_v7  ;;  %330 = vmatpush1.msra.mxu1 %v137_v8  ;;  %v127_v15 = vld [vmem:[#allocation13] sm:$0xff]  ;;  %v129_v16 = vld [vmem:[#allocation13 + $0x10] sm:$0xff]  ;;  %v462_v18 = vld [vmem:[#allocation13 + $0xe8] sm:$0xff] }
  0x46   :  { %218 = vmatprep.subr.mxu0 %v132_v9  ;;  %331 = vmatprep.subr.mxu1 %v134_v10  ;;  %v111_v17 = vld [vmem:[#allocation8] sm:$0xff]  ;;  %v458_v20 = vld [vmem:[#allocation13 + $0xc8] sm:$0xff]  ;;  %v464_v21 = vld [vmem:[#allocation13 + $0xf8] sm:$0xff]  ;;  %p4290_p0 = por %p4289_p13, %p4288_p12 }
  0x47   :  { %219 = vmatpush1.msra.mxu0 %v131_v11  ;;  %332 = vmatpush1.msra.mxu1 %v133_v12  ;;  %v461_v19 = vld [vmem:[#allocation13 + $0xe0] sm:$0xff]  ;;  %v112_v22 = vld [vmem:[#allocation8 + $0x8] sm:$0xff]  ;;  %v463_v24 = vld [vmem:[#allocation13 + $0xf0] sm:$0xff] }
  0x48   :  { %220 = vmatprep.subr.mxu0 %v128_v13  ;;  %333 = vmatprep.subr.mxu1 %v130_v14  ;;  %v457_v23 = vld [vmem:[#allocation13 + $0xc0] sm:$0xff]  ;;  %v454_v25 = vld [vmem:[#allocation13 + $0xa8] sm:$0xff]  ;;  %v460_v26 = vld [vmem:[#allocation13 + $0xd8] sm:$0xff]  ;;  %p4291_p1 = pnand %p4290_p0, %p4284_p11 }
  0x49   :  { %221 = vmatpush1.msra.mxu0 %v127_v15  ;;  %334 = vmatpush1.msra.mxu1 %v129_v16  ;;  %v113_v27 = vld [vmem:[#allocation8 + $0x10] sm:$0xff]  ;;  %v453_v28 = vld [vmem:[#allocation13 + $0xa0] sm:$0xff]  ;;  %v450_v30 = vld [vmem:[#allocation13 + $0x88] sm:$0xff] }
  0x4a   :  { %3719 = vmatmul.mubr.msk.f32.vlgmr.msra.gmra.mxu0 %vm165_vm0, %v111_v17  ;;  %3727 = vmatmul.mubr.msk.f32.vlgmr.msra.gmra.mxu1 %vm165_vm0, %v111_v17  ;;  %v459_v29 = vld [vmem:[#allocation13 + $0xd0] sm:$0xff]  ;;  %v456_v31 = vld [vmem:[#allocation13 + $0xb8] sm:$0xff]  ;;  %v449_v33 = vld [vmem:[#allocation13 + $0x80] sm:$0xff] }
  0x4b   :  { %536 = vmatprep.subr.mxu0 %v462_v18  ;;  %260 = vmatprep.mubr.f32.mxu0 %v6722_v0  ;;  %v114_v32 = vld [vmem:[#allocation8 + $0x18] sm:$0xff]  ;;  %v455_v34 = vld [vmem:[#allocation13 + $0xb0] sm:$0xff]  ;;  %v4473_v36 = vld [vmem:[#allocation14 + $0x1e8] sm:$0xff] }
  0x4c   :  { %537 = vmatpush1.msra.mxu0 %v461_v19  ;;  %373 = vmatprep.mubr.f32.mxu1 %v6722_v0  ;;  %v452_v35 = vld [vmem:[#allocation13 + $0x98] sm:$0xff]  ;;  %v115_v37 = vld [vmem:[#allocation8 + $0x20] sm:$0xff]  ;;  %v451_v38 = vld [vmem:[#allocation13 + $0x90] sm:$0xff] }
  0x4d   :  { %538 = vmatprep.subr.mxu0 %v458_v20  ;;  %649 = vmatprep.subr.mxu1 %v464_v21  ;;  %v4480_v39 = vld [vmem:[#allocation14 + $0x1f8] sm:$0xff]  ;;  %v116_v40 = vld [vmem:[#allocation8 + $0x28] sm:$0xff]  ;;  %v117_v41 = vld [vmem:[#allocation8 + $0x30] sm:$0xff] }
  0x4e   :  { %3720 = vmatmul.mubr.msk.f32.gmra.mxu0 %vm165_vm0, %v112_v22  ;;  %3728 = vmatmul.mubr.msk.f32.gmra.mxu1 %vm165_vm0, %v112_v22  ;;  %v118_v42 = vld [vmem:[#allocation8 + $0x38] sm:$0xff]  ;;  %v119_v43 = vld [vmem:[#allocation11] sm:$0xff]  ;;  %v4499_v45 = vld [vmem:[#allocation14 + $0x1f0] sm:$0xff] }
  0x4f   :  { %266 = vmatprep.mubr.f32.mxu0 %v6722_v0  ;;  %379 = vmatprep.mubr.f32.mxu1 %v6722_v0  ;;  %v4497_v44 = vld [vmem:[#allocation14 + $0x1e0] sm:$0xff]  ;;  %v4501_v46 = vld [vmem:[#allocation14 + $0x1c8] sm:$0xff]  ;;  %v4503_v47 = vld [vmem:[#allocation14 + $0x1d8] sm:$0xff] }
  0x50   :  { %539 = vmatpush1.msra.mxu0 %v457_v23  ;;  %650 = vmatpush1.msra.mxu1 %v463_v24  ;;  %v4507_v48 = vld [vmem:[#allocation14 + $0x1c0] sm:$0xff]  ;;  %v4509_v49 = vld [vmem:[#allocation14 + $0x1d0] sm:$0xff]  ;;  %v4515_v50 = vld [vmem:[#allocation14 + $0x1a8] sm:$0xff] }
  0x51   :  { %540 = vmatprep.subr.mxu0 %v454_v25  ;;  %651 = vmatprep.subr.mxu1 %v460_v26  ;;  %v4517_v51 = vld [vmem:[#allocation14 + $0x1b8] sm:$0xff]  ;;  %v120_v52 = vld [vmem:[#allocation11 + $0x8] sm:$0xff]  ;;  %v4523_v53 = vld [vmem:[#allocation14 + $0x1a0] sm:$0xff] }
  0x52   :  { %3721 = vmatmul.mubr.msk.f32.gmra.mxu0 %vm165_vm0, %v113_v27  ;;  %3729 = vmatmul.mubr.msk.f32.gmra.mxu1 %vm165_vm0, %v113_v27  ;;  %v4525_v54 = vld [vmem:[#allocation14 + $0x1b0] sm:$0xff]  ;;  %v4529_v55 = vld [vmem:[#allocation14 + $0x188] sm:$0xff]  ;;  %v4531_v56 = vld [vmem:[#allocation14 + $0x198] sm:$0xff] }
  0x53   :  { %272 = vmatprep.mubr.f32.mxu0 %v6722_v0  ;;  %385 = vmatprep.mubr.f32.mxu1 %v6722_v0  ;;  %v4535_v57 = vld [vmem:[#allocation14 + $0x180] sm:$0xff]  ;;  %v4537_v58 = vld [vmem:[#allocation14 + $0x190] sm:$0xff]  ;;  %v4543_v59 = vld [vmem:[#allocation14 + $0x168] sm:$0xff] }
  0x54   :  { %541 = vmatpush1.msra.mxu0 %v453_v28  ;;  %652 = vmatpush1.msra.mxu1 %v459_v29  ;;  %v4545_v60 = vld [vmem:[#allocation14 + $0x178] sm:$0xff]  ;;  %v121_v61 = vld [vmem:[#allocation11 + $0x10] sm:$0xff]  ;;  %v4551_v62 = vld [vmem:[#allocation14 + $0x160] sm:$0xff] }
  0x55   :  { %542 = vmatprep.subr.mxu0 %v450_v30  ;;  %653 = vmatprep.subr.mxu1 %v456_v31  ;;  %v4553_v63 = vld [vmem:[#allocation14 + $0x170] sm:$0xff]  ;;  %v4557_v1 = vld [vmem:[#allocation14 + $0x148] sm:$0xff]  ;;  %v4559_v2 = vld [vmem:[#allocation14 + $0x158] sm:$0xff] }
  0x56   :  { %3722 = vmatmul.mubr.msk.f32.gmra.mxu0 %vm165_vm0, %v114_v32  ;;  %3730 = vmatmul.mubr.msk.f32.gmra.mxu1 %vm165_vm0, %v114_v32  ;;  %v4563_v3 = vld [vmem:[#allocation14 + $0x140] sm:$0xff]  ;;  %v4565_v4 = vld [vmem:[#allocation14 + $0x150] sm:$0xff]  ;;  %v4571_v5 = vld [vmem:[#allocation14 + $0x128] sm:$0xff] }
  0x57   :  { %278 = vmatprep.mubr.f32.mxu0 %v6722_v0  ;;  %391 = vmatprep.mubr.f32.mxu1 %v6722_v0  ;;  %v4573_v6 = vld [vmem:[#allocation14 + $0x138] sm:$0xff]  ;;  %v4579_v8 = vld [vmem:[#allocation14 + $0x120] sm:$0xff]  ;;  %v4581_v9 = vld [vmem:[#allocation14 + $0x130] sm:$0xff] }
  0x58   :  { %543 = vmatpush1.msra.mxu0 %v449_v33  ;;  %654 = vmatpush1.msra.mxu1 %v455_v34  ;;  %v122_v7 = vld [vmem:[#allocation11 + $0x18] sm:$0xff]  ;;  %v4585_v10 = vld [vmem:[#allocation14 + $0x108] sm:$0xff]  ;;  %v4591_v12 = vld [vmem:[#allocation14 + $0x100] sm:$0xff] }
  0x59   :  { %655 = vmatprep.subr.mxu1 %v452_v35  ;;  %907 = vmatprep.subr.mxu0 %v4473_v36  ;;  %v4587_v11 = vld [vmem:[#allocation14 + $0x118] sm:$0xff]  ;;  %v4593_v13 = vld [vmem:[#allocation14 + $0x110] sm:$0xff]  ;;  %v4599_v14 = vld [vmem:[#allocation14 + $0xe8] sm:$0xff] }
  0x5a   :  { %3723 = vmatmul.mubr.msk.f32.gmra.mxu0 %vm165_vm0, %v115_v37  ;;  %3731 = vmatmul.mubr.msk.f32.gmra.mxu1 %vm165_vm0, %v115_v37  ;;  %v4601_v15 = vld [vmem:[#allocation14 + $0xf8] sm:$0xff]  ;;  %v123_v16 = vld [vmem:[#allocation11 + $0x20] sm:$0xff]  ;;  %v4609_v18 = vld [vmem:[#allocation14 + $0xf0] sm:$0xff] }
  0x5b   :  { %284 = vmatprep.mubr.f32.mxu0 %v6722_v0  ;;  %397 = vmatprep.mubr.f32.mxu1 %v6722_v0  ;;  %v4607_v17 = vld [vmem:[#allocation14 + $0xe0] sm:$0xff]  ;;  %v4613_v19 = vld [vmem:[#allocation14 + $0xc8] sm:$0xff]  ;;  %v4615_v20 = vld [vmem:[#allocation14 + $0xd8] sm:$0xff] }
  0x5c   :  { %656 = vmatpush1.msra.mxu1 %v451_v38  ;;  %v4619_v21 = vld [vmem:[#allocation14 + $0xc0] sm:$0xff]  ;;  %v4621_v22 = vld [vmem:[#allocation14 + $0xd0] sm:$0xff]  ;;  %v4627_v23 = vld [vmem:[#allocation14 + $0xa8] sm:$0xff] }
  0x5d   :  { %978 = vmatprep.subr.mxu1 %v4480_v39  ;;  %v4629_v24 = vld [vmem:[#allocation14 + $0xb8] sm:$0xff]  ;;  %v124_v25 = vld [vmem:[#allocation11 + $0x28] sm:$0xff]  ;;  %v4635_v26 = vld [vmem:[#allocation14 + $0xa0] sm:$0xff] }
  0x5e   :  { %3724 = vmatmul.mubr.msk.f32.gmra.mxu0 %vm165_vm0, %v116_v40  ;;  %3732 = vmatmul.mubr.msk.f32.gmra.mxu1 %vm165_vm0, %v116_v40  ;;  %v4637_v27 = vld [vmem:[#allocation14 + $0xb0] sm:$0xff]  ;;  %v4641_v28 = vld [vmem:[#allocation14 + $0x88] sm:$0xff]  ;;  %v4643_v29 = vld [vmem:[#allocation14 + $0x98] sm:$0xff] }
  0x5f   :  { %290 = vmatprep.mubr.f32.mxu0 %v6722_v0  ;;  %403 = vmatprep.mubr.f32.mxu1 %v6722_v0  ;;  %v4647_v30 = vld [vmem:[#allocation14 + $0x80] sm:$0xff]  ;;  %v4649_v31 = vld [vmem:[#allocation14 + $0x90] sm:$0xff]  ;;  %v4655_v32 = vld [vmem:[#allocation14 + $0x68] sm:$0xff] }
  0x60   :  { %v4657_v33 = vld [vmem:[#allocation14 + $0x78] sm:$0xff]  ;;  %v125_v34 = vld [vmem:[#allocation11 + $0x30] sm:$0xff]  ;;  %v4663_v35 = vld [vmem:[#allocation14 + $0x60] sm:$0xff] }
  0x61   :  { %v4665_v37 = vld [vmem:[#allocation14 + $0x70] sm:$0xff]  ;;  %v4669_v38 = vld [vmem:[#allocation14 + $0x48] sm:$0xff]  ;;  %v4671_v40 = vld [vmem:[#allocation14 + $0x58] sm:$0xff] }
  0x62   :  { %3725 = vmatmul.mubr.msk.f32.gmra.mxu0 %vm165_vm0, %v117_v41  ;;  %3733 = vmatmul.mubr.msk.f32.gmra.mxu1 %vm165_vm0, %v117_v41  ;;  %7102 = vst [vmem:[#allocation29_spill] sm:$0xff] %v4669_v38  ;;  %7103 = vst [vmem:[#allocation30_spill] sm:$0xff] %v4671_v40  ;;  %v4675_v41 = vld [vmem:[#allocation14 + $0x40] sm:$0xff] }
  0x63   :  { %296 = vmatprep.mubr.f32.mxu0 %v6722_v0  ;;  %409 = vmatprep.mubr.f32.mxu1 %v6722_v0  ;;  %7104 = vst [vmem:[#allocation31_spill] sm:$0xff] %v4675_v41 }
  0x66   :  { %3726 = vmatmul.mubr.msk.f32.gmra.mxu0 %vm165_vm0, %v118_v42  ;;  %3734 = vmatmul.mubr.msk.f32.gmra.mxu1 %vm165_vm0, %v118_v42  ;;  %v4677_v42 = vld [vmem:[#allocation14 + $0x50] sm:$0xff] }
  0x67   :  { %576 = vmatprep.mubr.f32.mxu0 %v6722_v0  ;;  %689 = vmatprep.mubr.f32.mxu1 %v6722_v0  ;;  %7105 = vst [vmem:[#allocation32_spill] sm:$0xff] %v4677_v42 }
  0x6a   :  { %3735 = vmatmul.mubr.msk.f32.vlgmr.msra.gmra.mxu0 %vm165_vm0, %v119_v43  ;;  %3743 = vmatmul.mubr.msk.f32.vlgmr.msra.gmra.mxu1 %vm165_vm0, %v119_v43  ;;  %v4683_v43 = vld [vmem:[#allocation14 + $0x28] sm:$0xff] }
  0x6b   :  { %908 = vmatpush1.msra.mxu0 %v4497_v44  ;;  %979 = vmatpush1.msra.mxu1 %v4499_v45  ;;  %7106 = vst [vmem:[#allocation33_spill] sm:$0xff] %v4683_v43 }
  0x6c   :  { %909 = vmatprep.subr.mxu0 %v4501_v46  ;;  %980 = vmatprep.subr.mxu1 %v4503_v47 }
  0x6d   :  { %910 = vmatpush1.msra.mxu0 %v4507_v48  ;;  %981 = vmatpush1.msra.mxu1 %v4509_v49 }
  0x6e   :  { %582 = vmatprep.mubr.f32.mxu0 %v6722_v0  ;;  %695 = vmatprep.mubr.f32.mxu1 %v6722_v0 }
  0x6f   :  { %911 = vmatprep.subr.mxu0 %v4515_v50  ;;  %982 = vmatprep.subr.mxu1 %v4517_v51 }
  0x70   :  { %3736 = vmatmul.mubr.msk.f32.gmra.mxu0 %vm165_vm0, %v120_v52  ;;  %3744 = vmatmul.mubr.msk.f32.gmra.mxu1 %vm165_vm0, %v120_v52  ;;  %v4685_v52 = vld [vmem:[#allocation14 + $0x38] sm:$0xff] }
  0x71   :  { %912 = vmatpush1.msra.mxu0 %v4523_v53  ;;  %983 = vmatpush1.msra.mxu1 %v4525_v54  ;;  %7107 = vst [vmem:[#allocation34_spill] sm:$0xff] %v4685_v52 }
  0x72   :  { %913 = vmatprep.subr.mxu0 %v4529_v55  ;;  %984 = vmatprep.subr.mxu1 %v4531_v56 }
  0x73   :  { %914 = vmatpush1.msra.mxu0 %v4535_v57  ;;  %985 = vmatpush1.msra.mxu1 %v4537_v58 }
  0x74   :  { %588 = vmatprep.mubr.f32.mxu0 %v6722_v0  ;;  %701 = vmatprep.mubr.f32.mxu1 %v6722_v0 }
  0x75   :  { %915 = vmatprep.subr.mxu0 %v4543_v59  ;;  %986 = vmatprep.subr.mxu1 %v4545_v60 }
  0x76   :  { %3737 = vmatmul.mubr.msk.f32.gmra.mxu0 %vm165_vm0, %v121_v61  ;;  %3745 = vmatmul.mubr.msk.f32.gmra.mxu1 %vm165_vm0, %v121_v61  ;;  %v126_v61 = vld [vmem:[#allocation11 + $0x38] sm:$0xff] }
  0x77   :  { %916 = vmatpush1.msra.mxu0 %v4551_v62  ;;  %987 = vmatpush1.msra.mxu1 %v4553_v63 }
  0x78   :  { %917 = vmatprep.subr.mxu0 %v4557_v1  ;;  %988 = vmatprep.subr.mxu1 %v4559_v2 }
  0x79   :  { %918 = vmatpush1.msra.mxu0 %v4563_v3  ;;  %989 = vmatpush1.msra.mxu1 %v4565_v4 }
  0x7a   :  { %594 = vmatprep.mubr.f32.mxu0 %v6722_v0  ;;  %707 = vmatprep.mubr.f32.mxu1 %v6722_v0 }
  0x7b   :  { %919 = vmatprep.subr.mxu0 %v4571_v5  ;;  %990 = vmatprep.subr.mxu1 %v4573_v6 }
  0x7c   :  { %3738 = vmatmul.mubr.msk.f32.gmra.mxu0 %vm165_vm0, %v122_v7  ;;  %3746 = vmatmul.mubr.msk.f32.gmra.mxu1 %vm165_vm0, %v122_v7  ;;  %v4691_v7 = vld [vmem:[#allocation14 + $0x20] sm:$0xff] }
  0x7d   :  { %920 = vmatpush1.msra.mxu0 %v4579_v8  ;;  %991 = vmatpush1.msra.mxu1 %v4581_v9  ;;  %7108 = vst [vmem:[#allocation35_spill] sm:$0xff] %v4691_v7 }
  0x7e   :  { %921 = vmatprep.subr.mxu0 %v4585_v10  ;;  %992 = vmatprep.subr.mxu1 %v4587_v11 }
  0x7f   :  { %922 = vmatpush1.msra.mxu0 %v4591_v12  ;;  %993 = vmatpush1.msra.mxu1 %v4593_v13 }
  0x80   :  { %600 = vmatprep.mubr.f32.mxu0 %v6722_v0  ;;  %713 = vmatprep.mubr.f32.mxu1 %v6722_v0 }
  0x81   :  { %923 = vmatprep.subr.mxu0 %v4599_v14  ;;  %994 = vmatprep.subr.mxu1 %v4601_v15 }
  0x82   :  { %3739 = vmatmul.mubr.msk.f32.gmra.mxu0 %vm165_vm0, %v123_v16  ;;  %3747 = vmatmul.mubr.msk.f32.gmra.mxu1 %vm165_vm0, %v123_v16  ;;  %v4693_v16 = vld [vmem:[#allocation14 + $0x30] sm:$0xff] }
  0x83   :  { %924 = vmatpush1.msra.mxu0 %v4607_v17  ;;  %995 = vmatpush1.msra.mxu1 %v4609_v18  ;;  %7109 = vst [vmem:[#allocation36_spill] sm:$0xff] %v4693_v16 }
  0x84   :  { %925 = vmatprep.subr.mxu0 %v4613_v19  ;;  %996 = vmatprep.subr.mxu1 %v4615_v20 }
  0x85   :  { %926 = vmatpush1.msra.mxu0 %v4619_v21  ;;  %997 = vmatpush1.msra.mxu1 %v4621_v22 }
  0x86   :  { %606 = vmatprep.mubr.f32.mxu0 %v6722_v0  ;;  %719 = vmatprep.mubr.f32.mxu1 %v6722_v0 }
  0x87   :  { %927 = vmatprep.subr.mxu0 %v4627_v23  ;;  %998 = vmatprep.subr.mxu1 %v4629_v24 }
  0x88   :  { %3740 = vmatmul.mubr.msk.f32.gmra.mxu0 %vm165_vm0, %v124_v25  ;;  %3748 = vmatmul.mubr.msk.f32.gmra.mxu1 %vm165_vm0, %v124_v25  ;;  %v4697_v25 = vld [vmem:[#allocation14 + $0x8] sm:$0xff] }
  0x89   :  { %928 = vmatpush1.msra.mxu0 %v4635_v26  ;;  %999 = vmatpush1.msra.mxu1 %v4637_v27  ;;  %7110 = vst [vmem:[#allocation37_spill] sm:$0xff] %v4697_v25 }
  0x8a   :  { %929 = vmatprep.subr.mxu0 %v4641_v28  ;;  %1000 = vmatprep.subr.mxu1 %v4643_v29 }
  0x8b   :  { %930 = vmatpush1.msra.mxu0 %v4647_v30  ;;  %1001 = vmatpush1.msra.mxu1 %v4649_v31 }
  0x8c   :  { %612 = vmatprep.mubr.f32.mxu0 %v6722_v0  ;;  %725 = vmatprep.mubr.f32.mxu1 %v6722_v0 }
  0x8d   :  { %931 = vmatprep.subr.mxu0 %v4655_v32  ;;  %1002 = vmatprep.subr.mxu1 %v4657_v33 }
  0x8e   :  { %3741 = vmatmul.mubr.msk.f32.gmra.mxu0 %vm165_vm0, %v125_v34  ;;  %3749 = vmatmul.mubr.msk.f32.gmra.mxu1 %vm165_vm0, %v125_v34  ;;  %v4699_v34 = vld [vmem:[#allocation14 + $0x18] sm:$0xff] }
  0x8f   :  { %932 = vmatpush1.msra.mxu0 %v4663_v35  ;;  %1003 = vmatpush1.msra.mxu1 %v4665_v37  ;;  %7111 = vst [vmem:[#allocation38_spill] sm:$0xff] %v4699_v34 }
  0x90   :  { %933 = vmatprep.subr.mxu0 %v4669_v38  ;;  %1004 = vmatprep.subr.mxu1 %v4671_v40  ;;  %v4745_v40 = vld [vmem:[#allocation14 + $0x3b0] sm:$0xff]  ;;  %v4749_v38 = vld [vmem:[#allocation14 + $0x388] sm:$0xff] }
  0x91   :  { %934 = vmatpush1.msra.mxu0 %v4675_v41  ;;  %1005 = vmatpush1.msra.mxu1 %v4677_v42  ;;  %v4703_v42 = vld [vmem:[#allocation14] sm:$0xff]  ;;  %v4705_v41 = vld [vmem:[#allocation14 + $0x10] sm:$0xff]  ;;  %7126 = vst [vmem:[#allocation52_spill] sm:$0xff] %v4745_v40  ;;  %7127 = vst [vmem:[#allocation53_spill] sm:$0xff] %v4749_v38 }
  0x92   :  { %618 = vmatprep.mubr.f32.mxu0 %v6722_v0  ;;  %731 = vmatprep.mubr.f32.mxu1 %v6722_v0  ;;  %7112 = vst [vmem:[#allocation39_spill] sm:$0xff] %v4703_v42  ;;  %7113 = vst [vmem:[#allocation40_spill] sm:$0xff] %v4705_v41  ;;  %v4711_v0 = vld [vmem:[#allocation14 + $0x3e8] sm:$0xff] }
  0x93   :  { %935 = vmatprep.subr.mxu0 %v4683_v43  ;;  %1006 = vmatprep.subr.mxu1 %v4685_v52  ;;  %7114 = vst [vmem:[#allocation41_spill] sm:$0xff] %v4711_v0  ;;  %v4713_v52 = vld [vmem:[#allocation14 + $0x3f8] sm:$0xff]  ;;  %v4719_v43 = vld [vmem:[#allocation14 + $0x3e0] sm:$0xff] }
  0x94   :  { %3742 = vmatmul.mubr.msk.f32.gmra.mxu0 %vm165_vm0, %v126_v61  ;;  %3750 = vmatmul.mubr.msk.f32.gmra.mxu1 %vm165_vm0, %v126_v61  ;;  %7115 = vst [vmem:[#allocation42_spill] sm:$0xff] %v4713_v52  ;;  %v7116_v61 = vmov 0.0   ;;  %7117 = vst [vmem:[#allocation43_spill] sm:$0xff] %v4719_v43 }
  0x95   :  { %936 = vmatpush1.msra.mxu0 %v4691_v7  ;;  %1007 = vmatpush1.msra.mxu1 %v4693_v16  ;;  %v4721_v7 = vld [vmem:[#allocation14 + $0x3f0] sm:$0xff]  ;;  %v4737_v16 = vld [vmem:[#allocation14 + $0x3a8] sm:$0xff] }
  0x96   :  { %937 = vmatprep.subr.mxu0 %v4697_v25  ;;  %1008 = vmatprep.subr.mxu1 %v4699_v34  ;;  %7118 = vst [vmem:[#allocation44_spill] sm:$0xff] %v4721_v7  ;;  %v4725_v34 = vld [vmem:[#allocation14 + $0x3c8] sm:$0xff]  ;;  %v4727_v25 = vld [vmem:[#allocation14 + $0x3d8] sm:$0xff]  ;;  %7123 = vst [vmem:[#allocation49_spill] sm:$0xff] %v4737_v16 }
  0x97   :  { %938 = vmatpush1.msra.mxu0 %v4703_v42  ;;  %1009 = vmatpush1.msra.mxu1 %v4705_v41  ;;  %7119 = vst [vmem:[#allocation45_spill] sm:$0xff] %v4725_v34  ;;  %7120 = vst [vmem:[#allocation46_spill] sm:$0xff] %v4727_v25  ;;  %v4731_v41 = vld [vmem:[#allocation14 + $0x3c0] sm:$0xff]  ;;  %v4733_v42 = vld [vmem:[#allocation14 + $0x3d0] sm:$0xff] }
  0x98   :  { %971 = vmatprep.mubr.f32.mxu0 %v7116_v61  ;;  %1042 = vmatprep.mubr.f32.mxu1 %v7116_v61  ;;  %7121 = vst [vmem:[#allocation47_spill] sm:$0xff] %v4731_v41  ;;  %7122 = vst [vmem:[#allocation48_spill] sm:$0xff] %v4733_v42 }
  0x99   :  { %1058 = vmatprep.subr.mxu0 %v4711_v0  ;;  %1129 = vmatprep.subr.mxu1 %v4713_v52  ;;  %v4739_v0 = vld [vmem:[#allocation14 + $0x3b8] sm:$0xff]  ;;  %v4743_v52 = vld [vmem:[#allocation14 + $0x3a0] sm:$0xff] }
  0x9a   :  { %972 = vmatmul.mubr.f32.vlgmr.msra.gmra.mxu0 %v7116_v61  ;;  %1043 = vmatmul.mubr.f32.vlgmr.msra.gmra.mxu1 %v7116_v61  ;;  %7124 = vst [vmem:[#allocation50_spill] sm:$0xff] %v4739_v0  ;;  %7125 = vst [vmem:[#allocation51_spill] sm:$0xff] %v4743_v52 }
  0x9b   :  { %1059 = vmatpush1.msra.mxu0 %v4719_v43  ;;  %1130 = vmatpush1.msra.mxu1 %v4721_v7  ;;  %v4751_v43 = vld [vmem:[#allocation14 + $0x398] sm:$0xff]  ;;  %v4755_v7 = vld [vmem:[#allocation14 + $0x380] sm:$0xff] }
  0x9c   :  { %1060 = vmatprep.subr.mxu0 %v4725_v34  ;;  %1131 = vmatprep.subr.mxu1 %v4727_v25  ;;  %7128 = vst [vmem:[#allocation54_spill] sm:$0xff] %v4751_v43  ;;  %7129 = vst [vmem:[#allocation55_spill] sm:$0xff] %v4755_v7  ;;  %v4757_v34 = vld [vmem:[#allocation14 + $0x390] sm:$0xff]  ;;  %v4761_v25 = vld [vmem:[#allocation14 + $0x368] sm:$0xff] }
  0x9d   :  { %1061 = vmatpush1.msra.mxu0 %v4731_v41  ;;  %1132 = vmatpush1.msra.mxu1 %v4733_v42  ;;  %7130 = vst [vmem:[#allocation56_spill] sm:$0xff] %v4757_v34  ;;  %7131 = vst [vmem:[#allocation57_spill] sm:$0xff] %v4761_v25  ;;  %v4763_v41 = vld [vmem:[#allocation14 + $0x378] sm:$0xff]  ;;  %v4767_v42 = vld [vmem:[#allocation14 + $0x360] sm:$0xff] }
  0x9e   :  { %1062 = vmatprep.subr.mxu0 %v4737_v16  ;;  %1133 = vmatprep.subr.mxu1 %v4739_v0  ;;  %7132 = vst [vmem:[#allocation58_spill] sm:$0xff] %v4763_v41  ;;  %7133 = vst [vmem:[#allocation59_spill] sm:$0xff] %v4767_v42  ;;  %v4769_v16 = vld [vmem:[#allocation14 + $0x370] sm:$0xff]  ;;  %v4773_v0 = vld [vmem:[#allocation14 + $0x348] sm:$0xff] }
  0x9f   :  { %1063 = vmatpush1.msra.mxu0 %v4743_v52  ;;  %1134 = vmatpush1.msra.mxu1 %v4745_v40  ;;  %7134 = vst [vmem:[#allocation60_spill] sm:$0xff] %v4769_v16  ;;  %7135 = vst [vmem:[#allocation61_spill] sm:$0xff] %v4773_v0  ;;  %v4775_v52 = vld [vmem:[#allocation14 + $0x358] sm:$0xff]  ;;  %v4779_v40 = vld [vmem:[#allocation14 + $0x340] sm:$0xff] }
  0xa0   :  { %1064 = vmatprep.subr.mxu0 %v4749_v38  ;;  %1135 = vmatprep.subr.mxu1 %v4751_v43  ;;  %7136 = vst [vmem:[#allocation62_spill] sm:$0xff] %v4775_v52  ;;  %7137 = vst [vmem:[#allocation63_spill] sm:$0xff] %v4779_v40  ;;  %v4781_v38 = vld [vmem:[#allocation14 + $0x350] sm:$0xff]  ;;  %v4785_v43 = vld [vmem:[#allocation14 + $0x328] sm:$0xff] }
  0xa1   :  { %1065 = vmatpush1.msra.mxu0 %v4755_v7  ;;  %1136 = vmatpush1.msra.mxu1 %v4757_v34  ;;  %7138 = vst [vmem:[#allocation64_spill] sm:$0xff] %v4781_v38  ;;  %7139 = vst [vmem:[#allocation65_spill] sm:$0xff] %v4785_v43  ;;  %v4787_v7 = vld [vmem:[#allocation14 + $0x338] sm:$0xff]  ;;  %v4791_v34 = vld [vmem:[#allocation14 + $0x320] sm:$0xff] }
  0xa2   :  { %1066 = vmatprep.subr.mxu0 %v4761_v25  ;;  %1137 = vmatprep.subr.mxu1 %v4763_v41  ;;  %7140 = vst [vmem:[#allocation66_spill] sm:$0xff] %v4787_v7  ;;  %7141 = vst [vmem:[#allocation67_spill] sm:$0xff] %v4791_v34  ;;  %v4793_v25 = vld [vmem:[#allocation14 + $0x330] sm:$0xff]  ;;  %v4797_v41 = vld [vmem:[#allocation14 + $0x308] sm:$0xff] }
  0xa3   :  { %1067 = vmatpush1.msra.mxu0 %v4767_v42  ;;  %1138 = vmatpush1.msra.mxu1 %v4769_v16  ;;  %7142 = vst [vmem:[#allocation68_spill] sm:$0xff] %v4793_v25  ;;  %7143 = vst [vmem:[#allocation69_spill] sm:$0xff] %v4797_v41  ;;  %v4799_v42 = vld [vmem:[#allocation14 + $0x318] sm:$0xff]  ;;  %v4803_v16 = vld [vmem:[#allocation14 + $0x300] sm:$0xff] }
  0xa4   :  { %1068 = vmatprep.subr.mxu0 %v4773_v0  ;;  %1139 = vmatprep.subr.mxu1 %v4775_v52  ;;  %7144 = vst [vmem:[#allocation70_spill] sm:$0xff] %v4799_v42  ;;  %7145 = vst [vmem:[#allocation71_spill] sm:$0xff] %v4803_v16  ;;  %v4805_v0 = vld [vmem:[#allocation14 + $0x310] sm:$0xff]  ;;  %v4809_v52 = vld [vmem:[#allocation14 + $0x2e8] sm:$0xff] }
  0xa5   :  { %1069 = vmatpush1.msra.mxu0 %v4779_v40  ;;  %1140 = vmatpush1.msra.mxu1 %v4781_v38  ;;  %7146 = vst [vmem:[#allocation72_spill] sm:$0xff] %v4805_v0  ;;  %7147 = vst [vmem:[#allocation73_spill] sm:$0xff] %v4809_v52  ;;  %v4811_v40 = vld [vmem:[#allocation14 + $0x2f8] sm:$0xff]  ;;  %v4815_v38 = vld [vmem:[#allocation14 + $0x2e0] sm:$0xff] }
  0xa6   :  { %1070 = vmatprep.subr.mxu0 %v4785_v43  ;;  %1141 = vmatprep.subr.mxu1 %v4787_v7  ;;  %7148 = vst [vmem:[#allocation74_spill] sm:$0xff] %v4811_v40  ;;  %7149 = vst [vmem:[#allocation75_spill] sm:$0xff] %v4815_v38  ;;  %v4817_v43 = vld [vmem:[#allocation14 + $0x2f0] sm:$0xff]  ;;  %v4821_v7 = vld [vmem:[#allocation14 + $0x2c8] sm:$0xff] }
  0xa7   :  { %1071 = vmatpush1.msra.mxu0 %v4791_v34  ;;  %1142 = vmatpush1.msra.mxu1 %v4793_v25  ;;  %7150 = vst [vmem:[#allocation76_spill] sm:$0xff] %v4817_v43  ;;  %7151 = vst [vmem:[#allocation77_spill] sm:$0xff] %v4821_v7  ;;  %v4823_v34 = vld [vmem:[#allocation14 + $0x2d8] sm:$0xff]  ;;  %v4827_v25 = vld [vmem:[#allocation14 + $0x2c0] sm:$0xff] }
  0xa8   :  { %1072 = vmatprep.subr.mxu0 %v4797_v41  ;;  %1143 = vmatprep.subr.mxu1 %v4799_v42  ;;  %7152 = vst [vmem:[#allocation78_spill] sm:$0xff] %v4823_v34  ;;  %7153 = vst [vmem:[#allocation79_spill] sm:$0xff] %v4827_v25  ;;  %v4829_v41 = vld [vmem:[#allocation14 + $0x2d0] sm:$0xff]  ;;  %v4833_v42 = vld [vmem:[#allocation14 + $0x2a8] sm:$0xff] }
  0xa9   :  { %1073 = vmatpush1.msra.mxu0 %v4803_v16  ;;  %1144 = vmatpush1.msra.mxu1 %v4805_v0  ;;  %7154 = vst [vmem:[#allocation80_spill] sm:$0xff] %v4829_v41  ;;  %7155 = vst [vmem:[#allocation81_spill] sm:$0xff] %v4833_v42  ;;  %v4835_v16 = vld [vmem:[#allocation14 + $0x2b8] sm:$0xff]  ;;  %v4839_v0 = vld [vmem:[#allocation14 + $0x2a0] sm:$0xff] }
  0xaa   :  { %1074 = vmatprep.subr.mxu0 %v4809_v52  ;;  %1145 = vmatprep.subr.mxu1 %v4811_v40  ;;  %7156 = vst [vmem:[#allocation82_spill] sm:$0xff] %v4835_v16  ;;  %7157 = vst [vmem:[#allocation83_spill] sm:$0xff] %v4839_v0  ;;  %v4841_v52 = vld [vmem:[#allocation14 + $0x2b0] sm:$0xff]  ;;  %v4845_v40 = vld [vmem:[#allocation14 + $0x288] sm:$0xff] }
  0xab   :  { %1075 = vmatpush1.msra.mxu0 %v4815_v38  ;;  %1146 = vmatpush1.msra.mxu1 %v4817_v43  ;;  %7158 = vst [vmem:[#allocation84_spill] sm:$0xff] %v4841_v52  ;;  %7159 = vst [vmem:[#allocation85_spill] sm:$0xff] %v4845_v40  ;;  %v4847_v38 = vld [vmem:[#allocation14 + $0x298] sm:$0xff]  ;;  %v4851_v43 = vld [vmem:[#allocation14 + $0x280] sm:$0xff] }
  0xac   :  { %1076 = vmatprep.subr.mxu0 %v4821_v7  ;;  %1147 = vmatprep.subr.mxu1 %v4823_v34  ;;  %7160 = vst [vmem:[#allocation86_spill] sm:$0xff] %v4847_v38  ;;  %7161 = vst [vmem:[#allocation87_spill] sm:$0xff] %v4851_v43  ;;  %v4853_v7 = vld [vmem:[#allocation14 + $0x290] sm:$0xff]  ;;  %v4857_v34 = vld [vmem:[#allocation14 + $0x268] sm:$0xff] }
  0xad   :  { %1077 = vmatpush1.msra.mxu0 %v4827_v25  ;;  %1148 = vmatpush1.msra.mxu1 %v4829_v41  ;;  %7162 = vst [vmem:[#allocation88_spill] sm:$0xff] %v4853_v7  ;;  %7163 = vst [vmem:[#allocation89_spill] sm:$0xff] %v4857_v34  ;;  %v4859_v25 = vld [vmem:[#allocation14 + $0x278] sm:$0xff]  ;;  %v4863_v41 = vld [vmem:[#allocation14 + $0x260] sm:$0xff] }
  0xae   :  { %1078 = vmatprep.subr.mxu0 %v4833_v42  ;;  %1149 = vmatprep.subr.mxu1 %v4835_v16  ;;  %7164 = vst [vmem:[#allocation90_spill] sm:$0xff] %v4859_v25  ;;  %7165 = vst [vmem:[#allocation91_spill] sm:$0xff] %v4863_v41  ;;  %v4865_v42 = vld [vmem:[#allocation14 + $0x270] sm:$0xff]  ;;  %v4869_v16 = vld [vmem:[#allocation14 + $0x248] sm:$0xff] }
  0xaf   :  { %1079 = vmatpush1.msra.mxu0 %v4839_v0  ;;  %1150 = vmatpush1.msra.mxu1 %v4841_v52  ;;  %7166 = vst [vmem:[#allocation92_spill] sm:$0xff] %v4865_v42  ;;  %v4871_v0 = vld [vmem:[#allocation14 + $0x258] sm:$0xff]  ;;  %v4875_v52 = vld [vmem:[#allocation14 + $0x240] sm:$0xff] }
  0xb0   :  { %1080 = vmatprep.subr.mxu0 %v4845_v40  ;;  %1151 = vmatprep.subr.mxu1 %v4847_v38  ;;  %7167 = vst [vmem:[#allocation93_spill] sm:$0xff] %v4871_v0  ;;  %v4877_v40 = vld [vmem:[#allocation14 + $0x250] sm:$0xff]  ;;  %v4881_v38 = vld [vmem:[#allocation14 + $0x228] sm:$0xff] }
  0xb1   :  { %1081 = vmatpush1.msra.mxu0 %v4851_v43  ;;  %1152 = vmatpush1.msra.mxu1 %v4853_v7  ;;  %v4883_v43 = vld [vmem:[#allocation14 + $0x238] sm:$0xff]  ;;  %v4887_v7 = vld [vmem:[#allocation14 + $0x220] sm:$0xff] }
  0xb2   :  { %1082 = vmatprep.subr.mxu0 %v4857_v34  ;;  %1153 = vmatprep.subr.mxu1 %v4859_v25  ;;  %v4889_v34 = vld [vmem:[#allocation14 + $0x230] sm:$0xff]  ;;  %v4893_v25 = vld [vmem:[#allocation14 + $0x208] sm:$0xff] }
  0xb3   :  { %1083 = vmatpush1.msra.mxu0 %v4863_v41  ;;  %1154 = vmatpush1.msra.mxu1 %v4865_v42  ;;  %v4895_v41 = vld [vmem:[#allocation14 + $0x218] sm:$0xff]  ;;  %v4899_v42 = vld [vmem:[#allocation14 + $0x200] sm:$0xff] }
  0xb4   :  { %1084 = vmatprep.subr.mxu0 %v4869_v16  ;;  %1155 = vmatprep.subr.mxu1 %v4871_v0  ;;  %v4903_v0 = vld [vmem:[#allocation14 + $0x210] sm:$0xff] }
  0xb5   :  { %1085 = vmatpush1.msra.mxu0 %v4875_v52  ;;  %1156 = vmatpush1.msra.mxu1 %v4877_v40 }
  0xb6   :  { %1086 = vmatprep.subr.mxu0 %v4881_v38  ;;  %1157 = vmatprep.subr.mxu1 %v4883_v43 }
  0xb7   :  { %1087 = vmatpush1.msra.mxu0 %v4887_v7  ;;  %1158 = vmatpush1.msra.mxu1 %v4889_v34 }
  0xb8   :  { %1088 = vmatprep.subr.mxu0 %v4893_v25  ;;  %1159 = vmatprep.subr.mxu1 %v4895_v41 }
  0xb9   :  { %1089 = vmatpush1.msra.mxu0 %v4899_v42  ;;  %1122 = vmatprep.mubr.f32.mxu0 %v7116_v61 }
  0xba   :  { %1160 = vmatpush1.msra.mxu1 %v4903_v0  ;;  %1193 = vmatprep.mubr.f32.mxu1 %v7116_v61 }
  0xbb   :  { %1123 = vmatmul.mubr.f32.vlgmr.msra.gmra.mxu0 %v7116_v61  ;;  %1194 = vmatmul.mubr.f32.vlgmr.msra.gmra.mxu1 %v7116_v61 }
  0xbc   :  { %1248 = vmatprep.subr.mxu0 %v4473_v36  ;;  %1319 = vmatprep.subr.mxu1 %v4480_v39  ;;  %v7168_v36 = vld [vmem:[#allocation29_spill] sm:$0xff]  ;;  %v7169_v39 = vld [vmem:[#allocation30_spill] sm:$0xff] }
  0xbd   :  { %1249 = vmatpush1.msra.mxu0 %v4497_v44  ;;  %1320 = vmatpush1.msra.mxu1 %v4499_v45  ;;  %v7170_v44 = vld [vmem:[#allocation31_spill] sm:$0xff]  ;;  %v7171_v45 = vld [vmem:[#allocation32_spill] sm:$0xff] }
  0xbe   :  { %1250 = vmatprep.subr.mxu0 %v4501_v46  ;;  %1321 = vmatprep.subr.mxu1 %v4503_v47  ;;  %v7172_v46 = vld [vmem:[#allocation33_spill] sm:$0xff]  ;;  %v7173_v47 = vld [vmem:[#allocation34_spill] sm:$0xff] }
  0xbf   :  { %1251 = vmatpush1.msra.mxu0 %v4507_v48  ;;  %1322 = vmatpush1.msra.mxu1 %v4509_v49  ;;  %v7174_v48 = vld [vmem:[#allocation35_spill] sm:$0xff]  ;;  %v7175_v49 = vld [vmem:[#allocation36_spill] sm:$0xff] }
  0xc0   :  { %1252 = vmatprep.subr.mxu0 %v4515_v50  ;;  %1323 = vmatprep.subr.mxu1 %v4517_v51  ;;  %v7176_v50 = vld [vmem:[#allocation37_spill] sm:$0xff]  ;;  %v7177_v51 = vld [vmem:[#allocation38_spill] sm:$0xff] }
  0xc1   :  { %1253 = vmatpush1.msra.mxu0 %v4523_v53  ;;  %1324 = vmatpush1.msra.mxu1 %v4525_v54  ;;  %v7178_v53 = vld [vmem:[#allocation39_spill] sm:$0xff]  ;;  %v7179_v54 = vld [vmem:[#allocation40_spill] sm:$0xff] }
  0xc2   :  { %1254 = vmatprep.subr.mxu0 %v4529_v55  ;;  %1325 = vmatprep.subr.mxu1 %v4531_v56  ;;  %v7180_v55 = vld [vmem:[#allocation41_spill] sm:$0xff]  ;;  %v7181_v56 = vld [vmem:[#allocation42_spill] sm:$0xff] }
  0xc3   :  { %1255 = vmatpush1.msra.mxu0 %v4535_v57  ;;  %1326 = vmatpush1.msra.mxu1 %v4537_v58  ;;  %v145_v57 = vlaneseq }
  0xc4   :  { %1256 = vmatprep.subr.mxu0 %v4543_v59  ;;  %1327 = vmatprep.subr.mxu1 %v4545_v60 }
  0xc5   :  { %1257 = vmatpush1.msra.mxu0 %v4551_v62  ;;  %1328 = vmatpush1.msra.mxu1 %v4553_v63  ;;  %v4981_v58 = vshrl.u32 %v145_v57, 7  ;;  %v143_v62 = vld [vmem:[#allocation16] sm:$0xf] }
  0xc6   :  { %1258 = vmatprep.subr.mxu0 %v4557_v1  ;;  %1329 = vmatprep.subr.mxu1 %v4559_v2 }
  0xc7   :  { %1259 = vmatpush1.msra.mxu0 %v4563_v3  ;;  %1330 = vmatpush1.msra.mxu1 %v4565_v4  ;;  %v147_v59 = vsub.s32 0, %v4981_v58  ;;  %v155_v60 = vsub.s32 2, %v4981_v58  ;;  %v151_v2 = vsub.s32 1, %v4981_v58  ;;  %v159_v3 = vsub.s32 3, %v4981_v58 }
  0xc8   :  { %1260 = vmatprep.subr.mxu0 %v4571_v5  ;;  %1331 = vmatprep.subr.mxu1 %v4573_v6 }
  0xc9   :  { %1261 = vmatpush1.msra.mxu0 %v4579_v8  ;;  %1332 = vmatpush1.msra.mxu1 %v4581_v9  ;;  %v4997_v6 = vrot.slane %v143_v62, %v147_v59  ;;  %v5001_v8 = vrot.slane %v143_v62, %v155_v60 }
  0xca   :  { %1262 = vmatprep.subr.mxu0 %v4585_v10  ;;  %1333 = vmatprep.subr.mxu1 %v4587_v11  ;;  %v5005_v11 = vrot.slane %v143_v62, %v151_v2 }
  0xcb   :  { %1263 = vmatpush1.msra.mxu0 %v4591_v12  ;;  %1334 = vmatpush1.msra.mxu1 %v4593_v13  ;;  %v5009_v12 = vrot.slane %v143_v62, %v159_v3 }
  0xcc   :  { %1264 = vmatprep.subr.mxu0 %v4599_v14  ;;  %1335 = vmatprep.subr.mxu1 %v4601_v15 }
  0xcd   :  { %1265 = vmatpush1.msra.mxu0 %v4607_v17  ;;  %1336 = vmatpush1.msra.mxu1 %v4609_v18 }
  0xce   :  { %1266 = vmatprep.subr.mxu0 %v4613_v19  ;;  %1337 = vmatprep.subr.mxu1 %v4615_v20 }
  0xcf   :  { %1267 = vmatpush1.msra.mxu0 %v4619_v21  ;;  %1338 = vmatpush1.msra.mxu1 %v4621_v22 }
  0xd0   :  { %1268 = vmatprep.subr.mxu0 %v4627_v23  ;;  %1339 = vmatprep.subr.mxu1 %v4629_v24 }
  0xd1   :  { %1269 = vmatpush1.msra.mxu0 %v4635_v26  ;;  %1340 = vmatpush1.msra.mxu1 %v4637_v27 }
  0xd2   :  { %1270 = vmatprep.subr.mxu0 %v4641_v28  ;;  %1341 = vmatprep.subr.mxu1 %v4643_v29 }
  0xd3   :  { %1271 = vmatpush1.msra.mxu0 %v4647_v30  ;;  %1342 = vmatpush1.msra.mxu1 %v4649_v31 }
  0xd4   :  { %1272 = vmatprep.subr.mxu0 %v4655_v32  ;;  %1343 = vmatprep.subr.mxu1 %v4657_v33 }
  0xd5   :  { %1273 = vmatpush1.msra.mxu0 %v4663_v35  ;;  %1344 = vmatpush1.msra.mxu1 %v4665_v37 }
  0xd6   :  { %1274 = vmatprep.subr.mxu0 %v7168_v36  ;;  %1345 = vmatprep.subr.mxu1 %v7169_v39 }
  0xd7   :  { %1275 = vmatpush1.msra.mxu0 %v7170_v44  ;;  %1346 = vmatpush1.msra.mxu1 %v7171_v45 }
  0xd8   :  { %1276 = vmatprep.subr.mxu0 %v7172_v46  ;;  %1347 = vmatprep.subr.mxu1 %v7173_v47 }
  0xd9   :  { %1277 = vmatpush1.msra.mxu0 %v7174_v48  ;;  %1348 = vmatpush1.msra.mxu1 %v7175_v49 }
  0xda   :  { %1278 = vmatprep.subr.mxu0 %v7176_v50  ;;  %1349 = vmatprep.subr.mxu1 %v7177_v51 }
  0xdb   :  { %1279 = vmatpush1.msra.mxu0 %v7178_v53  ;;  %1350 = vmatpush1.msra.mxu1 %v7179_v54 }
  0xdc   :  { %1312 = vmatprep.mubr.f32.mxu0 %v7116_v61  ;;  %1383 = vmatprep.mubr.f32.mxu1 %v7116_v61 }
  0xdd   :  { %1399 = vmatprep.subr.mxu0 %v7180_v55  ;;  %1470 = vmatprep.subr.mxu1 %v7181_v56 }
 0x10a   :  { %v4985_v63 = vpop.f32.mrf.mxu0  ;;  %v4987_v1 = vpop.f32.mrf.mxu1 }
 0x10c   :  { %v4991_v4 = vpop.f32.mrf.mxu0  ;;  %v4993_v5 = vpop.f32.mrf.mxu1 }
 0x10e   :  { %v262_v9 = vpop.f32.mrf.mxu0  ;;  %v375_v10 = vpop.f32.mrf.mxu1 }
 0x10f   :  { %v5012_v13 = vadd.f32 %v262_v9, %v4997_v6  ;;  %v5015_v14 = vadd.f32 %v375_v10, %v5001_v8 }
 0x110   :  { %v264_v15 = vpop.f32.mrf.mxu0  ;;  %v377_v17 = vpop.f32.mrf.mxu1 }
 0x111   :  { %v5018_v18 = vadd.f32 %v264_v15, %v5005_v11  ;;  %v5021_v19 = vadd.f32 %v377_v17, %v5009_v12 }
 0x112   :  { %v268_v20 = vpop.f32.mrf.mxu0  ;;  %v381_v21 = vpop.f32.mrf.mxu1 }
 0x113   :  { %v5024_v22 = vadd.f32 %v268_v20, %v4997_v6  ;;  %v5027_v23 = vadd.f32 %v381_v21, %v5001_v8 }
 0x114   :  { %v270_v24 = vpop.f32.mrf.mxu0  ;;  %v383_v26 = vpop.f32.mrf.mxu1 }
 0x115   :  { %7182 = vst [vmem:[#allocation29_spill] sm:$0xff] %v5024_v22  ;;  %7183 = vst [vmem:[#allocation30_spill] sm:$0xff] %v5027_v23  ;;  %v5030_v27 = vadd.f32 %v270_v24, %v5005_v11  ;;  %v5033_v28 = vadd.f32 %v383_v26, %v5009_v12  ;;  %v466_v26 = vld [vmem:[#allocation16 + $0x4] sm:$0xf]  ;;  %v5433_v22 = vld [vmem:[#allocation14 + $0x48] sm:$0xff] }
 0x116   :  { %v274_v29 = vpop.f32.mrf.mxu0  ;;  %v387_v30 = vpop.f32.mrf.mxu1  ;;  %v5427_v23 = vld [vmem:[#allocation14 + $0x60] sm:$0xff] }
 0x117   :  { %7184 = vst [vmem:[#allocation31_spill] sm:$0xff] %v5030_v27  ;;  %7185 = vst [vmem:[#allocation32_spill] sm:$0xff] %v5033_v28  ;;  %v5036_v31 = vadd.f32 %v274_v29, %v4997_v6  ;;  %v5039_v32 = vadd.f32 %v387_v30, %v5001_v8  ;;  %v5424_v28 = vld [vmem:[#allocation14 + $0x78] sm:$0xff]  ;;  %v5430_v27 = vld [vmem:[#allocation14 + $0x70] sm:$0xff] }
 0x118   :  { %v276_v33 = vpop.f32.mrf.mxu0  ;;  %v389_v35 = vpop.f32.mrf.mxu1 }
 0x119   :  { %7186 = vst [vmem:[#allocation33_spill] sm:$0xff] %v5036_v31  ;;  %7187 = vst [vmem:[#allocation34_spill] sm:$0xff] %v5039_v32  ;;  %v5042_v37 = vadd.f32 %v276_v33, %v5005_v11  ;;  %v5045_v36 = vadd.f32 %v389_v35, %v5009_v12  ;;  %v5403_v32 = vld [vmem:[#allocation14 + $0xa0] sm:$0xff]  ;;  %v5409_v31 = vld [vmem:[#allocation14 + $0x88] sm:$0xff] }
 0x11a   :  { %v280_v39 = vpop.f32.mrf.mxu0  ;;  %v393_v44 = vpop.f32.mrf.mxu1 }
 0x11b   :  { %7188 = vst [vmem:[#allocation35_spill] sm:$0xff] %v5042_v37  ;;  %7189 = vst [vmem:[#allocation36_spill] sm:$0xff] %v5045_v36  ;;  %v5048_v45 = vadd.f32 %v280_v39, %v4997_v6  ;;  %v5051_v46 = vadd.f32 %v393_v44, %v5001_v8  ;;  %v5400_v36 = vld [vmem:[#allocation14 + $0xb8] sm:$0xff]  ;;  %v5406_v37 = vld [vmem:[#allocation14 + $0xb0] sm:$0xff] }
 0x11c   :  { %v282_v47 = vpop.f32.mrf.mxu0  ;;  %v395_v48 = vpop.f32.mrf.mxu1 }
 0x11d   :  { %7190 = vst [vmem:[#allocation37_spill] sm:$0xff] %v5048_v45  ;;  %7191 = vst [vmem:[#allocation38_spill] sm:$0xff] %v5051_v46  ;;  %v5054_v49 = vadd.f32 %v282_v47, %v5005_v11  ;;  %v5057_v50 = vadd.f32 %v395_v48, %v5009_v12  ;;  %v5091_v47 = vrot.slane %v466_v26, %v147_v59 }
 0x11e   :  { %v286_v51 = vpop.f32.mrf.mxu0  ;;  %v399_v53 = vpop.f32.mrf.mxu1  ;;  %v5095_v48 = vrot.slane %v466_v26, %v155_v60  ;;  %v5109_v59 = vrot.slane %v466_v26, %v159_v3 }
 0x11f   :  { %7192 = vst [vmem:[#allocation39_spill] sm:$0xff] %v5054_v49  ;;  %7193 = vst [vmem:[#allocation40_spill] sm:$0xff] %v5057_v50  ;;  %v5060_v54 = vadd.f32 %v286_v51, %v4997_v6  ;;  %v5063_v55 = vadd.f32 %v399_v53, %v5001_v8 }
 0x120   :  { %v288_v56 = vpop.f32.mrf.mxu0  ;;  %v401_v57 = vpop.f32.mrf.mxu1 }
 0x121   :  { %7194 = vst [vmem:[#allocation41_spill] sm:$0xff] %v5060_v54  ;;  %7195 = vst [vmem:[#allocation42_spill] sm:$0xff] %v5063_v55  ;;  %v5066_v62 = vadd.f32 %v288_v56, %v5005_v11  ;;  %v5069_v9 = vadd.f32 %v401_v57, %v5009_v12  ;;  %v257_v54 = vadd.f32 %v4985_v63, %v4997_v6 }
 0x122   :  { %v292_v10 = vpop.f32.mrf.mxu0  ;;  %v405_v15 = vpop.f32.mrf.mxu1  ;;  %v372_v63 = vadd.f32 %v4993_v5, %v5009_v12 }
 0x123   :  { %7196 = vst [vmem:[#allocation94_spill] sm:$0xff] %v5066_v62  ;;  %7197 = vst [vmem:[#allocation95_spill] sm:$0xff] %v5069_v9  ;;  %v5072_v17 = vadd.f32 %v292_v10, %v4997_v6  ;;  %v5075_v20 = vadd.f32 %v405_v15, %v5001_v8  ;;  %v5105_v10 = vrot.slane %v466_v26, %v151_v2 }
 0x124   :  { %v294_v21 = vpop.f32.mrf.mxu0  ;;  %v407_v24 = vpop.f32.mrf.mxu1 }
 0x125   :  { %7198 = vst [vmem:[#allocation96_spill] sm:$0xff] %v5072_v17  ;;  %7199 = vst [vmem:[#allocation97_spill] sm:$0xff] %v5075_v20  ;;  %v5078_v29 = vadd.f32 %v294_v21, %v5005_v11  ;;  %v5081_v30 = vadd.f32 %v407_v24, %v5009_v12 }
 0x126   :  { %v298_v33 = vpop.f32.mrf.mxu0  ;;  %v411_v35 = vpop.f32.mrf.mxu1 }
 0x127   :  { %7200 = vst [vmem:[#allocation98_spill] sm:$0xff] %v5078_v29  ;;  %7201 = vst [vmem:[#allocation99_spill] sm:$0xff] %v5081_v30  ;;  %v5084_v39 = vadd.f32 %v298_v33, %v4997_v6  ;;  %v5087_v44 = vadd.f32 %v411_v35, %v5001_v8 }
 0x128   :  { %v300_v51 = vpop.f32.mrf.mxu0  ;;  %v413_v53 = vpop.f32.mrf.mxu1 }
 0x129   :  { %7202 = vst [vmem:[#allocation100_spill] sm:$0xff] %v5084_v39  ;;  %7203 = vst [vmem:[#allocation101_spill] sm:$0xff] %v5087_v44  ;;  %v5098_v56 = vadd.f32 %v300_v51, %v5005_v11  ;;  %v5101_v57 = vadd.f32 %v413_v53, %v5009_v12 }
 0x12a   :  { %v578_v15 = vpop.f32.mrf.mxu0  ;;  %v691_v21 = vpop.f32.mrf.mxu1 }
 0x12b   :  { %7204 = vst [vmem:[#allocation102_spill] sm:$0xff] %v5098_v56  ;;  %7205 = vst [vmem:[#allocation103_spill] sm:$0xff] %v5101_v57  ;;  %v5112_v60 = vadd.f32 %v578_v15, %v5091_v47  ;;  %v5115_v24 = vadd.f32 %v691_v21, %v5095_v48 }
 0x12c   :  { %v580_v33 = vpop.f32.mrf.mxu0  ;;  %v693_v35 = vpop.f32.mrf.mxu1 }
 0x12d   :  { %7206 = vst [vmem:[#allocation104_spill] sm:$0xff] %v5112_v60  ;;  %7207 = vst [vmem:[#allocation105_spill] sm:$0xff] %v5115_v24  ;;  %v5118_v51 = vadd.f32 %v580_v33, %v5105_v10  ;;  %v5121_v2 = vadd.f32 %v693_v35, %v5109_v59 }
 0x12f   :  { %7208 = vst [vmem:[#allocation106_spill] sm:$0xff] %v5118_v51  ;;  %7209 = vst [vmem:[#allocation107_spill] sm:$0xff] %v5121_v2 }
 0x130   :  { %v584_v53 = vpop.f32.mrf.mxu0  ;;  %v697_v58 = vpop.f32.mrf.mxu1 }
 0x131   :  { %v5124_v3 = vadd.f32 %v584_v53, %v5091_v47  ;;  %v5127_v26 = vadd.f32 %v697_v58, %v5095_v48 }
 0x132   :  { %v586_v15 = vpop.f32.mrf.mxu0  ;;  %v699_v60 = vpop.f32.mrf.mxu1 }
 0x133   :  { %7210 = vst [vmem:[#allocation108_spill] sm:$0xff] %v5124_v3  ;;  %7211 = vst [vmem:[#allocation109_spill] sm:$0xff] %v5127_v26  ;;  %v5130_v21 = vadd.f32 %v586_v15, %v5105_v10  ;;  %v5133_v24 = vadd.f32 %v699_v60, %v5109_v59 }
 0x135   :  { %7212 = vst [vmem:[#allocation110_spill] sm:$0xff] %v5130_v21  ;;  %7213 = vst [vmem:[#allocation111_spill] sm:$0xff] %v5133_v24 }
 0x136   :  { %v590_v33 = vpop.f32.mrf.mxu0  ;;  %v703_v51 = vpop.f32.mrf.mxu1 }
 0x137   :  { %v5136_v35 = vadd.f32 %v590_v33, %v5091_v47  ;;  %v5139_v2 = vadd.f32 %v703_v51, %v5095_v48 }
 0x138   :  { %v592_v53 = vpop.f32.mrf.mxu0  ;;  %v705_v57 = vpop.f32.mrf.mxu1 }
 0x139   :  { %7214 = vst [vmem:[#allocation112_spill] sm:$0xff] %v5136_v35  ;;  %7215 = vst [vmem:[#allocation113_spill] sm:$0xff] %v5139_v2  ;;  %v5142_v58 = vadd.f32 %v592_v53, %v5105_v10  ;;  %v5145_v44 = vadd.f32 %v705_v57, %v5109_v59 }
 0x13b   :  { %7216 = vst [vmem:[#allocation114_spill] sm:$0xff] %v5142_v58  ;;  %7217 = vst [vmem:[#allocation115_spill] sm:$0xff] %v5145_v44 }
 0x13c   :  { %v596_v15 = vpop.f32.mrf.mxu0  ;;  %v709_v56 = vpop.f32.mrf.mxu1 }
 0x13d   :  { %v5148_v60 = vadd.f32 %v596_v15, %v5091_v47  ;;  %v5151_v39 = vadd.f32 %v709_v56, %v5095_v48 }
 0x13e   :  { %v598_v33 = vpop.f32.mrf.mxu0  ;;  %v711_v24 = vpop.f32.mrf.mxu1 }
 0x13f   :  { %7218 = vst [vmem:[#allocation116_spill] sm:$0xff] %v5148_v60  ;;  %7219 = vst [vmem:[#allocation117_spill] sm:$0xff] %v5151_v39  ;;  %v5154_v51 = vadd.f32 %v598_v33, %v5105_v10  ;;  %v5157_v26 = vadd.f32 %v711_v24, %v5109_v59 }
 0x141   :  { %7220 = vst [vmem:[#allocation118_spill] sm:$0xff] %v5154_v51  ;;  %7221 = vst [vmem:[#allocation119_spill] sm:$0xff] %v5157_v26 }
 0x142   :  { %v602_v53 = vpop.f32.mrf.mxu0  ;;  %v715_v21 = vpop.f32.mrf.mxu1 }
 0x143   :  { %v5160_v57 = vadd.f32 %v602_v53, %v5091_v47  ;;  %v5163_v3 = vadd.f32 %v715_v21, %v5095_v48 }
 0x144   :  { %v604_v15 = vpop.f32.mrf.mxu0  ;;  %v717_v30 = vpop.f32.mrf.mxu1 }
 0x145   :  { %7222 = vst [vmem:[#allocation120_spill] sm:$0xff] %v5160_v57  ;;  %7223 = vst [vmem:[#allocation121_spill] sm:$0xff] %v5163_v3  ;;  %v5166_v56 = vadd.f32 %v604_v15, %v5105_v10  ;;  %v5169_v20 = vadd.f32 %v717_v30, %v5109_v59  ;;  %v5391_v3 = vld [vmem:[#allocation14 + $0xc0] sm:$0xff]  ;;  %v5397_v57 = vld [vmem:[#allocation14 + $0xa8] sm:$0xff] }
 0x147   :  { %7224 = vst [vmem:[#allocation122_spill] sm:$0xff] %v5166_v56  ;;  %7225 = vst [vmem:[#allocation123_spill] sm:$0xff] %v5169_v20  ;;  %v5394_v56 = vld [vmem:[#allocation14 + $0xd0] sm:$0xff] }
 0x148   :  { %v608_v33 = vpop.f32.mrf.mxu0  ;;  %v721_v29 = vpop.f32.mrf.mxu1 }
 0x149   :  { %v5172_v24 = vadd.f32 %v608_v33, %v5091_v47  ;;  %v5175_v17 = vadd.f32 %v721_v29, %v5095_v48 }
 0x14a   :  { %v610_v53 = vpop.f32.mrf.mxu0  ;;  %v723_v44 = vpop.f32.mrf.mxu1 }
 0x14b   :  { %7226 = vst [vmem:[#allocation124_spill] sm:$0xff] %v5172_v24  ;;  %7227 = vst [vmem:[#allocation125_spill] sm:$0xff] %v5175_v17  ;;  %v5178_v21 = vadd.f32 %v610_v53, %v5105_v10  ;;  %v5181_v2 = vadd.f32 %v723_v44, %v5109_v59  ;;  %v5415_v17 = vld [vmem:[#allocation14 + $0x80] sm:$0xff]  ;;  %v5421_v24 = vld [vmem:[#allocation14 + $0x68] sm:$0xff] }
 0x14d   :  { %7228 = vst [vmem:[#allocation126_spill] sm:$0xff] %v5178_v21  ;;  %7229 = vst [vmem:[#allocation127_spill] sm:$0xff] %v5181_v2  ;;  %v5412_v2 = vld [vmem:[#allocation14 + $0x98] sm:$0xff]  ;;  %v5418_v21 = vld [vmem:[#allocation14 + $0x90] sm:$0xff] }
 0x14e   :  { %v614_v15 = vpop.f32.mrf.mxu0  ;;  %v727_v58 = vpop.f32.mrf.mxu1 }
 0x14f   :  { %v5184_v30 = vadd.f32 %v614_v15, %v5091_v47  ;;  %v5187_v35 = vadd.f32 %v727_v58, %v5095_v48  ;;  %v259_v58 = vadd.f32 %v4991_v4, %v5005_v11 }
 0x150   :  { %v616_v33 = vpop.f32.mrf.mxu0  ;;  %v729_v9 = vpop.f32.mrf.mxu1 }
 0x151   :  { %v5190_v29 = vadd.f32 %v616_v33, %v5105_v10  ;;  %v5193_v55 = vadd.f32 %v729_v9, %v5109_v59  ;;  %v370_v9 = vadd.f32 %v4987_v1, %v5001_v8 }
 0x154   :  { %v620_v53 = vpop.f32.mrf.mxu0  ;;  %v733_v62 = vpop.f32.mrf.mxu1 }
 0x156   :  { %v622_v44 = vpop.f32.mrf.mxu0  ;;  %v735_v26 = vpop.f32.mrf.mxu1 }
 0x15a   :  { %v973_v15 = vpop.f32.mrf.mxu0  ;;  %v1044_v33 = vpop.f32.mrf.mxu1 }
 0x15b   :  { %v1049_v39 = vadd.f32 %v973_v15, %v257_v54  ;;  %v1051_v49 = vadd.f32 %v1044_v33, %v370_v9 }
 0x15c   :  { %v975_v51 = vpop.f32.mrf.mxu0  ;;  %v1046_v45 = vpop.f32.mrf.mxu1 }
 0x15d   :  { %v1204_v60 = vmul.f32 0.5, %v1049_v39  ;;  %v1050_v50 = vadd.f32 %v975_v51, %v259_v58  ;;  %v1052_v6 = vadd.f32 %v1046_v45, %v372_v63  ;;  %v623_v45 = vadd.f32 %v622_v44, %v5105_v10  ;;  %v7230_v44 = vld [vmem:[#allocation43_spill] sm:$0xff] }
 0x15f   :  { %3767 = vtanh.f32 %v1204_v60  ;;  %v1208_v46 = vmul.f32 0.5, %v1050_v50  ;;  %v1213_v20 = vmul.f32 0.5, %v1052_v6  ;;  %v734_v6 = vadd.f32 %v733_v62, %v5095_v48  ;;  %v7232_v62 = vld [vmem:[#allocation45_spill] sm:$0xff]  ;;  %v7233_v48 = vld [vmem:[#allocation46_spill] sm:$0xff] }
 0x161   :  { %3769 = vtanh.f32 %v1208_v46  ;;  %v621_v46 = vadd.f32 %v620_v53, %v5091_v47  ;;  %v736_v53 = vadd.f32 %v735_v26, %v5109_v59  ;;  %v7237_v59 = vld [vmem:[#allocation50_spill] sm:$0xff] }
 0x162   :  { %3771 = vtanh.f32 %v1051_v49 }
 0x163   :  { %3773 = vtanh.f32 %v1213_v20 }
 0x16c   :  { %v3768_v4 = vpop.eup %3767 }
 0x16d   :  { %v1206_v11 = vmul.f32 0.5, %v3768_v4 }
 0x16e   :  { %v3770_v54 = vpop.eup %3769 }
 0x16f   :  { %v1207_v39 = vadd.f32 0.5, %v1206_v11  ;;  %v1210_v51 = vmul.f32 0.5, %v3770_v54  ;;  %v3772_v58 = vpop.eup %3771 }
 0x170   :  { %v3774_v12 = vpop.eup %3773 }
 0x171   :  { %v1211_v15 = vadd.f32 0.5, %v1210_v51  ;;  %v1218_v8 = vmul.f32 %v3772_v58, %v1207_v39  ;;  %v1215_v63 = vmul.f32 0.5, %v3774_v12  ;;  %v7234_v58 = vld [vmem:[#allocation47_spill] sm:$0xff] }
 0x173   :  { %v1217_v1 = vmul.f32 0.0, %v1211_v15  ;;  %v1216_v54 = vadd.f32 0.5, %v1215_v63  ;;  %v7231_v15 = vld [vmem:[#allocation44_spill] sm:$0xff] }
 0x175   :  { %v5203_v50 = vadd.f32 %v1218_v8, %v1217_v1  ;;  %v7235_v1 = vld [vmem:[#allocation48_spill] sm:$0xff]  ;;  %v7236_v8 = vld [vmem:[#allocation49_spill] sm:$0xff] }
 0x177   :  { %3775 = vtanh.f32 %v5203_v50 }
 0x17b   :  { %v1124_v5 = vpop.f32.mrf.mxu0  ;;  %v1195_v20 = vpop.f32.mrf.mxu1 }
 0x17c   :  { %v1200_v49 = vadd.f32 %v1124_v5, %v621_v46  ;;  %v1202_v11 = vadd.f32 %v1195_v20, %v734_v6  ;;  %v7238_v46 = vld [vmem:[#allocation51_spill] sm:$0xff]  ;;  %v7239_v5 = vld [vmem:[#allocation52_spill] sm:$0xff]  ;;  %v7244_v20 = vld [vmem:[#allocation57_spill] sm:$0xff] }
 0x17d   :  { %v1126_v60 = vpop.f32.mrf.mxu0  ;;  %v1197_v51 = vpop.f32.mrf.mxu1  ;;  %v7245_v6 = vld [vmem:[#allocation58_spill] sm:$0xff] }
 0x17e   :  { %v1222_v33 = vmul.f32 0.5, %v1200_v49  ;;  %v1201_v9 = vadd.f32 %v1126_v60, %v623_v45  ;;  %v1203_v10 = vadd.f32 %v1197_v51, %v736_v53  ;;  %v7240_v45 = vld [vmem:[#allocation53_spill] sm:$0xff]  ;;  %v7241_v49 = vld [vmem:[#allocation54_spill] sm:$0xff] }
 0x17f   :  { %v7248_v51 = vld [vmem:[#allocation61_spill] sm:$0xff] }
 0x180   :  { %3777 = vtanh.f32 %v1222_v33  ;;  %v1226_v4 = vmul.f32 0.5, %v1201_v9  ;;  %v1231_v26 = vmul.f32 0.5, %v1203_v10  ;;  %v7242_v33 = vld [vmem:[#allocation55_spill] sm:$0xff]  ;;  %v7243_v9 = vld [vmem:[#allocation56_spill] sm:$0xff]  ;;  %7299 = vst [vmem:[#allocation61_spill] sm:$0xff] %v5391_v3 }
 0x181   :  { %v7250_v10 = vld [vmem:[#allocation63_spill] sm:$0xff] }
 0x182   :  { %3779 = vtanh.f32 %v1226_v4  ;;  %7301 = vst [vmem:[#allocation63_spill] sm:$0xff] %v5397_v57 }
 0x183   :  { %3781 = vtanh.f32 %v1202_v11 }
 0x184   :  { %v3776_v39 = vpop.eup %3775  ;;  %3783 = vtanh.f32 %v1231_v26  ;;  %v7256_v26 = vld [vmem:[#allocation69_spill] sm:$0xff] }
 0x185   :  { %v1221_v47 = vmul.f32 %v3776_v39, %v1216_v54  ;;  %v7246_v54 = vld [vmem:[#allocation59_spill] sm:$0xff]  ;;  %v7247_v39 = vld [vmem:[#allocation60_spill] sm:$0xff]  ;;  %7307 = vst [vmem:[#allocation69_spill] sm:$0xff] %v5415_v17 }
 0x187   :  { %1240 = vst [vmem:[#allocation17] sm:$0xff] %v1221_v47  ;;  %1313 = vmatmul.mubr.f32.vlgmr.msra.gmra.mxu0 %v1221_v47  ;;  %1384 = vmatmul.mubr.f32.vlgmr.msra.gmra.mxu1 %v1221_v47  ;;  %v7249_v47 = vld [vmem:[#allocation62_spill] sm:$0xff] }
 0x188   :  { %1400 = vmatpush1.msra.mxu0 %v7230_v44  ;;  %1471 = vmatpush1.msra.mxu1 %v7231_v15  ;;  %v7251_v44 = vld [vmem:[#allocation64_spill] sm:$0xff]  ;;  %7300 = vst [vmem:[#allocation62_spill] sm:$0xff] %v5394_v56 }
 0x189   :  { %1401 = vmatprep.subr.mxu0 %v7232_v62  ;;  %1472 = vmatprep.subr.mxu1 %v7233_v48  ;;  %v7252_v62 = vld [vmem:[#allocation65_spill] sm:$0xff]  ;;  %v7253_v48 = vld [vmem:[#allocation66_spill] sm:$0xff]  ;;  %7302 = vst [vmem:[#allocation64_spill] sm:$0xff] %v5400_v36 }
 0x18a   :  { %1402 = vmatpush1.msra.mxu0 %v7234_v58  ;;  %1473 = vmatpush1.msra.mxu1 %v7235_v1  ;;  %7303 = vst [vmem:[#allocation65_spill] sm:$0xff] %v5403_v32  ;;  %7304 = vst [vmem:[#allocation66_spill] sm:$0xff] %v5406_v37 }
 0x18b   :  { %1403 = vmatprep.subr.mxu0 %v7236_v8  ;;  %1474 = vmatprep.subr.mxu1 %v7237_v59  ;;  %v7254_v8 = vld [vmem:[#allocation67_spill] sm:$0xff]  ;;  %v7255_v59 = vld [vmem:[#allocation68_spill] sm:$0xff] }
 0x18c   :  { %1404 = vmatpush1.msra.mxu0 %v7238_v46  ;;  %1475 = vmatpush1.msra.mxu1 %v7239_v5  ;;  %v7257_v46 = vld [vmem:[#allocation70_spill] sm:$0xff]  ;;  %7305 = vst [vmem:[#allocation67_spill] sm:$0xff] %v5409_v31  ;;  %7306 = vst [vmem:[#allocation68_spill] sm:$0xff] %v5412_v2 }
 0x18d   :  { %v3778_v12 = vpop.eup %3777  ;;  %1405 = vmatprep.subr.mxu0 %v7240_v45  ;;  %1476 = vmatprep.subr.mxu1 %v7241_v49  ;;  %v7259_v45 = vld [vmem:[#allocation72_spill] sm:$0xff]  ;;  %v7260_v49 = vld [vmem:[#allocation73_spill] sm:$0xff]  ;;  %7308 = vst [vmem:[#allocation70_spill] sm:$0xff] %v5418_v21 }
 0x18e   :  { %v1224_v60 = vmul.f32 0.5, %v3778_v12  ;;  %1406 = vmatpush1.msra.mxu0 %v7242_v33  ;;  %1477 = vmatpush1.msra.mxu1 %v7243_v9  ;;  %v7258_v12 = vld [vmem:[#allocation71_spill] sm:$0xff]  ;;  %v7263_v9 = vld [vmem:[#allocation76_spill] sm:$0xff]  ;;  %7310 = vst [vmem:[#allocation72_spill] sm:$0xff] %v5424_v28  ;;  %7311 = vst [vmem:[#allocation73_spill] sm:$0xff] %v5427_v23 }
 0x18f   :  { %v3780_v63 = vpop.eup %3779  ;;  %1407 = vmatprep.subr.mxu0 %v7244_v20  ;;  %1478 = vmatprep.subr.mxu1 %v7245_v6  ;;  %v7262_v33 = vld [vmem:[#allocation75_spill] sm:$0xff]  ;;  %v7265_v20 = vld [vmem:[#allocation78_spill] sm:$0xff]  ;;  %7309 = vst [vmem:[#allocation71_spill] sm:$0xff] %v5421_v24 }
 0x190   :  { %v1225_v4 = vadd.f32 0.5, %v1224_v60  ;;  %v1228_v11 = vmul.f32 0.5, %v3780_v63  ;;  %1408 = vmatpush1.msra.mxu0 %v7246_v54  ;;  %1479 = vmatpush1.msra.mxu1 %v7247_v39  ;;  %v3782_v15 = vpop.eup %3781  ;;  %v7261_v60 = vld [vmem:[#allocation74_spill] sm:$0xff]  ;;  %v7264_v63 = vld [vmem:[#allocation77_spill] sm:$0xff]  ;;  %v7266_v6 = vld [vmem:[#allocation79_spill] sm:$0xff]  ;;  %7313 = vst [vmem:[#allocation75_spill] sm:$0xff] %v5433_v22 }
 0x191   :  { %1409 = vmatprep.subr.mxu0 %v7248_v51  ;;  %1480 = vmatprep.subr.mxu1 %v7249_v47  ;;  %v7269_v54 = vld [vmem:[#allocation82_spill] sm:$0xff]  ;;  %v7270_v39 = vld [vmem:[#allocation83_spill] sm:$0xff]  ;;  %v7271_v51 = vld [vmem:[#allocation84_spill] sm:$0xff]  ;;  %v3784_v47 = vpop.eup %3783  ;;  %7312 = vst [vmem:[#allocation74_spill] sm:$0xff] %v5430_v27 }
 0x192   :  { %v1229_v53 = vadd.f32 0.5, %v1228_v11  ;;  %1410 = vmatpush1.msra.mxu0 %v7250_v10  ;;  %1481 = vmatpush1.msra.mxu1 %v7251_v44  ;;  %v1236_v1 = vmul.f32 %v3782_v15, %v1225_v4  ;;  %v7267_v4 = vld [vmem:[#allocation80_spill] sm:$0xff]  ;;  %v7268_v11 = vld [vmem:[#allocation81_spill] sm:$0xff]  ;;  %v7273_v10 = vld [vmem:[#allocation86_spill] sm:$0xff] }
 0x193   :  { %1411 = vmatprep.subr.mxu0 %v7252_v62  ;;  %1482 = vmatprep.subr.mxu1 %v7253_v48  ;;  %v7274_v44 = vld [vmem:[#allocation87_spill] sm:$0xff]  ;;  %v7275_v15 = vld [vmem:[#allocation88_spill] sm:$0xff]  ;;  %v7276_v62 = vld [vmem:[#allocation89_spill] sm:$0xff] }
 0x194   :  { %v1235_v58 = vmul.f32 0.0, %v1229_v53  ;;  %1412 = vmatpush1.msra.mxu0 %v7254_v8  ;;  %1483 = vmatpush1.msra.mxu1 %v7255_v59  ;;  %v7272_v53 = vld [vmem:[#allocation85_spill] sm:$0xff]  ;;  %v7277_v48 = vld [vmem:[#allocation90_spill] sm:$0xff]  ;;  %v7279_v8 = vld [vmem:[#allocation92_spill] sm:$0xff] }
 0x195   :  { %1413 = vmatprep.subr.mxu0 %v7256_v26  ;;  %1484 = vmatprep.subr.mxu1 %v7257_v46  ;;  %v7280_v59 = vld [vmem:[#allocation93_spill] sm:$0xff] }
 0x196   :  { %v5238_v5 = vadd.f32 %v1236_v1, %v1235_v58  ;;  %1414 = vmatpush1.msra.mxu0 %v7258_v12  ;;  %1485 = vmatpush1.msra.mxu1 %v7259_v45  ;;  %v1233_v58 = vmul.f32 0.5, %v3784_v47  ;;  %v7278_v1 = vld [vmem:[#allocation91_spill] sm:$0xff]  ;;  %v5307_v12 = vld [vmem:[#allocation14 + $0x1a0] sm:$0xff]  ;;  %v5310_v45 = vld [vmem:[#allocation14 + $0x1b0] sm:$0xff] }
 0x197   :  { %1415 = vmatprep.subr.mxu0 %v7260_v49  ;;  %1486 = vmatprep.subr.mxu1 %v7261_v60  ;;  %v5313_v49 = vld [vmem:[#allocation14 + $0x188] sm:$0xff]  ;;  %v5316_v60 = vld [vmem:[#allocation14 + $0x198] sm:$0xff] }
 0x198   :  { %3785 = vtanh.f32 %v5238_v5  ;;  %1416 = vmatpush1.msra.mxu0 %v7262_v33  ;;  %1487 = vmatpush1.msra.mxu1 %v7263_v9  ;;  %v1234_v26 = vadd.f32 0.5, %v1233_v58  ;;  %v5319_v33 = vld [vmem:[#allocation14 + $0x180] sm:$0xff]  ;;  %v5322_v9 = vld [vmem:[#allocation14 + $0x190] sm:$0xff]  ;;  %v5349_v47 = vld [vmem:[#allocation14 + $0x128] sm:$0xff] }
 0x199   :  { %1417 = vmatprep.subr.mxu0 %v7264_v63  ;;  %1488 = vmatprep.subr.mxu1 %v7265_v20  ;;  %v5325_v63 = vld [vmem:[#allocation14 + $0x168] sm:$0xff]  ;;  %v5328_v20 = vld [vmem:[#allocation14 + $0x178] sm:$0xff]  ;;  %7285 = vst [vmem:[#allocation47_spill] sm:$0xff] %v5349_v47  ;;  %v5370_v58 = vld [vmem:[#allocation14 + $0x110] sm:$0xff] }
 0x19a   :  { %1418 = vmatpush1.msra.mxu0 %v7266_v6  ;;  %1489 = vmatpush1.msra.mxu1 %v7267_v4  ;;  %v5331_v6 = vld [vmem:[#allocation14 + $0x160] sm:$0xff]  ;;  %v5334_v4 = vld [vmem:[#allocation14 + $0x170] sm:$0xff]  ;;  %7292 = vst [vmem:[#allocation54_spill] sm:$0xff] %v5370_v58 }
 0x19b   :  { %1419 = vmatprep.subr.mxu0 %v7268_v11  ;;  %1490 = vmatprep.subr.mxu1 %v7269_v54  ;;  %v5337_v11 = vld [vmem:[#allocation14 + $0x148] sm:$0xff]  ;;  %v5340_v54 = vld [vmem:[#allocation14 + $0x158] sm:$0xff] }
 0x19c   :  { %1420 = vmatpush1.msra.mxu0 %v7270_v39  ;;  %1491 = vmatpush1.msra.mxu1 %v7271_v51  ;;  %7281 = vst [vmem:[#allocation43_spill] sm:$0xff] %v5337_v11  ;;  %7282 = vst [vmem:[#allocation44_spill] sm:$0xff] %v5340_v54  ;;  %v5343_v39 = vld [vmem:[#allocation14 + $0x140] sm:$0xff]  ;;  %v5346_v51 = vld [vmem:[#allocation14 + $0x150] sm:$0xff] }
 0x19d   :  { %1421 = vmatprep.subr.mxu0 %v7272_v53  ;;  %1492 = vmatprep.subr.mxu1 %v7273_v10  ;;  %7283 = vst [vmem:[#allocation45_spill] sm:$0xff] %v5343_v39  ;;  %7284 = vst [vmem:[#allocation46_spill] sm:$0xff] %v5346_v51  ;;  %v5352_v53 = vld [vmem:[#allocation14 + $0x138] sm:$0xff]  ;;  %v5355_v10 = vld [vmem:[#allocation14 + $0x120] sm:$0xff] }
 0x19e   :  { %1422 = vmatpush1.msra.mxu0 %v7274_v44  ;;  %1493 = vmatpush1.msra.mxu1 %v7275_v15  ;;  %7286 = vst [vmem:[#allocation48_spill] sm:$0xff] %v5352_v53  ;;  %7287 = vst [vmem:[#allocation49_spill] sm:$0xff] %v5355_v10  ;;  %v5358_v44 = vld [vmem:[#allocation14 + $0x130] sm:$0xff]  ;;  %v5361_v15 = vld [vmem:[#allocation14 + $0x108] sm:$0xff] }
 0x19f   :  { %1423 = vmatprep.subr.mxu0 %v7276_v62  ;;  %1494 = vmatprep.subr.mxu1 %v7277_v48  ;;  %7288 = vst [vmem:[#allocation50_spill] sm:$0xff] %v5358_v44  ;;  %7289 = vst [vmem:[#allocation51_spill] sm:$0xff] %v5361_v15  ;;  %v5364_v62 = vld [vmem:[#allocation14 + $0x118] sm:$0xff]  ;;  %v5367_v48 = vld [vmem:[#allocation14 + $0x100] sm:$0xff] }
 0x1a0   :  { %1424 = vmatpush1.msra.mxu0 %v7278_v1  ;;  %1495 = vmatpush1.msra.mxu1 %v7279_v8  ;;  %7290 = vst [vmem:[#allocation52_spill] sm:$0xff] %v5364_v62  ;;  %7291 = vst [vmem:[#allocation53_spill] sm:$0xff] %v5367_v48  ;;  %v5373_v1 = vld [vmem:[#allocation14 + $0xe8] sm:$0xff]  ;;  %v5376_v8 = vld [vmem:[#allocation14 + $0xf8] sm:$0xff] }
 0x1a1   :  { %1425 = vmatprep.subr.mxu0 %v4869_v16  ;;  %1496 = vmatprep.subr.mxu1 %v7280_v59  ;;  %v5298_v16 = vld [vmem:[#allocation14 + $0x1d0] sm:$0xff]  ;;  %7293 = vst [vmem:[#allocation55_spill] sm:$0xff] %v5373_v1  ;;  %7294 = vst [vmem:[#allocation56_spill] sm:$0xff] %v5376_v8  ;;  %v5379_v59 = vld [vmem:[#allocation14 + $0xe0] sm:$0xff] }
 0x1a2   :  { %1426 = vmatpush1.msra.mxu0 %v4875_v52  ;;  %1497 = vmatpush1.msra.mxu1 %v4877_v40  ;;  %v5280_v40 = vld [vmem:[#allocation14 + $0x1f8] sm:$0xff]  ;;  %7295 = vst [vmem:[#allocation57_spill] sm:$0xff] %v5379_v59 }
 0x1a3   :  { %1427 = vmatprep.subr.mxu0 %v4881_v38  ;;  %1498 = vmatprep.subr.mxu1 %v4883_v43  ;;  %v5277_v38 = vld [vmem:[#allocation14 + $0x1e8] sm:$0xff]  ;;  %v5292_v43 = vld [vmem:[#allocation14 + $0x1d8] sm:$0xff] }
 0x1a4   :  { %1428 = vmatpush1.msra.mxu0 %v4887_v7  ;;  %1499 = vmatpush1.msra.mxu1 %v4889_v34  ;;  %v5295_v7 = vld [vmem:[#allocation14 + $0x1c0] sm:$0xff]  ;;  %v5304_v34 = vld [vmem:[#allocation14 + $0x1b8] sm:$0xff] }
 0x1a5   :  { %v3786_v46 = vpop.eup %3785  ;;  %1429 = vmatprep.subr.mxu0 %v4893_v25  ;;  %1500 = vmatprep.subr.mxu1 %v4895_v41  ;;  %v5283_v41 = vld [vmem:[#allocation14 + $0x1e0] sm:$0xff]  ;;  %v5301_v25 = vld [vmem:[#allocation14 + $0x1a8] sm:$0xff] }
 0x1a6   :  { %1430 = vmatpush1.msra.mxu0 %v4899_v42  ;;  %1463 = vmatprep.mubr.f32.mxu0 %v7116_v61  ;;  %v1239_v52 = vmul.f32 %v3786_v46, %v1234_v26  ;;  %v5286_v42 = vld [vmem:[#allocation14 + $0x1f0] sm:$0xff]  ;;  %v5385_v46 = vld [vmem:[#allocation14 + $0xc8] sm:$0xff] }
 0x1a7   :  { %1501 = vmatpush1.msra.mxu1 %v4903_v0  ;;  %1534 = vmatprep.mubr.f32.mxu1 %v7116_v61  ;;  %v5289_v0 = vld [vmem:[#allocation14 + $0x1c8] sm:$0xff]  ;;  %v5382_v26 = vld [vmem:[#allocation14 + $0xf0] sm:$0xff]  ;;  %7297 = vst [vmem:[#allocation59_spill] sm:$0xff] %v5385_v46 }
 0x1a8   :  { %1242 = vst [vmem:[#allocation18 + $0x38] sm:$0xff] %v1239_v52  ;;  %1464 = vmatmul.mubr.f32.vlgmr.msra.gmra.mxu0 %v1239_v52  ;;  %1535 = vmatmul.mubr.f32.vlgmr.msra.gmra.mxu1 %v1239_v52  ;;  %7296 = vst [vmem:[#allocation58_spill] sm:$0xff] %v5382_v26  ;;  %v5388_v52 = vld [vmem:[#allocation14 + $0xd8] sm:$0xff] }
 0x1a9   :  { %1590 = vmatprep.subr.mxu0 %v5277_v38  ;;  %1661 = vmatprep.subr.mxu1 %v5280_v40  ;;  %7298 = vst [vmem:[#allocation60_spill] sm:$0xff] %v5388_v52 }
 0x1aa   :  { %1591 = vmatpush1.msra.mxu0 %v5283_v41  ;;  %1662 = vmatpush1.msra.mxu1 %v5286_v42 }
 0x1ab   :  { %1592 = vmatprep.subr.mxu0 %v5289_v0  ;;  %1663 = vmatprep.subr.mxu1 %v5292_v43 }
 0x1ac   :  { %1593 = vmatpush1.msra.mxu0 %v5295_v7  ;;  %1664 = vmatpush1.msra.mxu1 %v5298_v16 }
 0x1ad   :  { %1594 = vmatprep.subr.mxu0 %v5301_v25  ;;  %1665 = vmatprep.subr.mxu1 %v5304_v34 }
 0x1ae   :  { %1595 = vmatpush1.msra.mxu0 %v5307_v12  ;;  %1666 = vmatpush1.msra.mxu1 %v5310_v45 }
 0x1af   :  { %1596 = vmatprep.subr.mxu0 %v5313_v49  ;;  %1667 = vmatprep.subr.mxu1 %v5316_v60 }
 0x1b0   :  { %1597 = vmatpush1.msra.mxu0 %v5319_v33  ;;  %1668 = vmatpush1.msra.mxu1 %v5322_v9 }
 0x1b1   :  { %1598 = vmatprep.subr.mxu0 %v5325_v63  ;;  %1669 = vmatprep.subr.mxu1 %v5328_v20 }
 0x1b2   :  { %1599 = vmatpush1.msra.mxu0 %v5331_v6  ;;  %1670 = vmatpush1.msra.mxu1 %v5334_v4 }
 0x1b3   :  { %1600 = vmatprep.subr.mxu0 %v5337_v11  ;;  %1671 = vmatprep.subr.mxu1 %v5340_v54 }
 0x1b4   :  { %1601 = vmatpush1.msra.mxu0 %v5343_v39  ;;  %1672 = vmatpush1.msra.mxu1 %v5346_v51 }
 0x1b5   :  { %1602 = vmatprep.subr.mxu0 %v5349_v47  ;;  %1673 = vmatprep.subr.mxu1 %v5352_v53 }
 0x1b6   :  { %1603 = vmatpush1.msra.mxu0 %v5355_v10  ;;  %1674 = vmatpush1.msra.mxu1 %v5358_v44 }
 0x1b7   :  { %1604 = vmatprep.subr.mxu0 %v5361_v15  ;;  %1675 = vmatprep.subr.mxu1 %v5364_v62 }
 0x1b8   :  { %1605 = vmatpush1.msra.mxu0 %v5367_v48  ;;  %1676 = vmatpush1.msra.mxu1 %v5370_v58 }
 0x1b9   :  { %1606 = vmatprep.subr.mxu0 %v5373_v1  ;;  %1677 = vmatprep.subr.mxu1 %v5376_v8 }
 0x1ba   :  { %1607 = vmatpush1.msra.mxu0 %v5379_v59  ;;  %1678 = vmatpush1.msra.mxu1 %v5382_v26 }
 0x1bb   :  { %1608 = vmatprep.subr.mxu0 %v5385_v46  ;;  %1679 = vmatprep.subr.mxu1 %v5388_v52 }
 0x1bc   :  { %1609 = vmatpush1.msra.mxu0 %v5391_v3  ;;  %1680 = vmatpush1.msra.mxu1 %v5394_v56 }
 0x1bd   :  { %1610 = vmatprep.subr.mxu0 %v5397_v57  ;;  %1681 = vmatprep.subr.mxu1 %v5400_v36 }
 0x1be   :  { %1611 = vmatpush1.msra.mxu0 %v5403_v32  ;;  %1682 = vmatpush1.msra.mxu1 %v5406_v37 }
 0x1bf   :  { %1612 = vmatprep.subr.mxu0 %v5409_v31  ;;  %1683 = vmatprep.subr.mxu1 %v5412_v2 }
 0x1c0   :  { %1613 = vmatpush1.msra.mxu0 %v5415_v17  ;;  %1684 = vmatpush1.msra.mxu1 %v5418_v21  ;;  %v5436_v21 = vld [vmem:[#allocation14 + $0x58] sm:$0xff] }
 0x1c1   :  { %1614 = vmatprep.subr.mxu0 %v5421_v24  ;;  %1685 = vmatprep.subr.mxu1 %v5424_v28  ;;  %7314 = vst [vmem:[#allocation76_spill] sm:$0xff] %v5436_v21  ;;  %v5439_v24 = vld [vmem:[#allocation14 + $0x40] sm:$0xff]  ;;  %v5442_v28 = vld [vmem:[#allocation14 + $0x50] sm:$0xff] }
 0x1c2   :  { %1615 = vmatpush1.msra.mxu0 %v5427_v23  ;;  %1686 = vmatpush1.msra.mxu1 %v5430_v27  ;;  %7315 = vst [vmem:[#allocation77_spill] sm:$0xff] %v5439_v24  ;;  %7316 = vst [vmem:[#allocation78_spill] sm:$0xff] %v5442_v28  ;;  %v5445_v23 = vld [vmem:[#allocation14 + $0x28] sm:$0xff]  ;;  %v5448_v27 = vld [vmem:[#allocation14 + $0x38] sm:$0xff] }
 0x1c3   :  { %1616 = vmatprep.subr.mxu0 %v5433_v22  ;;  %1687 = vmatprep.subr.mxu1 %v5436_v21  ;;  %7317 = vst [vmem:[#allocation79_spill] sm:$0xff] %v5445_v23  ;;  %7318 = vst [vmem:[#allocation80_spill] sm:$0xff] %v5448_v27  ;;  %v5451_v22 = vld [vmem:[#allocation14 + $0x20] sm:$0xff]  ;;  %v5454_v21 = vld [vmem:[#allocation14 + $0x30] sm:$0xff] }
 0x1c4   :  { %1617 = vmatpush1.msra.mxu0 %v5439_v24  ;;  %1688 = vmatpush1.msra.mxu1 %v5442_v28  ;;  %7319 = vst [vmem:[#allocation81_spill] sm:$0xff] %v5451_v22  ;;  %7320 = vst [vmem:[#allocation82_spill] sm:$0xff] %v5454_v21  ;;  %v5457_v24 = vld [vmem:[#allocation14 + $0x8] sm:$0xff]  ;;  %v5460_v28 = vld [vmem:[#allocation14 + $0x18] sm:$0xff] }
 0x1c5   :  { %1618 = vmatprep.subr.mxu0 %v5445_v23  ;;  %1689 = vmatprep.subr.mxu1 %v5448_v27  ;;  %7321 = vst [vmem:[#allocation83_spill] sm:$0xff] %v5457_v24  ;;  %7322 = vst [vmem:[#allocation84_spill] sm:$0xff] %v5460_v28  ;;  %v5463_v23 = vld [vmem:[#allocation14] sm:$0xff]  ;;  %v5466_v27 = vld [vmem:[#allocation14 + $0x10] sm:$0xff] }
 0x1c6   :  { %1619 = vmatpush1.msra.mxu0 %v5451_v22  ;;  %1690 = vmatpush1.msra.mxu1 %v5454_v21  ;;  %7323 = vst [vmem:[#allocation85_spill] sm:$0xff] %v5463_v23  ;;  %7324 = vst [vmem:[#allocation86_spill] sm:$0xff] %v5466_v27  ;;  %v5471_v21 = vld [vmem:[#allocation14 + $0x3e8] sm:$0xff] }
 0x1c7   :  { %1620 = vmatprep.subr.mxu0 %v5457_v24  ;;  %1691 = vmatprep.subr.mxu1 %v5460_v28  ;;  %7325 = vst [vmem:[#allocation87_spill] sm:$0xff] %v5471_v21  ;;  %v5474_v24 = vld [vmem:[#allocation14 + $0x3f8] sm:$0xff] }
 0x1c8   :  { %1621 = vmatpush1.msra.mxu0 %v5463_v23  ;;  %1692 = vmatpush1.msra.mxu1 %v5466_v27  ;;  %7326 = vst [vmem:[#allocation88_spill] sm:$0xff] %v5474_v24 }
 0x1c9   :  { %1654 = vmatprep.mubr.f32.mxu0 %v7116_v61  ;;  %1725 = vmatprep.mubr.f32.mxu1 %v7116_v61 }
 0x1ca   :  { %1741 = vmatprep.subr.mxu0 %v5471_v21  ;;  %1812 = vmatprep.subr.mxu1 %v5474_v24 }
 0x247   :  { %v1314_v28 = vpop.f32.mrf.mxu0  ;;  %v1385_v23 = vpop.f32.mrf.mxu1 }
 0x248   :  { %v1390_v22 = vadd.f32 %v1314_v28, %v5012_v13  ;;  %v1392_v31 = vadd.f32 %v1385_v23, %v5015_v14 }
 0x249   :  { %v1316_v17 = vpop.f32.mrf.mxu0  ;;  %v1387_v32 = vpop.f32.mrf.mxu1 }
 0x24a   :  { %v1545_v2 = vmul.f32 0.5, %v1390_v22  ;;  %v1391_v27 = vadd.f32 %v1316_v17, %v5018_v18  ;;  %v1393_v21 = vadd.f32 %v1387_v32, %v5021_v19 }
 0x24c   :  { %3787 = vtanh.f32 %v1545_v2  ;;  %v1549_v37 = vmul.f32 0.5, %v1391_v27  ;;  %v1554_v36 = vmul.f32 0.5, %v1393_v21 }
 0x24e   :  { %3789 = vtanh.f32 %v1549_v37 }
 0x24f   :  { %3791 = vtanh.f32 %v1392_v31 }
 0x250   :  { %3793 = vtanh.f32 %v1554_v36 }
 0x259   :  { %v3788_v57 = vpop.eup %3787 }
 0x25a   :  { %v1547_v24 = vmul.f32 0.5, %v3788_v57 }
 0x25b   :  { %v3790_v56 = vpop.eup %3789 }
 0x25c   :  { %v1548_v3 = vadd.f32 0.5, %v1547_v24  ;;  %v1551_v13 = vmul.f32 0.5, %v3790_v56  ;;  %v3792_v28 = vpop.eup %3791 }
 0x25d   :  { %v3794_v23 = vpop.eup %3793 }
 0x25e   :  { %v1552_v22 = vadd.f32 0.5, %v1551_v13  ;;  %v1559_v52 = vmul.f32 %v3792_v28, %v1548_v3  ;;  %v1556_v2 = vmul.f32 0.5, %v3794_v23  ;;  %v5501_v13 = vld [vmem:[#allocation14 + $0x3c0] sm:$0xff]  ;;  %v5507_v28 = vld [vmem:[#allocation14 + $0x3a8] sm:$0xff]  ;;  %v5516_v23 = vld [vmem:[#allocation14 + $0x3b0] sm:$0xff] }
 0x260   :  { %v1558_v18 = vmul.f32 %v1552_v22, %v5203_v50  ;;  %v1557_v57 = vadd.f32 0.5, %v1556_v2  ;;  %v5489_v50 = vld [vmem:[#allocation14 + $0x3e0] sm:$0xff]  ;;  %v5510_v22 = vld [vmem:[#allocation14 + $0x3b8] sm:$0xff]  ;;  %v5528_v2 = vld [vmem:[#allocation14 + $0x390] sm:$0xff] }
 0x261   :  { %7327 = vst [vmem:[#allocation89_spill] sm:$0xff] %v5528_v2 }
 0x262   :  { %v5482_v17 = vadd.f32 %v1559_v52, %v1558_v18  ;;  %v5498_v52 = vld [vmem:[#allocation14 + $0x3d8] sm:$0xff] }
 0x264   :  { %3795 = vtanh.f32 %v5482_v17 }
 0x268   :  { %v1465_v14 = vpop.f32.mrf.mxu0  ;;  %v1536_v27 = vpop.f32.mrf.mxu1 }
 0x269   :  { %v1541_v19 = vadd.f32 %v1465_v14, %v5184_v30  ;;  %v1543_v36 = vadd.f32 %v1536_v27, %v5187_v35  ;;  %v5495_v35 = vld [vmem:[#allocation14 + $0x3c8] sm:$0xff]  ;;  %v5513_v14 = vld [vmem:[#allocation14 + $0x3a0] sm:$0xff] }
 0x26a   :  { %v1467_v31 = vpop.f32.mrf.mxu0  ;;  %v1538_v24 = vpop.f32.mrf.mxu1  ;;  %v5519_v27 = vld [vmem:[#allocation14 + $0x388] sm:$0xff] }
 0x26b   :  { %v1563_v32 = vmul.f32 0.5, %v1541_v19  ;;  %v1542_v37 = vadd.f32 %v1467_v31, %v5190_v29  ;;  %v1544_v30 = vadd.f32 %v1538_v24, %v5193_v55  ;;  %v5492_v29 = vld [vmem:[#allocation14 + $0x3f0] sm:$0xff]  ;;  %v5522_v31 = vld [vmem:[#allocation14 + $0x398] sm:$0xff] }
 0x26c   :  { %v5504_v55 = vld [vmem:[#allocation14 + $0x3d0] sm:$0xff] }
 0x26d   :  { %3797 = vtanh.f32 %v1563_v32  ;;  %v1567_v3 = vmul.f32 0.5, %v1542_v37  ;;  %v1572_v18 = vmul.f32 0.5, %v1544_v30  ;;  %v5525_v37 = vld [vmem:[#allocation14 + $0x380] sm:$0xff]  ;;  %v5540_v30 = vld [vmem:[#allocation14 + $0x370] sm:$0xff] }
 0x26e   :  { %7331 = vst [vmem:[#allocation93_spill] sm:$0xff] %v5540_v30 }
 0x26f   :  { %3799 = vtanh.f32 %v1567_v3  ;;  %v5531_v3 = vld [vmem:[#allocation14 + $0x368] sm:$0xff] }
 0x270   :  { %3801 = vtanh.f32 %v1543_v36  ;;  %7328 = vst [vmem:[#allocation90_spill] sm:$0xff] %v5531_v3 }
 0x271   :  { %v3796_v56 = vpop.eup %3795  ;;  %3803 = vtanh.f32 %v1572_v18  ;;  %v5549_v18 = vld [vmem:[#allocation14 + $0x340] sm:$0xff] }
 0x272   :  { %v1562_v21 = vmul.f32 %v3796_v56, %v1557_v57  ;;  %v5534_v57 = vld [vmem:[#allocation14 + $0x378] sm:$0xff] }
 0x273   :  { %7329 = vst [vmem:[#allocation91_spill] sm:$0xff] %v5534_v57 }
 0x274   :  { %1582 = vst [vmem:[#allocation17 + $0x8] sm:$0xff] %v1562_v21  ;;  %1655 = vmatmul.mubr.f32.vlgmr.msra.gmra.mxu0 %v1562_v21  ;;  %1726 = vmatmul.mubr.f32.vlgmr.msra.gmra.mxu1 %v1562_v21  ;;  %v5537_v21 = vld [vmem:[#allocation14 + $0x360] sm:$0xff] }
 0x275   :  { %1742 = vmatpush1.msra.mxu0 %v5489_v50  ;;  %1813 = vmatpush1.msra.mxu1 %v5492_v29  ;;  %7330 = vst [vmem:[#allocation92_spill] sm:$0xff] %v5537_v21 }
 0x276   :  { %1743 = vmatprep.subr.mxu0 %v5495_v35  ;;  %1814 = vmatprep.subr.mxu1 %v5498_v52 }
 0x277   :  { %1744 = vmatpush1.msra.mxu0 %v5501_v13  ;;  %1815 = vmatpush1.msra.mxu1 %v5504_v55 }
 0x278   :  { %1745 = vmatprep.subr.mxu0 %v5507_v28  ;;  %1816 = vmatprep.subr.mxu1 %v5510_v22 }
 0x279   :  { %1746 = vmatpush1.msra.mxu0 %v5513_v14  ;;  %1817 = vmatpush1.msra.mxu1 %v5516_v23 }
 0x27a   :  { %v3798_v19 = vpop.eup %3797  ;;  %1747 = vmatprep.subr.mxu0 %v5519_v27  ;;  %1818 = vmatprep.subr.mxu1 %v5522_v31 }
 0x27b   :  { %v1565_v32 = vmul.f32 0.5, %v3798_v19  ;;  %1748 = vmatpush1.msra.mxu0 %v5525_v37  ;;  %1819 = vmatpush1.msra.mxu1 %v5528_v2  ;;  %v5543_v2 = vld [vmem:[#allocation14 + $0x348] sm:$0xff] }
 0x27c   :  { %v3800_v36 = vpop.eup %3799  ;;  %1749 = vmatprep.subr.mxu0 %v5531_v3  ;;  %1820 = vmatprep.subr.mxu1 %v5534_v57  ;;  %v5546_v3 = vld [vmem:[#allocation14 + $0x358] sm:$0xff] }
 0x27d   :  { %v1566_v56 = vadd.f32 0.5, %v1565_v32  ;;  %v1569_v24 = vmul.f32 0.5, %v3800_v36  ;;  %1750 = vmatpush1.msra.mxu0 %v5537_v21  ;;  %1821 = vmatpush1.msra.mxu1 %v5540_v30  ;;  %v3802_v19 = vpop.eup %3801  ;;  %7332 = vst [vmem:[#allocation128_spill] sm:$0xff] %v5546_v3  ;;  %v5552_v21 = vld [vmem:[#allocation14 + $0x350] sm:$0xff]  ;;  %v5555_v30 = vld [vmem:[#allocation14 + $0x328] sm:$0xff]  ;;  %v5558_v57 = vld [vmem:[#allocation14 + $0x338] sm:$0xff] }
 0x27e   :  { %1751 = vmatprep.subr.mxu0 %v5543_v2  ;;  %1822 = vmatprep.subr.mxu1 %v5546_v3  ;;  %7333 = vst [vmem:[#allocation129_spill] sm:$0xff] %v5552_v21  ;;  %7334 = vst [vmem:[#allocation130_spill] sm:$0xff] %v5555_v30 }
 0x27f   :  { %v1570_v32 = vadd.f32 0.5, %v1569_v24  ;;  %v1577_v36 = vmul.f32 %v3802_v19, %v1566_v56  ;;  %1752 = vmatpush1.msra.mxu0 %v5549_v18  ;;  %1823 = vmatpush1.msra.mxu1 %v5552_v21  ;;  %7335 = vst [vmem:[#allocation131_spill] sm:$0xff] %v5558_v57  ;;  %v5562_v24 = vld [vmem:[#allocation14 + $0x320] sm:$0xff]  ;;  %v5565_v56 = vld [vmem:[#allocation14 + $0x330] sm:$0xff]  ;;  %v5568_v19 = vld [vmem:[#allocation14 + $0x308] sm:$0xff] }
 0x280   :  { %1753 = vmatprep.subr.mxu0 %v5555_v30  ;;  %1824 = vmatprep.subr.mxu1 %v5558_v57  ;;  %7336 = vst [vmem:[#allocation132_spill] sm:$0xff] %v5562_v24  ;;  %7337 = vst [vmem:[#allocation133_spill] sm:$0xff] %v5565_v56  ;;  %v5571_v21 = vld [vmem:[#allocation14 + $0x318] sm:$0xff]  ;;  %v5576_v57 = vld [vmem:[#allocation14 + $0x300] sm:$0xff] }
 0x281   :  { %v1576_v3 = vmul.f32 %v1570_v32, %v5238_v5  ;;  %1754 = vmatpush1.msra.mxu0 %v5562_v24  ;;  %1825 = vmatpush1.msra.mxu1 %v5565_v56  ;;  %7338 = vst [vmem:[#allocation134_spill] sm:$0xff] %v5568_v19  ;;  %7339 = vst [vmem:[#allocation135_spill] sm:$0xff] %v5571_v21  ;;  %v5579_v5 = vld [vmem:[#allocation14 + $0x310] sm:$0xff]  ;;  %v5582_v32 = vld [vmem:[#allocation14 + $0x2e8] sm:$0xff] }
 0x282   :  { %1755 = vmatprep.subr.mxu0 %v5568_v19  ;;  %1826 = vmatprep.subr.mxu1 %v5571_v21  ;;  %7340 = vst [vmem:[#allocation136_spill] sm:$0xff] %v5576_v57  ;;  %7341 = vst [vmem:[#allocation137_spill] sm:$0xff] %v5579_v5  ;;  %v5585_v56 = vld [vmem:[#allocation14 + $0x2f8] sm:$0xff]  ;;  %v5619_v21 = vld [vmem:[#allocation14 + $0x288] sm:$0xff] }
 0x283   :  { %v5574_v30 = vadd.f32 %v1577_v36, %v1576_v3  ;;  %1756 = vmatpush1.msra.mxu0 %v5576_v57  ;;  %1827 = vmatpush1.msra.mxu1 %v5579_v5  ;;  %7342 = vst [vmem:[#allocation138_spill] sm:$0xff] %v5582_v32  ;;  %7343 = vst [vmem:[#allocation139_spill] sm:$0xff] %v5585_v56  ;;  %v5589_v3 = vld [vmem:[#allocation14 + $0x2e0] sm:$0xff]  ;;  %v5592_v36 = vld [vmem:[#allocation14 + $0x2f0] sm:$0xff] }
 0x284   :  { %1757 = vmatprep.subr.mxu0 %v5582_v32  ;;  %1828 = vmatprep.subr.mxu1 %v5585_v56  ;;  %7344 = vst [vmem:[#allocation140_spill] sm:$0xff] %v5589_v3  ;;  %7345 = vst [vmem:[#allocation141_spill] sm:$0xff] %v5592_v36  ;;  %v5595_v57 = vld [vmem:[#allocation14 + $0x2c8] sm:$0xff]  ;;  %v5598_v5 = vld [vmem:[#allocation14 + $0x2d8] sm:$0xff] }
 0x285   :  { %3805 = vtanh.f32 %v5574_v30  ;;  %1758 = vmatpush1.msra.mxu0 %v5589_v3  ;;  %1829 = vmatpush1.msra.mxu1 %v5592_v36  ;;  %7346 = vst [vmem:[#allocation142_spill] sm:$0xff] %v5595_v57  ;;  %7347 = vst [vmem:[#allocation143_spill] sm:$0xff] %v5598_v5  ;;  %v5601_v32 = vld [vmem:[#allocation14 + $0x2c0] sm:$0xff]  ;;  %v5604_v56 = vld [vmem:[#allocation14 + $0x2d0] sm:$0xff] }
 0x286   :  { %1759 = vmatprep.subr.mxu0 %v5595_v57  ;;  %1830 = vmatprep.subr.mxu1 %v5598_v5  ;;  %7348 = vst [vmem:[#allocation144_spill] sm:$0xff] %v5601_v32  ;;  %7349 = vst [vmem:[#allocation145_spill] sm:$0xff] %v5604_v56  ;;  %v5607_v3 = vld [vmem:[#allocation14 + $0x2a8] sm:$0xff]  ;;  %v5610_v36 = vld [vmem:[#allocation14 + $0x2b8] sm:$0xff] }
 0x287   :  { %1760 = vmatpush1.msra.mxu0 %v5601_v32  ;;  %1831 = vmatpush1.msra.mxu1 %v5604_v56  ;;  %7350 = vst [vmem:[#allocation146_spill] sm:$0xff] %v5607_v3  ;;  %7351 = vst [vmem:[#allocation147_spill] sm:$0xff] %v5610_v36  ;;  %v5613_v57 = vld [vmem:[#allocation14 + $0x2a0] sm:$0xff]  ;;  %v5616_v5 = vld [vmem:[#allocation14 + $0x2b0] sm:$0xff]  ;;  %v3804_v32 = vpop.eup %3803 }
 0x288   :  { %1761 = vmatprep.subr.mxu0 %v5607_v3  ;;  %1832 = vmatprep.subr.mxu1 %v5610_v36  ;;  %7352 = vst [vmem:[#allocation148_spill] sm:$0xff] %v5613_v57  ;;  %7353 = vst [vmem:[#allocation149_spill] sm:$0xff] %v5616_v5  ;;  %v5622_v56 = vld [vmem:[#allocation14 + $0x298] sm:$0xff]  ;;  %v5625_v3 = vld [vmem:[#allocation14 + $0x280] sm:$0xff] }
 0x289   :  { %1762 = vmatpush1.msra.mxu0 %v5613_v57  ;;  %1833 = vmatpush1.msra.mxu1 %v5616_v5  ;;  %7354 = vst [vmem:[#allocation150_spill] sm:$0xff] %v5619_v21  ;;  %7355 = vst [vmem:[#allocation151_spill] sm:$0xff] %v5622_v56  ;;  %v5628_v36 = vld [vmem:[#allocation14 + $0x290] sm:$0xff]  ;;  %v5631_v57 = vld [vmem:[#allocation14 + $0x268] sm:$0xff] }
 0x28a   :  { %1763 = vmatprep.subr.mxu0 %v5619_v21  ;;  %1834 = vmatprep.subr.mxu1 %v5622_v56  ;;  %7356 = vst [vmem:[#allocation152_spill] sm:$0xff] %v5625_v3  ;;  %7357 = vst [vmem:[#allocation153_spill] sm:$0xff] %v5628_v36  ;;  %v5634_v5 = vld [vmem:[#allocation14 + $0x278] sm:$0xff]  ;;  %v1574_v21 = vmul.f32 0.5, %v3804_v32  ;;  %v5637_v19 = vld [vmem:[#allocation14 + $0x260] sm:$0xff] }
 0x28b   :  { %1764 = vmatpush1.msra.mxu0 %v5625_v3  ;;  %1835 = vmatpush1.msra.mxu1 %v5628_v36  ;;  %7358 = vst [vmem:[#allocation154_spill] sm:$0xff] %v5631_v57  ;;  %7359 = vst [vmem:[#allocation155_spill] sm:$0xff] %v5634_v5  ;;  %v5640_v56 = vld [vmem:[#allocation14 + $0x270] sm:$0xff]  ;;  %v5643_v3 = vld [vmem:[#allocation14 + $0x248] sm:$0xff] }
 0x28c   :  { %1765 = vmatprep.subr.mxu0 %v5631_v57  ;;  %1836 = vmatprep.subr.mxu1 %v5634_v5  ;;  %7360 = vst [vmem:[#allocation156_spill] sm:$0xff] %v5637_v19  ;;  %7361 = vst [vmem:[#allocation157_spill] sm:$0xff] %v5640_v56  ;;  %v5646_v36 = vld [vmem:[#allocation14 + $0x258] sm:$0xff]  ;;  %v5649_v57 = vld [vmem:[#allocation14 + $0x240] sm:$0xff] }
 0x28d   :  { %1766 = vmatpush1.msra.mxu0 %v5637_v19  ;;  %1837 = vmatpush1.msra.mxu1 %v5640_v56  ;;  %7362 = vst [vmem:[#allocation158_spill] sm:$0xff] %v5643_v3  ;;  %7363 = vst [vmem:[#allocation159_spill] sm:$0xff] %v5646_v36  ;;  %v5652_v32 = vld [vmem:[#allocation14 + $0x250] sm:$0xff]  ;;  %v5655_v19 = vld [vmem:[#allocation14 + $0x228] sm:$0xff] }
 0x28e   :  { %1767 = vmatprep.subr.mxu0 %v5643_v3  ;;  %1838 = vmatprep.subr.mxu1 %v5646_v36  ;;  %7364 = vst [vmem:[#allocation160_spill] sm:$0xff] %v5649_v57  ;;  %7365 = vst [vmem:[#allocation161_spill] sm:$0xff] %v5652_v32  ;;  %v5658_v56 = vld [vmem:[#allocation14 + $0x238] sm:$0xff]  ;;  %v1575_v3 = vadd.f32 0.5, %v1574_v21  ;;  %v5661_v5 = vld [vmem:[#allocation14 + $0x220] sm:$0xff] }
 0x28f   :  { %1768 = vmatpush1.msra.mxu0 %v5649_v57  ;;  %1839 = vmatpush1.msra.mxu1 %v5652_v32  ;;  %7366 = vst [vmem:[#allocation162_spill] sm:$0xff] %v5655_v19  ;;  %7367 = vst [vmem:[#allocation163_spill] sm:$0xff] %v5661_v5  ;;  %v5664_v36 = vld [vmem:[#allocation14 + $0x230] sm:$0xff]  ;;  %v5667_v24 = vld [vmem:[#allocation14 + $0x208] sm:$0xff] }
 0x290   :  { %1769 = vmatprep.subr.mxu0 %v5655_v19  ;;  %1840 = vmatprep.subr.mxu1 %v5658_v56  ;;  %v5670_v32 = vld [vmem:[#allocation14 + $0x218] sm:$0xff]  ;;  %v5673_v19 = vld [vmem:[#allocation14 + $0x200] sm:$0xff] }
 0x291   :  { %1770 = vmatpush1.msra.mxu0 %v5661_v5  ;;  %1841 = vmatpush1.msra.mxu1 %v5664_v36  ;;  %v5677_v5 = vld [vmem:[#allocation14 + $0x210] sm:$0xff] }
 0x292   :  { %v3806_v57 = vpop.eup %3805  ;;  %1771 = vmatprep.subr.mxu0 %v5667_v24  ;;  %1842 = vmatprep.subr.mxu1 %v5670_v32 }
 0x293   :  { %1772 = vmatpush1.msra.mxu0 %v5673_v19  ;;  %1805 = vmatprep.mubr.f32.mxu0 %v7116_v61  ;;  %v1580_v21 = vmul.f32 %v3806_v57, %v1575_v3  ;;  %v7368_v57 = vld [vmem:[#allocation60_spill] sm:$0xff]  ;;  %v7369_v3 = vld [vmem:[#allocation61_spill] sm:$0xff] }
 0x294   :  { %1843 = vmatpush1.msra.mxu1 %v5677_v5  ;;  %1876 = vmatprep.mubr.f32.mxu1 %v7116_v61 }
 0x295   :  { %1584 = vst [vmem:[#allocation18 + $0x30] sm:$0xff] %v1580_v21  ;;  %1806 = vmatmul.mubr.f32.vlgmr.msra.gmra.mxu0 %v1580_v21  ;;  %1877 = vmatmul.mubr.f32.vlgmr.msra.gmra.mxu1 %v1580_v21  ;;  %v7370_v21 = vld [vmem:[#allocation62_spill] sm:$0xff] }
 0x296   :  { %1932 = vmatprep.subr.mxu0 %v5277_v38  ;;  %2003 = vmatprep.subr.mxu1 %v5280_v40 }
 0x297   :  { %1933 = vmatpush1.msra.mxu0 %v5283_v41  ;;  %2004 = vmatpush1.msra.mxu1 %v5286_v42 }
 0x298   :  { %1934 = vmatprep.subr.mxu0 %v5289_v0  ;;  %2005 = vmatprep.subr.mxu1 %v5292_v43 }
 0x299   :  { %1935 = vmatpush1.msra.mxu0 %v5295_v7  ;;  %2006 = vmatpush1.msra.mxu1 %v5298_v16 }
 0x29a   :  { %1936 = vmatprep.subr.mxu0 %v5301_v25  ;;  %2007 = vmatprep.subr.mxu1 %v5304_v34 }
 0x29b   :  { %1937 = vmatpush1.msra.mxu0 %v5307_v12  ;;  %2008 = vmatpush1.msra.mxu1 %v5310_v45 }
 0x29c   :  { %1938 = vmatprep.subr.mxu0 %v5313_v49  ;;  %2009 = vmatprep.subr.mxu1 %v5316_v60 }
 0x29d   :  { %1939 = vmatpush1.msra.mxu0 %v5319_v33  ;;  %2010 = vmatpush1.msra.mxu1 %v5322_v9 }
 0x29e   :  { %1940 = vmatprep.subr.mxu0 %v5325_v63  ;;  %2011 = vmatprep.subr.mxu1 %v5328_v20 }
 0x29f   :  { %1941 = vmatpush1.msra.mxu0 %v5331_v6  ;;  %2012 = vmatpush1.msra.mxu1 %v5334_v4 }
 0x2a0   :  { %1942 = vmatprep.subr.mxu0 %v5337_v11  ;;  %2013 = vmatprep.subr.mxu1 %v5340_v54 }
 0x2a1   :  { %1943 = vmatpush1.msra.mxu0 %v5343_v39  ;;  %2014 = vmatpush1.msra.mxu1 %v5346_v51 }
 0x2a2   :  { %1944 = vmatprep.subr.mxu0 %v5349_v47  ;;  %2015 = vmatprep.subr.mxu1 %v5352_v53  ;;  %v7400_v53 = vld [vmem:[#allocation32_spill] sm:$0xff] }
 0x2a3   :  { %1945 = vmatpush1.msra.mxu0 %v5355_v10  ;;  %2016 = vmatpush1.msra.mxu1 %v5358_v44 }
 0x2a4   :  { %1946 = vmatprep.subr.mxu0 %v5361_v15  ;;  %2017 = vmatprep.subr.mxu1 %v5364_v62  ;;  %v7371_v62 = vld [vmem:[#allocation63_spill] sm:$0xff] }
 0x2a5   :  { %1947 = vmatpush1.msra.mxu0 %v5367_v48  ;;  %2018 = vmatpush1.msra.mxu1 %v5370_v58  ;;  %v7372_v48 = vld [vmem:[#allocation64_spill] sm:$0xff]  ;;  %v7373_v58 = vld [vmem:[#allocation65_spill] sm:$0xff]  ;;  %v7398_v15 = vld [vmem:[#allocation31_spill] sm:$0xff] }
 0x2a6   :  { %1948 = vmatprep.subr.mxu0 %v5373_v1  ;;  %2019 = vmatprep.subr.mxu1 %v5376_v8  ;;  %v7374_v1 = vld [vmem:[#allocation66_spill] sm:$0xff]  ;;  %v7375_v8 = vld [vmem:[#allocation67_spill] sm:$0xff] }
 0x2a7   :  { %1949 = vmatpush1.msra.mxu0 %v5379_v59  ;;  %2020 = vmatpush1.msra.mxu1 %v5382_v26  ;;  %v7376_v59 = vld [vmem:[#allocation68_spill] sm:$0xff]  ;;  %v7377_v26 = vld [vmem:[#allocation69_spill] sm:$0xff] }
 0x2a8   :  { %1950 = vmatprep.subr.mxu0 %v5385_v46  ;;  %2021 = vmatprep.subr.mxu1 %v7368_v57  ;;  %v7378_v46 = vld [vmem:[#allocation70_spill] sm:$0xff]  ;;  %v7379_v57 = vld [vmem:[#allocation71_spill] sm:$0xff] }
 0x2a9   :  { %1951 = vmatpush1.msra.mxu0 %v7369_v3  ;;  %2022 = vmatpush1.msra.mxu1 %v7370_v21  ;;  %v7380_v3 = vld [vmem:[#allocation72_spill] sm:$0xff]  ;;  %v7381_v21 = vld [vmem:[#allocation73_spill] sm:$0xff] }
 0x2aa   :  { %1952 = vmatprep.subr.mxu0 %v7371_v62  ;;  %2023 = vmatprep.subr.mxu1 %v7372_v48  ;;  %v7382_v62 = vld [vmem:[#allocation74_spill] sm:$0xff]  ;;  %v7383_v48 = vld [vmem:[#allocation75_spill] sm:$0xff] }
 0x2ab   :  { %1953 = vmatpush1.msra.mxu0 %v7373_v58  ;;  %2024 = vmatpush1.msra.mxu1 %v7374_v1  ;;  %v7384_v58 = vld [vmem:[#allocation76_spill] sm:$0xff]  ;;  %v7385_v1 = vld [vmem:[#allocation77_spill] sm:$0xff] }
 0x2ac   :  { %1954 = vmatprep.subr.mxu0 %v7375_v8  ;;  %2025 = vmatprep.subr.mxu1 %v7376_v59  ;;  %v7386_v8 = vld [vmem:[#allocation78_spill] sm:$0xff]  ;;  %v7387_v59 = vld [vmem:[#allocation79_spill] sm:$0xff] }
 0x2ad   :  { %1955 = vmatpush1.msra.mxu0 %v7377_v26  ;;  %2026 = vmatpush1.msra.mxu1 %v7378_v46  ;;  %v7388_v26 = vld [vmem:[#allocation80_spill] sm:$0xff]  ;;  %v7389_v46 = vld [vmem:[#allocation81_spill] sm:$0xff] }
 0x2ae   :  { %1956 = vmatprep.subr.mxu0 %v7379_v57  ;;  %2027 = vmatprep.subr.mxu1 %v7380_v3  ;;  %v7390_v57 = vld [vmem:[#allocation82_spill] sm:$0xff]  ;;  %v7391_v3 = vld [vmem:[#allocation83_spill] sm:$0xff] }
 0x2af   :  { %1957 = vmatpush1.msra.mxu0 %v7381_v21  ;;  %2028 = vmatpush1.msra.mxu1 %v7382_v62  ;;  %v7392_v21 = vld [vmem:[#allocation84_spill] sm:$0xff]  ;;  %v7393_v62 = vld [vmem:[#allocation85_spill] sm:$0xff] }
 0x2b0   :  { %1958 = vmatprep.subr.mxu0 %v7383_v48  ;;  %2029 = vmatprep.subr.mxu1 %v7384_v58  ;;  %v7394_v48 = vld [vmem:[#allocation86_spill] sm:$0xff] }
 0x2b1   :  { %1959 = vmatpush1.msra.mxu0 %v7385_v1  ;;  %2030 = vmatpush1.msra.mxu1 %v7386_v8  ;;  %v7395_v8 = vld [vmem:[#allocation87_spill] sm:$0xff] }
 0x2b2   :  { %1960 = vmatprep.subr.mxu0 %v7387_v59  ;;  %2031 = vmatprep.subr.mxu1 %v7388_v26  ;;  %v7396_v59 = vld [vmem:[#allocation88_spill] sm:$0xff] }
 0x2b3   :  { %1961 = vmatpush1.msra.mxu0 %v7389_v46  ;;  %2032 = vmatpush1.msra.mxu1 %v7390_v57  ;;  %v7397_v46 = vld [vmem:[#allocation29_spill] sm:$0xff] }
 0x2b4   :  { %1962 = vmatprep.subr.mxu0 %v7391_v3  ;;  %2033 = vmatprep.subr.mxu1 %v7392_v21 }
 0x2b5   :  { %1963 = vmatpush1.msra.mxu0 %v7393_v62  ;;  %2034 = vmatpush1.msra.mxu1 %v7394_v48  ;;  %v7399_v62 = vld [vmem:[#allocation30_spill] sm:$0xff] }
 0x2b6   :  { %1996 = vmatprep.mubr.f32.mxu0 %v7116_v61  ;;  %2067 = vmatprep.mubr.f32.mxu1 %v7116_v61 }
 0x2b7   :  { %2083 = vmatprep.subr.mxu0 %v7395_v8  ;;  %2154 = vmatprep.subr.mxu1 %v7396_v59 }
 0x334   :  { %v1656_v26 = vpop.f32.mrf.mxu0  ;;  %v1727_v57 = vpop.f32.mrf.mxu1 }
 0x335   :  { %v1732_v1 = vadd.f32 %v1656_v26, %v7397_v46  ;;  %v1734_v44 = vadd.f32 %v1727_v57, %v7399_v62  ;;  %v7402_v57 = vld [vmem:[#allocation126_spill] sm:$0xff] }
 0x336   :  { %v1658_v58 = vpop.f32.mrf.mxu0  ;;  %v1729_v10 = vpop.f32.mrf.mxu1 }
 0x337   :  { %v1887_v3 = vmul.f32 0.5, %v1732_v1  ;;  %v1733_v21 = vadd.f32 %v1658_v58, %v7398_v15  ;;  %v1735_v47 = vadd.f32 %v1729_v10, %v7400_v53 }
 0x339   :  { %3807 = vtanh.f32 %v1887_v3  ;;  %v1891_v48 = vmul.f32 0.5, %v1733_v21  ;;  %v1896_v8 = vmul.f32 0.5, %v1735_v47 }
 0x33b   :  { %3809 = vtanh.f32 %v1891_v48  ;;  %v7401_v48 = vld [vmem:[#allocation124_spill] sm:$0xff] }
 0x33c   :  { %3811 = vtanh.f32 %v1734_v44 }
 0x33d   :  { %3813 = vtanh.f32 %v1896_v8  ;;  %v7403_v8 = vld [vmem:[#allocation125_spill] sm:$0xff] }
 0x346   :  { %v3808_v51 = vpop.eup %3807 }
 0x347   :  { %v1889_v59 = vmul.f32 0.5, %v3808_v51 }
 0x348   :  { %v3810_v39 = vpop.eup %3809 }
 0x349   :  { %v1890_v54 = vadd.f32 0.5, %v1889_v59  ;;  %v1893_v26 = vmul.f32 0.5, %v3810_v39  ;;  %v3812_v46 = vpop.eup %3811 }
 0x34a   :  { %v3814_v62 = vpop.eup %3813 }
 0x34b   :  { %v1894_v1 = vadd.f32 0.5, %v1893_v26  ;;  %v1901_v11 = vmul.f32 %v3812_v46, %v1890_v54  ;;  %v1898_v39 = vmul.f32 0.5, %v3814_v62  ;;  %v7404_v46 = vld [vmem:[#allocation127_spill] sm:$0xff] }
 0x34d   :  { %v1900_v15 = vmul.f32 %v1894_v1, %v5482_v17  ;;  %v1899_v17 = vadd.f32 0.5, %v1898_v39  ;;  %v7409_v39 = vld [vmem:[#allocation93_spill] sm:$0xff] }
 0x34f   :  { %v5754_v58 = vadd.f32 %v1901_v11, %v1900_v15 }
 0x351   :  { %3815 = vtanh.f32 %v5754_v58 }
 0x355   :  { %v1807_v44 = vpop.f32.mrf.mxu0  ;;  %v1878_v47 = vpop.f32.mrf.mxu1 }
 0x356   :  { %v1883_v53 = vadd.f32 %v1807_v44, %v7401_v48  ;;  %v1885_v3 = vadd.f32 %v1878_v47, %v7403_v8  ;;  %v7405_v48 = vld [vmem:[#allocation89_spill] sm:$0xff]  ;;  %v7406_v47 = vld [vmem:[#allocation90_spill] sm:$0xff] }
 0x357   :  { %v1809_v10 = vpop.f32.mrf.mxu0  ;;  %v1880_v21 = vpop.f32.mrf.mxu1 }
 0x358   :  { %v1905_v51 = vmul.f32 0.5, %v1883_v53  ;;  %v1884_v59 = vadd.f32 %v1809_v10, %v7402_v57  ;;  %v1886_v1 = vadd.f32 %v1880_v21, %v7404_v46  ;;  %v7407_v10 = vld [vmem:[#allocation91_spill] sm:$0xff]  ;;  %v7412_v21 = vld [vmem:[#allocation130_spill] sm:$0xff] }
 0x35a   :  { %3817 = vtanh.f32 %v1905_v51  ;;  %v1909_v54 = vmul.f32 0.5, %v1884_v59  ;;  %v1914_v15 = vmul.f32 0.5, %v1886_v1  ;;  %v7408_v59 = vld [vmem:[#allocation92_spill] sm:$0xff] }
 0x35b   :  { %v7414_v1 = vld [vmem:[#allocation132_spill] sm:$0xff] }
 0x35c   :  { %3819 = vtanh.f32 %v1909_v54 }
 0x35d   :  { %3821 = vtanh.f32 %v1885_v3  ;;  %v7410_v3 = vld [vmem:[#allocation128_spill] sm:$0xff] }
 0x35e   :  { %v3816_v11 = vpop.eup %3815  ;;  %3823 = vtanh.f32 %v1914_v15  ;;  %v7415_v15 = vld [vmem:[#allocation133_spill] sm:$0xff] }
 0x35f   :  { %v1904_v26 = vmul.f32 %v3816_v11, %v1899_v17  ;;  %v7411_v11 = vld [vmem:[#allocation129_spill] sm:$0xff] }
 0x361   :  { %1924 = vst [vmem:[#allocation17 + $0x10] sm:$0xff] %v1904_v26  ;;  %1997 = vmatmul.mubr.f32.vlgmr.msra.gmra.mxu0 %v1904_v26  ;;  %2068 = vmatmul.mubr.f32.vlgmr.msra.gmra.mxu1 %v1904_v26  ;;  %v7413_v26 = vld [vmem:[#allocation131_spill] sm:$0xff] }
 0x362   :  { %2084 = vmatpush1.msra.mxu0 %v5489_v50  ;;  %2155 = vmatpush1.msra.mxu1 %v5492_v29 }
 0x363   :  { %2085 = vmatprep.subr.mxu0 %v5495_v35  ;;  %2156 = vmatprep.subr.mxu1 %v5498_v52 }
 0x364   :  { %2086 = vmatpush1.msra.mxu0 %v5501_v13  ;;  %2157 = vmatpush1.msra.mxu1 %v5504_v55 }
 0x365   :  { %2087 = vmatprep.subr.mxu0 %v5507_v28  ;;  %2158 = vmatprep.subr.mxu1 %v5510_v22 }
 0x366   :  { %2088 = vmatpush1.msra.mxu0 %v5513_v14  ;;  %2159 = vmatpush1.msra.mxu1 %v5516_v23 }
 0x367   :  { %v3818_v44 = vpop.eup %3817  ;;  %2089 = vmatprep.subr.mxu0 %v5519_v27  ;;  %2160 = vmatprep.subr.mxu1 %v5522_v31 }
 0x368   :  { %v1907_v62 = vmul.f32 0.5, %v3818_v44  ;;  %2090 = vmatpush1.msra.mxu0 %v5525_v37  ;;  %2161 = vmatpush1.msra.mxu1 %v7405_v48  ;;  %v7416_v44 = vld [vmem:[#allocation134_spill] sm:$0xff] }
 0x369   :  { %v3820_v53 = vpop.eup %3819  ;;  %2091 = vmatprep.subr.mxu0 %v7406_v47  ;;  %2162 = vmatprep.subr.mxu1 %v7407_v10 }
 0x36a   :  { %v1908_v51 = vadd.f32 0.5, %v1907_v62  ;;  %v1911_v57 = vmul.f32 0.5, %v3820_v53  ;;  %2092 = vmatpush1.msra.mxu0 %v7408_v59  ;;  %2163 = vmatpush1.msra.mxu1 %v7409_v39  ;;  %v3822_v8 = vpop.eup %3821  ;;  %v7417_v62 = vld [vmem:[#allocation135_spill] sm:$0xff] }
 0x36b   :  { %2093 = vmatprep.subr.mxu0 %v5543_v2  ;;  %2164 = vmatprep.subr.mxu1 %v7410_v3 }
 0x36c   :  { %v1912_v54 = vadd.f32 0.5, %v1911_v57  ;;  %v1919_v17 = vmul.f32 %v3822_v8, %v1908_v51  ;;  %2094 = vmatpush1.msra.mxu0 %v5549_v18  ;;  %2165 = vmatpush1.msra.mxu1 %v7411_v11  ;;  %v7418_v51 = vld [vmem:[#allocation136_spill] sm:$0xff]  ;;  %v7419_v57 = vld [vmem:[#allocation137_spill] sm:$0xff]  ;;  %v7420_v8 = vld [vmem:[#allocation138_spill] sm:$0xff] }
 0x36d   :  { %2095 = vmatprep.subr.mxu0 %v7412_v21  ;;  %2166 = vmatprep.subr.mxu1 %v7413_v26  ;;  %v7421_v21 = vld [vmem:[#allocation139_spill] sm:$0xff] }
 0x36e   :  { %v1918_v46 = vmul.f32 %v1912_v54, %v5574_v30  ;;  %2096 = vmatpush1.msra.mxu0 %v7414_v1  ;;  %2167 = vmatpush1.msra.mxu1 %v7415_v15  ;;  %v7422_v30 = vld [vmem:[#allocation140_spill] sm:$0xff]  ;;  %v7423_v54 = vld [vmem:[#allocation141_spill] sm:$0xff]  ;;  %v7424_v15 = vld [vmem:[#allocation142_spill] sm:$0xff] }
 0x36f   :  { %2097 = vmatprep.subr.mxu0 %v7416_v44  ;;  %2168 = vmatprep.subr.mxu1 %v7417_v62  ;;  %v7425_v44 = vld [vmem:[#allocation143_spill] sm:$0xff]  ;;  %v3824_v62 = vpop.eup %3823  ;;  %v7438_v1 = vld [vmem:[#allocation156_spill] sm:$0xff] }
 0x370   :  { %v5790_v53 = vadd.f32 %v1919_v17, %v1918_v46  ;;  %2098 = vmatpush1.msra.mxu0 %v7418_v51  ;;  %2169 = vmatpush1.msra.mxu1 %v7419_v57  ;;  %v7426_v17 = vld [vmem:[#allocation144_spill] sm:$0xff]  ;;  %v7427_v46 = vld [vmem:[#allocation145_spill] sm:$0xff]  ;;  %v7428_v51 = vld [vmem:[#allocation146_spill] sm:$0xff] }
 0x371   :  { %2099 = vmatprep.subr.mxu0 %v7420_v8  ;;  %2170 = vmatprep.subr.mxu1 %v7421_v21  ;;  %v7429_v57 = vld [vmem:[#allocation147_spill] sm:$0xff]  ;;  %v7430_v8 = vld [vmem:[#allocation148_spill] sm:$0xff]  ;;  %v7431_v21 = vld [vmem:[#allocation149_spill] sm:$0xff] }
 0x372   :  { %3825 = vtanh.f32 %v5790_v53  ;;  %2100 = vmatpush1.msra.mxu0 %v7422_v30  ;;  %2171 = vmatpush1.msra.mxu1 %v7423_v54  ;;  %v7432_v30 = vld [vmem:[#allocation150_spill] sm:$0xff]  ;;  %v7433_v54 = vld [vmem:[#allocation151_spill] sm:$0xff] }
 0x373   :  { %2101 = vmatprep.subr.mxu0 %v7424_v15  ;;  %2172 = vmatprep.subr.mxu1 %v7425_v44  ;;  %v7434_v15 = vld [vmem:[#allocation152_spill] sm:$0xff]  ;;  %v7435_v44 = vld [vmem:[#allocation153_spill] sm:$0xff] }
 0x374   :  { %2102 = vmatpush1.msra.mxu0 %v7426_v17  ;;  %2173 = vmatpush1.msra.mxu1 %v7427_v46  ;;  %v7436_v17 = vld [vmem:[#allocation154_spill] sm:$0xff]  ;;  %v7437_v46 = vld [vmem:[#allocation155_spill] sm:$0xff] }
 0x375   :  { %2103 = vmatprep.subr.mxu0 %v7428_v51  ;;  %2174 = vmatprep.subr.mxu1 %v7429_v57  ;;  %v1916_v51 = vmul.f32 0.5, %v3824_v62  ;;  %v7439_v57 = vld [vmem:[#allocation157_spill] sm:$0xff] }
 0x376   :  { %2104 = vmatpush1.msra.mxu0 %v7430_v8  ;;  %2175 = vmatpush1.msra.mxu1 %v7431_v21  ;;  %v7440_v8 = vld [vmem:[#allocation158_spill] sm:$0xff]  ;;  %v7441_v21 = vld [vmem:[#allocation159_spill] sm:$0xff] }
 0x377   :  { %2105 = vmatprep.subr.mxu0 %v7432_v30  ;;  %2176 = vmatprep.subr.mxu1 %v7433_v54  ;;  %v7442_v30 = vld [vmem:[#allocation160_spill] sm:$0xff]  ;;  %v7443_v54 = vld [vmem:[#allocation161_spill] sm:$0xff] }
 0x378   :  { %2106 = vmatpush1.msra.mxu0 %v7434_v15  ;;  %2177 = vmatpush1.msra.mxu1 %v7435_v44  ;;  %v7444_v15 = vld [vmem:[#allocation162_spill] sm:$0xff]  ;;  %v7445_v44 = vld [vmem:[#allocation163_spill] sm:$0xff] }
 0x379   :  { %2107 = vmatprep.subr.mxu0 %v7436_v17  ;;  %2178 = vmatprep.subr.mxu1 %v7437_v46  ;;  %v1917_v17 = vadd.f32 0.5, %v1916_v51  ;;  %v7466_v51 = vld [vmem:[#allocation63_spill] sm:$0xff] }
 0x37a   :  { %2108 = vmatpush1.msra.mxu0 %v7438_v1  ;;  %2179 = vmatpush1.msra.mxu1 %v7439_v57 }
 0x37b   :  { %2109 = vmatprep.subr.mxu0 %v7440_v8  ;;  %2180 = vmatprep.subr.mxu1 %v7441_v21 }
 0x37c   :  { %2110 = vmatpush1.msra.mxu0 %v7442_v30  ;;  %2181 = vmatpush1.msra.mxu1 %v7443_v54 }
 0x37d   :  { %2111 = vmatprep.subr.mxu0 %v7444_v15  ;;  %2182 = vmatprep.subr.mxu1 %v5658_v56 }
 0x37e   :  { %2112 = vmatpush1.msra.mxu0 %v7445_v44  ;;  %2183 = vmatpush1.msra.mxu1 %v5664_v36 }
 0x37f   :  { %v3826_v62 = vpop.eup %3825  ;;  %2113 = vmatprep.subr.mxu0 %v5667_v24  ;;  %2184 = vmatprep.subr.mxu1 %v5670_v32 }
 0x380   :  { %2114 = vmatpush1.msra.mxu0 %v5673_v19  ;;  %2147 = vmatprep.mubr.f32.mxu0 %v7116_v61  ;;  %v1922_v30 = vmul.f32 %v3826_v62, %v1917_v17  ;;  %v7468_v17 = vld [vmem:[#allocation65_spill] sm:$0xff]  ;;  %v7469_v62 = vld [vmem:[#allocation66_spill] sm:$0xff] }
 0x381   :  { %2185 = vmatpush1.msra.mxu1 %v5677_v5  ;;  %2218 = vmatprep.mubr.f32.mxu1 %v7116_v61 }
 0x382   :  { %1926 = vst [vmem:[#allocation18 + $0x28] sm:$0xff] %v1922_v30  ;;  %2148 = vmatmul.mubr.f32.vlgmr.msra.gmra.mxu0 %v1922_v30  ;;  %2219 = vmatmul.mubr.f32.vlgmr.msra.gmra.mxu1 %v1922_v30  ;;  %v7467_v30 = vld [vmem:[#allocation64_spill] sm:$0xff] }
 0x383   :  { %2274 = vmatprep.subr.mxu0 %v5277_v38  ;;  %2345 = vmatprep.subr.mxu1 %v5280_v40  ;;  %v7446_v38 = vld [vmem:[#allocation43_spill] sm:$0xff]  ;;  %v7447_v40 = vld [vmem:[#allocation44_spill] sm:$0xff] }
 0x384   :  { %2275 = vmatpush1.msra.mxu0 %v5283_v41  ;;  %2346 = vmatpush1.msra.mxu1 %v5286_v42  ;;  %v7448_v41 = vld [vmem:[#allocation45_spill] sm:$0xff]  ;;  %v7449_v42 = vld [vmem:[#allocation46_spill] sm:$0xff] }
 0x385   :  { %2276 = vmatprep.subr.mxu0 %v5289_v0  ;;  %2347 = vmatprep.subr.mxu1 %v5292_v43  ;;  %v7450_v0 = vld [vmem:[#allocation47_spill] sm:$0xff]  ;;  %v7451_v43 = vld [vmem:[#allocation48_spill] sm:$0xff] }
 0x386   :  { %2277 = vmatpush1.msra.mxu0 %v5295_v7  ;;  %2348 = vmatpush1.msra.mxu1 %v5298_v16  ;;  %v7452_v7 = vld [vmem:[#allocation49_spill] sm:$0xff]  ;;  %v7453_v16 = vld [vmem:[#allocation50_spill] sm:$0xff] }
 0x387   :  { %2278 = vmatprep.subr.mxu0 %v5301_v25  ;;  %2349 = vmatprep.subr.mxu1 %v5304_v34  ;;  %v7454_v25 = vld [vmem:[#allocation51_spill] sm:$0xff]  ;;  %v7455_v34 = vld [vmem:[#allocation52_spill] sm:$0xff] }
 0x388   :  { %2279 = vmatpush1.msra.mxu0 %v5307_v12  ;;  %2350 = vmatpush1.msra.mxu1 %v5310_v45  ;;  %v7456_v12 = vld [vmem:[#allocation53_spill] sm:$0xff]  ;;  %v7457_v45 = vld [vmem:[#allocation54_spill] sm:$0xff] }
 0x389   :  { %2280 = vmatprep.subr.mxu0 %v5313_v49  ;;  %2351 = vmatprep.subr.mxu1 %v5316_v60  ;;  %v7458_v49 = vld [vmem:[#allocation55_spill] sm:$0xff]  ;;  %v7459_v60 = vld [vmem:[#allocation56_spill] sm:$0xff] }
 0x38a   :  { %2281 = vmatpush1.msra.mxu0 %v5319_v33  ;;  %2352 = vmatpush1.msra.mxu1 %v5322_v9  ;;  %v7460_v33 = vld [vmem:[#allocation57_spill] sm:$0xff]  ;;  %v7461_v9 = vld [vmem:[#allocation58_spill] sm:$0xff] }
 0x38b   :  { %2282 = vmatprep.subr.mxu0 %v5325_v63  ;;  %2353 = vmatprep.subr.mxu1 %v5328_v20  ;;  %v7462_v63 = vld [vmem:[#allocation59_spill] sm:$0xff]  ;;  %v7463_v20 = vld [vmem:[#allocation60_spill] sm:$0xff] }
 0x38c   :  { %2283 = vmatpush1.msra.mxu0 %v5331_v6  ;;  %2354 = vmatpush1.msra.mxu1 %v5334_v4  ;;  %v7464_v6 = vld [vmem:[#allocation61_spill] sm:$0xff]  ;;  %v7465_v4 = vld [vmem:[#allocation62_spill] sm:$0xff] }
 0x38d   :  { %2284 = vmatprep.subr.mxu0 %v7446_v38  ;;  %2355 = vmatprep.subr.mxu1 %v7447_v40  ;;  %v7470_v38 = vld [vmem:[#allocation67_spill] sm:$0xff]  ;;  %v7471_v40 = vld [vmem:[#allocation68_spill] sm:$0xff] }
 0x38e   :  { %2285 = vmatpush1.msra.mxu0 %v7448_v41  ;;  %2356 = vmatpush1.msra.mxu1 %v7449_v42  ;;  %v7472_v41 = vld [vmem:[#allocation69_spill] sm:$0xff]  ;;  %v7473_v42 = vld [vmem:[#allocation70_spill] sm:$0xff] }
 0x38f   :  { %2286 = vmatprep.subr.mxu0 %v7450_v0  ;;  %2357 = vmatprep.subr.mxu1 %v7451_v43  ;;  %v7474_v0 = vld [vmem:[#allocation71_spill] sm:$0xff]  ;;  %v7475_v43 = vld [vmem:[#allocation72_spill] sm:$0xff] }
 0x390   :  { %2287 = vmatpush1.msra.mxu0 %v7452_v7  ;;  %2358 = vmatpush1.msra.mxu1 %v7453_v16  ;;  %v7476_v7 = vld [vmem:[#allocation73_spill] sm:$0xff]  ;;  %v7477_v16 = vld [vmem:[#allocation74_spill] sm:$0xff] }
 0x391   :  { %2288 = vmatprep.subr.mxu0 %v7454_v25  ;;  %2359 = vmatprep.subr.mxu1 %v7455_v34  ;;  %v7478_v25 = vld [vmem:[#allocation75_spill] sm:$0xff]  ;;  %v7479_v34 = vld [vmem:[#allocation76_spill] sm:$0xff] }
 0x392   :  { %2289 = vmatpush1.msra.mxu0 %v7456_v12  ;;  %2360 = vmatpush1.msra.mxu1 %v7457_v45  ;;  %v7480_v12 = vld [vmem:[#allocation77_spill] sm:$0xff]  ;;  %v7481_v45 = vld [vmem:[#allocation78_spill] sm:$0xff] }
 0x393   :  { %2290 = vmatprep.subr.mxu0 %v7458_v49  ;;  %2361 = vmatprep.subr.mxu1 %v7459_v60  ;;  %v7482_v49 = vld [vmem:[#allocation79_spill] sm:$0xff]  ;;  %v7483_v60 = vld [vmem:[#allocation80_spill] sm:$0xff] }
 0x394   :  { %2291 = vmatpush1.msra.mxu0 %v7460_v33  ;;  %2362 = vmatpush1.msra.mxu1 %v7461_v9  ;;  %v7484_v33 = vld [vmem:[#allocation81_spill] sm:$0xff]  ;;  %v7485_v9 = vld [vmem:[#allocation82_spill] sm:$0xff] }
 0x395   :  { %2292 = vmatprep.subr.mxu0 %v7462_v63  ;;  %2363 = vmatprep.subr.mxu1 %v7463_v20  ;;  %v7486_v63 = vld [vmem:[#allocation83_spill] sm:$0xff]  ;;  %v7487_v20 = vld [vmem:[#allocation84_spill] sm:$0xff] }
 0x396   :  { %2293 = vmatpush1.msra.mxu0 %v7464_v6  ;;  %2364 = vmatpush1.msra.mxu1 %v7465_v4  ;;  %v7488_v6 = vld [vmem:[#allocation85_spill] sm:$0xff]  ;;  %v7489_v4 = vld [vmem:[#allocation86_spill] sm:$0xff] }
 0x397   :  { %2294 = vmatprep.subr.mxu0 %v7466_v51  ;;  %2365 = vmatprep.subr.mxu1 %v7467_v30  ;;  %v7490_v51 = vld [vmem:[#allocation87_spill] sm:$0xff]  ;;  %v7491_v30 = vld [vmem:[#allocation88_spill] sm:$0xff] }
 0x398   :  { %2295 = vmatpush1.msra.mxu0 %v7468_v17  ;;  %2366 = vmatpush1.msra.mxu1 %v7469_v62  ;;  %v7492_v62 = vld [vmem:[#allocation33_spill] sm:$0xff] }
 0x399   :  { %2296 = vmatprep.subr.mxu0 %v7470_v38  ;;  %2367 = vmatprep.subr.mxu1 %v7471_v40 }
 0x39a   :  { %2297 = vmatpush1.msra.mxu0 %v7472_v41  ;;  %2368 = vmatpush1.msra.mxu1 %v7473_v42 }
 0x39b   :  { %2298 = vmatprep.subr.mxu0 %v7474_v0  ;;  %2369 = vmatprep.subr.mxu1 %v7475_v43  ;;  %v7493_v0 = vld [vmem:[#allocation35_spill] sm:$0xff] }
 0x39c   :  { %2299 = vmatpush1.msra.mxu0 %v7476_v7  ;;  %2370 = vmatpush1.msra.mxu1 %v7477_v16  ;;  %v7494_v7 = vld [vmem:[#allocation34_spill] sm:$0xff] }
 0x39d   :  { %2300 = vmatprep.subr.mxu0 %v7478_v25  ;;  %2371 = vmatprep.subr.mxu1 %v7479_v34 }
 0x39e   :  { %2301 = vmatpush1.msra.mxu0 %v7480_v12  ;;  %2372 = vmatpush1.msra.mxu1 %v7481_v45  ;;  %v7495_v12 = vld [vmem:[#allocation36_spill] sm:$0xff] }
 0x39f   :  { %2302 = vmatprep.subr.mxu0 %v7482_v49  ;;  %2373 = vmatprep.subr.mxu1 %v7483_v60 }
 0x3a0   :  { %2303 = vmatpush1.msra.mxu0 %v7484_v33  ;;  %2374 = vmatpush1.msra.mxu1 %v7485_v9 }
 0x3a1   :  { %2304 = vmatprep.subr.mxu0 %v7486_v63  ;;  %2375 = vmatprep.subr.mxu1 %v7487_v20 }
 0x3a2   :  { %2305 = vmatpush1.msra.mxu0 %v7488_v6  ;;  %2376 = vmatpush1.msra.mxu1 %v7489_v4 }
 0x3a3   :  { %2338 = vmatprep.mubr.f32.mxu0 %v7116_v61  ;;  %2409 = vmatprep.mubr.f32.mxu1 %v7116_v61 }
 0x3a4   :  { %2425 = vmatprep.subr.mxu0 %v7490_v51  ;;  %2496 = vmatprep.subr.mxu1 %v7491_v30 }
 0x421   :  { %v1998_v17 = vpop.f32.mrf.mxu0  ;;  %v2069_v40 = vpop.f32.mrf.mxu1 }
 0x422   :  { %v2074_v38 = vadd.f32 %v1998_v17, %v7492_v62  ;;  %v2076_v16 = vadd.f32 %v2069_v40, %v7494_v7  ;;  %v7496_v40 = vld [vmem:[#allocation120_spill] sm:$0xff]  ;;  %v7497_v7 = vld [vmem:[#allocation122_spill] sm:$0xff] }
 0x423   :  { %v2000_v41 = vpop.f32.mrf.mxu0  ;;  %v2071_v34 = vpop.f32.mrf.mxu1 }
 0x424   :  { %v2229_v42 = vmul.f32 0.5, %v2074_v38  ;;  %v2075_v43 = vadd.f32 %v2000_v41, %v7493_v0  ;;  %v2077_v45 = vadd.f32 %v2071_v34, %v7495_v12  ;;  %v7498_v34 = vld [vmem:[#allocation121_spill] sm:$0xff] }
 0x426   :  { %3827 = vtanh.f32 %v2229_v42  ;;  %v2233_v25 = vmul.f32 0.5, %v2075_v43  ;;  %v2238_v49 = vmul.f32 0.5, %v2077_v45 }
 0x428   :  { %3829 = vtanh.f32 %v2233_v25 }
 0x429   :  { %3831 = vtanh.f32 %v2076_v16 }
 0x42a   :  { %3833 = vtanh.f32 %v2238_v49 }
 0x433   :  { %v3828_v60 = vpop.eup %3827 }
 0x434   :  { %v2231_v33 = vmul.f32 0.5, %v3828_v60 }
 0x435   :  { %v3830_v9 = vpop.eup %3829 }
 0x436   :  { %v2232_v63 = vadd.f32 0.5, %v2231_v33  ;;  %v2235_v20 = vmul.f32 0.5, %v3830_v9  ;;  %v3832_v6 = vpop.eup %3831  ;;  %v7499_v9 = vld [vmem:[#allocation123_spill] sm:$0xff] }
 0x437   :  { %v3834_v38 = vpop.eup %3833 }
 0x438   :  { %v2236_v4 = vadd.f32 0.5, %v2235_v20  ;;  %v2243_v51 = vmul.f32 %v3832_v6, %v2232_v63  ;;  %v2240_v25 = vmul.f32 0.5, %v3834_v38  ;;  %v7514_v6 = vld [vmem:[#allocation145_spill] sm:$0xff] }
 0x43a   :  { %v2242_v30 = vmul.f32 %v2236_v4, %v5754_v58  ;;  %v2241_v58 = vadd.f32 0.5, %v2240_v25  ;;  %v7515_v4 = vld [vmem:[#allocation146_spill] sm:$0xff] }
 0x43c   :  { %v5902_v17 = vadd.f32 %v2243_v51, %v2242_v30  ;;  %v7516_v51 = vld [vmem:[#allocation147_spill] sm:$0xff]  ;;  %v7517_v30 = vld [vmem:[#allocation148_spill] sm:$0xff] }
 0x43e   :  { %3835 = vtanh.f32 %v5902_v17 }
 0x442   :  { %v2149_v62 = vpop.f32.mrf.mxu0  ;;  %v2220_v42 = vpop.f32.mrf.mxu1 }
 0x443   :  { %v2225_v41 = vadd.f32 %v2149_v62, %v7496_v40  ;;  %v2227_v12 = vadd.f32 %v2220_v42, %v7498_v34  ;;  %v7518_v62 = vld [vmem:[#allocation149_spill] sm:$0xff]  ;;  %v7519_v40 = vld [vmem:[#allocation150_spill] sm:$0xff]  ;;  %v7521_v42 = vld [vmem:[#allocation152_spill] sm:$0xff] }
 0x444   :  { %v2151_v0 = vpop.f32.mrf.mxu0  ;;  %v2222_v60 = vpop.f32.mrf.mxu1  ;;  %v6013_v34 = vld [vmem:[#allocation14 + $0x188] sm:$0xff] }
 0x445   :  { %v2247_v43 = vmul.f32 0.5, %v2225_v41  ;;  %v2226_v16 = vadd.f32 %v2151_v0, %v7497_v7  ;;  %v2228_v63 = vadd.f32 %v2222_v60, %v7499_v9  ;;  %v7520_v41 = vld [vmem:[#allocation151_spill] sm:$0xff]  ;;  %v7522_v0 = vld [vmem:[#allocation153_spill] sm:$0xff]  ;;  %v6034_v9 = vld [vmem:[#allocation14 + $0x170] sm:$0xff] }
 0x446   :  { %v6028_v60 = vld [vmem:[#allocation14 + $0x178] sm:$0xff] }
 0x447   :  { %3837 = vtanh.f32 %v2247_v43  ;;  %v2251_v45 = vmul.f32 0.5, %v2226_v16  ;;  %v2256_v20 = vmul.f32 0.5, %v2228_v63  ;;  %v7523_v43 = vld [vmem:[#allocation154_spill] sm:$0xff]  ;;  %v7524_v16 = vld [vmem:[#allocation160_spill] sm:$0xff]  ;;  %v6037_v63 = vld [vmem:[#allocation14 + $0x148] sm:$0xff] }
 0x449   :  { %3839 = vtanh.f32 %v2251_v45  ;;  %v6019_v45 = vld [vmem:[#allocation14 + $0x180] sm:$0xff] }
 0x44a   :  { %3841 = vtanh.f32 %v2227_v12  ;;  %v6016_v12 = vld [vmem:[#allocation14 + $0x198] sm:$0xff] }
 0x44b   :  { %v3836_v49 = vpop.eup %3835  ;;  %3843 = vtanh.f32 %v2256_v20  ;;  %v6040_v20 = vld [vmem:[#allocation14 + $0x158] sm:$0xff] }
 0x44c   :  { %v2246_v33 = vmul.f32 %v3836_v49, %v2241_v58  ;;  %v6022_v58 = vld [vmem:[#allocation14 + $0x190] sm:$0xff]  ;;  %v6025_v49 = vld [vmem:[#allocation14 + $0x168] sm:$0xff] }
 0x44e   :  { %2266 = vst [vmem:[#allocation17 + $0x18] sm:$0xff] %v2246_v33  ;;  %2339 = vmatmul.mubr.f32.vlgmr.msra.gmra.mxu0 %v2246_v33  ;;  %2410 = vmatmul.mubr.f32.vlgmr.msra.gmra.mxu1 %v2246_v33  ;;  %v6031_v33 = vld [vmem:[#allocation14 + $0x160] sm:$0xff] }
 0x44f   :  { %2426 = vmatpush1.msra.mxu0 %v5489_v50  ;;  %2497 = vmatpush1.msra.mxu1 %v5492_v29 }
 0x450   :  { %2427 = vmatprep.subr.mxu0 %v5495_v35  ;;  %2498 = vmatprep.subr.mxu1 %v5498_v52 }
 0x451   :  { %2428 = vmatpush1.msra.mxu0 %v5501_v13  ;;  %2499 = vmatpush1.msra.mxu1 %v5504_v55 }
 0x452   :  { %2429 = vmatprep.subr.mxu0 %v5507_v28  ;;  %2500 = vmatprep.subr.mxu1 %v5510_v22 }
 0x453   :  { %2430 = vmatpush1.msra.mxu0 %v5513_v14  ;;  %2501 = vmatpush1.msra.mxu1 %v5516_v23  ;;  %v7500_v14 = vld [vmem:[#allocation130_spill] sm:$0xff] }
 0x454   :  { %v3838_v50 = vpop.eup %3837  ;;  %2431 = vmatprep.subr.mxu0 %v5519_v27  ;;  %2502 = vmatprep.subr.mxu1 %v5522_v31  ;;  %v7501_v27 = vld [vmem:[#allocation132_spill] sm:$0xff]  ;;  %v7502_v31 = vld [vmem:[#allocation133_spill] sm:$0xff] }
 0x455   :  { %v2249_v29 = vmul.f32 0.5, %v3838_v50  ;;  %2432 = vmatpush1.msra.mxu0 %v5525_v37  ;;  %2503 = vmatpush1.msra.mxu1 %v7405_v48  ;;  %v7503_v37 = vld [vmem:[#allocation134_spill] sm:$0xff]  ;;  %v6043_v50 = vld [vmem:[#allocation14 + $0x140] sm:$0xff] }
 0x456   :  { %v3840_v35 = vpop.eup %3839  ;;  %2433 = vmatprep.subr.mxu0 %v7406_v47  ;;  %2504 = vmatprep.subr.mxu1 %v7407_v10  ;;  %v7505_v47 = vld [vmem:[#allocation136_spill] sm:$0xff]  ;;  %v7507_v10 = vld [vmem:[#allocation138_spill] sm:$0xff] }
 0x457   :  { %v2250_v52 = vadd.f32 0.5, %v2249_v29  ;;  %v2253_v13 = vmul.f32 0.5, %v3840_v35  ;;  %2434 = vmatpush1.msra.mxu0 %v7408_v59  ;;  %2505 = vmatpush1.msra.mxu1 %v7409_v39  ;;  %v3842_v55 = vpop.eup %3841  ;;  %v7508_v59 = vld [vmem:[#allocation139_spill] sm:$0xff]  ;;  %v7509_v39 = vld [vmem:[#allocation140_spill] sm:$0xff]  ;;  %v6046_v29 = vld [vmem:[#allocation14 + $0x150] sm:$0xff] }
 0x458   :  { %2435 = vmatprep.subr.mxu0 %v5543_v2  ;;  %2506 = vmatprep.subr.mxu1 %v7410_v3  ;;  %v7504_v2 = vld [vmem:[#allocation135_spill] sm:$0xff]  ;;  %v7510_v3 = vld [vmem:[#allocation141_spill] sm:$0xff]  ;;  %v3844_v38 = vpop.eup %3843 }
 0x459   :  { %v2254_v28 = vadd.f32 0.5, %v2253_v13  ;;  %v2261_v22 = vmul.f32 %v3842_v55, %v2250_v52  ;;  %2436 = vmatpush1.msra.mxu0 %v5549_v18  ;;  %2507 = vmatpush1.msra.mxu1 %v7411_v11  ;;  %v7506_v18 = vld [vmem:[#allocation137_spill] sm:$0xff]  ;;  %v7511_v11 = vld [vmem:[#allocation142_spill] sm:$0xff]  ;;  %v2258_v7 = vmul.f32 0.5, %v3844_v38  ;;  %v6052_v52 = vld [vmem:[#allocation14 + $0x138] sm:$0xff] }
 0x45a   :  { %2437 = vmatprep.subr.mxu0 %v7500_v14  ;;  %2508 = vmatprep.subr.mxu1 %v7413_v26  ;;  %v7512_v26 = vld [vmem:[#allocation143_spill] sm:$0xff]  ;;  %v6049_v35 = vld [vmem:[#allocation14 + $0x128] sm:$0xff]  ;;  %7526 = vst [vmem:[#allocation31_spill] sm:$0xff] %v6052_v52  ;;  %v6055_v13 = vld [vmem:[#allocation14 + $0x120] sm:$0xff] }
 0x45b   :  { %v2260_v23 = vmul.f32 %v2254_v28, %v5790_v53  ;;  %2438 = vmatpush1.msra.mxu0 %v7501_v27  ;;  %2509 = vmatpush1.msra.mxu1 %v7502_v31  ;;  %v7513_v53 = vld [vmem:[#allocation144_spill] sm:$0xff]  ;;  %v2259_v25 = vadd.f32 0.5, %v2258_v7  ;;  %7525 = vst [vmem:[#allocation29_spill] sm:$0xff] %v6049_v35  ;;  %7527 = vst [vmem:[#allocation30_spill] sm:$0xff] %v6055_v13  ;;  %v6058_v55 = vld [vmem:[#allocation14 + $0x130] sm:$0xff] }
 0x45c   :  { %2439 = vmatprep.subr.mxu0 %v7503_v37  ;;  %2510 = vmatprep.subr.mxu1 %v7504_v2  ;;  %7528 = vst [vmem:[#allocation32_spill] sm:$0xff] %v6058_v55  ;;  %v6061_v28 = vld [vmem:[#allocation14 + $0x108] sm:$0xff]  ;;  %v6067_v14 = vld [vmem:[#allocation14 + $0x100] sm:$0xff]  ;;  %v6076_v31 = vld [vmem:[#allocation14 + $0xf8] sm:$0xff] }
 0x45d   :  { %v5938_v48 = vadd.f32 %v2261_v22, %v2260_v23  ;;  %2440 = vmatpush1.msra.mxu0 %v7505_v47  ;;  %2511 = vmatpush1.msra.mxu1 %v7506_v18  ;;  %7529 = vst [vmem:[#allocation124_spill] sm:$0xff] %v6061_v28  ;;  %v6064_v22 = vld [vmem:[#allocation14 + $0x118] sm:$0xff]  ;;  %7531 = vst [vmem:[#allocation125_spill] sm:$0xff] %v6067_v14  ;;  %v6070_v23 = vld [vmem:[#allocation14 + $0x110] sm:$0xff] }
 0x45e   :  { %2441 = vmatprep.subr.mxu0 %v7507_v10  ;;  %2512 = vmatprep.subr.mxu1 %v7508_v59  ;;  %7530 = vst [vmem:[#allocation126_spill] sm:$0xff] %v6064_v22  ;;  %7532 = vst [vmem:[#allocation127_spill] sm:$0xff] %v6070_v23  ;;  %v6073_v27 = vld [vmem:[#allocation14 + $0xe8] sm:$0xff]  ;;  %v6079_v37 = vld [vmem:[#allocation14 + $0xe0] sm:$0xff] }
 0x45f   :  { %3845 = vtanh.f32 %v5938_v48  ;;  %2442 = vmatpush1.msra.mxu0 %v7509_v39  ;;  %2513 = vmatpush1.msra.mxu1 %v7510_v3  ;;  %7533 = vst [vmem:[#allocation89_spill] sm:$0xff] %v6073_v27  ;;  %7534 = vst [vmem:[#allocation90_spill] sm:$0xff] %v6076_v31  ;;  %v6082_v2 = vld [vmem:[#allocation14 + $0xf0] sm:$0xff]  ;;  %v6085_v47 = vld [vmem:[#allocation14 + $0xc8] sm:$0xff] }
 0x460   :  { %2443 = vmatprep.subr.mxu0 %v7511_v11  ;;  %2514 = vmatprep.subr.mxu1 %v7512_v26  ;;  %7535 = vst [vmem:[#allocation91_spill] sm:$0xff] %v6079_v37  ;;  %7536 = vst [vmem:[#allocation92_spill] sm:$0xff] %v6082_v2  ;;  %v6088_v18 = vld [vmem:[#allocation14 + $0xd8] sm:$0xff]  ;;  %v6091_v10 = vld [vmem:[#allocation14 + $0xc0] sm:$0xff] }
 0x461   :  { %2444 = vmatpush1.msra.mxu0 %v7513_v53  ;;  %2515 = vmatpush1.msra.mxu1 %v7514_v6  ;;  %7537 = vst [vmem:[#allocation93_spill] sm:$0xff] %v6085_v47  ;;  %7538 = vst [vmem:[#allocation128_spill] sm:$0xff] %v6088_v18  ;;  %v6094_v59 = vld [vmem:[#allocation14 + $0xd0] sm:$0xff]  ;;  %v6097_v39 = vld [vmem:[#allocation14 + $0xa8] sm:$0xff] }
 0x462   :  { %2445 = vmatprep.subr.mxu0 %v7515_v4  ;;  %2516 = vmatprep.subr.mxu1 %v7516_v51  ;;  %7539 = vst [vmem:[#allocation129_spill] sm:$0xff] %v6091_v10  ;;  %7540 = vst [vmem:[#allocation131_spill] sm:$0xff] %v6094_v59  ;;  %v6100_v3 = vld [vmem:[#allocation14 + $0xb8] sm:$0xff]  ;;  %v6103_v11 = vld [vmem:[#allocation14 + $0xa0] sm:$0xff] }
 0x463   :  { %2446 = vmatpush1.msra.mxu0 %v7517_v30  ;;  %2517 = vmatpush1.msra.mxu1 %v7518_v62  ;;  %7541 = vst [vmem:[#allocation155_spill] sm:$0xff] %v6097_v39  ;;  %7542 = vst [vmem:[#allocation156_spill] sm:$0xff] %v6100_v3  ;;  %v6106_v26 = vld [vmem:[#allocation14 + $0xb0] sm:$0xff]  ;;  %v6109_v53 = vld [vmem:[#allocation14 + $0x88] sm:$0xff] }
 0x464   :  { %2447 = vmatprep.subr.mxu0 %v7519_v40  ;;  %2518 = vmatprep.subr.mxu1 %v7520_v41  ;;  %7543 = vst [vmem:[#allocation157_spill] sm:$0xff] %v6103_v11  ;;  %7544 = vst [vmem:[#allocation158_spill] sm:$0xff] %v6106_v26  ;;  %v6112_v6 = vld [vmem:[#allocation14 + $0x98] sm:$0xff]  ;;  %v6115_v4 = vld [vmem:[#allocation14 + $0x80] sm:$0xff] }
 0x465   :  { %2448 = vmatpush1.msra.mxu0 %v7521_v42  ;;  %2519 = vmatpush1.msra.mxu1 %v7522_v0  ;;  %7545 = vst [vmem:[#allocation159_spill] sm:$0xff] %v6109_v53  ;;  %7546 = vst [vmem:[#allocation161_spill] sm:$0xff] %v6112_v6  ;;  %v6118_v51 = vld [vmem:[#allocation14 + $0x90] sm:$0xff]  ;;  %v6121_v30 = vld [vmem:[#allocation14 + $0x68] sm:$0xff] }
 0x466   :  { %2449 = vmatprep.subr.mxu0 %v7523_v43  ;;  %2520 = vmatprep.subr.mxu1 %v7437_v46  ;;  %v6010_v46 = vld [vmem:[#allocation14 + $0x1b0] sm:$0xff]  ;;  %7547 = vst [vmem:[#allocation162_spill] sm:$0xff] %v6115_v4  ;;  %7548 = vst [vmem:[#allocation163_spill] sm:$0xff] %v6118_v51  ;;  %v6124_v62 = vld [vmem:[#allocation14 + $0x78] sm:$0xff] }
 0x467   :  { %2450 = vmatpush1.msra.mxu0 %v7438_v1  ;;  %2521 = vmatpush1.msra.mxu1 %v7439_v57  ;;  %v6001_v57 = vld [vmem:[#allocation14 + $0x1a8] sm:$0xff]  ;;  %7549 = vst [vmem:[#allocation43_spill] sm:$0xff] %v6121_v30  ;;  %7550 = vst [vmem:[#allocation44_spill] sm:$0xff] %v6124_v62  ;;  %v6127_v38 = vld [vmem:[#allocation14 + $0x60] sm:$0xff] }
 0x468   :  { %2451 = vmatprep.subr.mxu0 %v7440_v8  ;;  %2522 = vmatprep.subr.mxu1 %v7441_v21  ;;  %v6004_v8 = vld [vmem:[#allocation14 + $0x1b8] sm:$0xff]  ;;  %7551 = vst [vmem:[#allocation45_spill] sm:$0xff] %v6127_v38  ;;  %v6130_v40 = vld [vmem:[#allocation14 + $0x70] sm:$0xff]  ;;  %v6133_v41 = vld [vmem:[#allocation14 + $0x48] sm:$0xff] }
 0x469   :  { %2452 = vmatpush1.msra.mxu0 %v7524_v16  ;;  %2523 = vmatpush1.msra.mxu1 %v7443_v54  ;;  %v6007_v54 = vld [vmem:[#allocation14 + $0x1a0] sm:$0xff]  ;;  %7552 = vst [vmem:[#allocation46_spill] sm:$0xff] %v6130_v40  ;;  %7553 = vst [vmem:[#allocation47_spill] sm:$0xff] %v6133_v41  ;;  %v6136_v42 = vld [vmem:[#allocation14 + $0x58] sm:$0xff] }
 0x46a   :  { %2453 = vmatprep.subr.mxu0 %v7444_v15  ;;  %2524 = vmatprep.subr.mxu1 %v5658_v56  ;;  %v5977_v56 = vld [vmem:[#allocation14 + $0x1e8] sm:$0xff]  ;;  %v5995_v15 = vld [vmem:[#allocation14 + $0x1c0] sm:$0xff]  ;;  %7554 = vst [vmem:[#allocation48_spill] sm:$0xff] %v6136_v42  ;;  %v6142_v43 = vld [vmem:[#allocation14 + $0x50] sm:$0xff] }
 0x46b   :  { %2454 = vmatpush1.msra.mxu0 %v7445_v44  ;;  %2525 = vmatpush1.msra.mxu1 %v5664_v36  ;;  %v5980_v36 = vld [vmem:[#allocation14 + $0x1f8] sm:$0xff]  ;;  %v5998_v44 = vld [vmem:[#allocation14 + $0x1d0] sm:$0xff]  ;;  %v6139_v0 = vld [vmem:[#allocation14 + $0x40] sm:$0xff]  ;;  %7556 = vst [vmem:[#allocation50_spill] sm:$0xff] %v6142_v43 }
 0x46c   :  { %v3846_v1 = vpop.eup %3845  ;;  %2455 = vmatprep.subr.mxu0 %v5667_v24  ;;  %2526 = vmatprep.subr.mxu1 %v5670_v32  ;;  %v5983_v24 = vld [vmem:[#allocation14 + $0x1e0] sm:$0xff]  ;;  %v5992_v32 = vld [vmem:[#allocation14 + $0x1d8] sm:$0xff]  ;;  %7555 = vst [vmem:[#allocation49_spill] sm:$0xff] %v6139_v0  ;;  %v6145_v7 = vld [vmem:[#allocation14 + $0x28] sm:$0xff] }
 0x46d   :  { %2456 = vmatpush1.msra.mxu0 %v5673_v19  ;;  %2489 = vmatprep.mubr.f32.mxu0 %v7116_v61  ;;  %v2264_v21 = vmul.f32 %v3846_v1, %v2259_v25  ;;  %v5986_v19 = vld [vmem:[#allocation14 + $0x1f0] sm:$0xff]  ;;  %7557 = vst [vmem:[#allocation51_spill] sm:$0xff] %v6145_v7  ;;  %v6148_v16 = vld [vmem:[#allocation14 + $0x38] sm:$0xff]  ;;  %v6151_v25 = vld [vmem:[#allocation14 + $0x20] sm:$0xff] }
 0x46e   :  { %2527 = vmatpush1.msra.mxu1 %v5677_v5  ;;  %2560 = vmatprep.mubr.f32.mxu1 %v7116_v61  ;;  %v5989_v5 = vld [vmem:[#allocation14 + $0x1c8] sm:$0xff]  ;;  %7558 = vst [vmem:[#allocation52_spill] sm:$0xff] %v6148_v16  ;;  %7559 = vst [vmem:[#allocation53_spill] sm:$0xff] %v6151_v25  ;;  %v6154_v1 = vld [vmem:[#allocation14 + $0x30] sm:$0xff] }
 0x46f   :  { %2268 = vst [vmem:[#allocation18 + $0x20] sm:$0xff] %v2264_v21  ;;  %2490 = vmatmul.mubr.f32.vlgmr.msra.gmra.mxu0 %v2264_v21  ;;  %2561 = vmatmul.mubr.f32.vlgmr.msra.gmra.mxu1 %v2264_v21  ;;  %7560 = vst [vmem:[#allocation54_spill] sm:$0xff] %v6154_v1  ;;  %v6157_v21 = vld [vmem:[#allocation14 + $0x8] sm:$0xff] }
 0x470   :  { %2616 = vmatprep.subr.mxu0 %v5977_v56  ;;  %2687 = vmatprep.subr.mxu1 %v5980_v36  ;;  %7561 = vst [vmem:[#allocation55_spill] sm:$0xff] %v6157_v21 }
 0x471   :  { %2617 = vmatpush1.msra.mxu0 %v5983_v24  ;;  %2688 = vmatpush1.msra.mxu1 %v5986_v19 }
 0x472   :  { %2618 = vmatprep.subr.mxu0 %v5989_v5  ;;  %2689 = vmatprep.subr.mxu1 %v5992_v32 }
 0x473   :  { %2619 = vmatpush1.msra.mxu0 %v5995_v15  ;;  %2690 = vmatpush1.msra.mxu1 %v5998_v44 }
 0x474   :  { %2620 = vmatprep.subr.mxu0 %v6001_v57  ;;  %2691 = vmatprep.subr.mxu1 %v6004_v8 }
 0x475   :  { %2621 = vmatpush1.msra.mxu0 %v6007_v54  ;;  %2692 = vmatpush1.msra.mxu1 %v6010_v46 }
 0x476   :  { %2622 = vmatprep.subr.mxu0 %v6013_v34  ;;  %2693 = vmatprep.subr.mxu1 %v6016_v12 }
 0x477   :  { %2623 = vmatpush1.msra.mxu0 %v6019_v45  ;;  %2694 = vmatpush1.msra.mxu1 %v6022_v58 }
 0x478   :  { %2624 = vmatprep.subr.mxu0 %v6025_v49  ;;  %2695 = vmatprep.subr.mxu1 %v6028_v60 }
 0x479   :  { %2625 = vmatpush1.msra.mxu0 %v6031_v33  ;;  %2696 = vmatpush1.msra.mxu1 %v6034_v9 }
 0x47a   :  { %2626 = vmatprep.subr.mxu0 %v6037_v63  ;;  %2697 = vmatprep.subr.mxu1 %v6040_v20 }
 0x47b   :  { %2627 = vmatpush1.msra.mxu0 %v6043_v50  ;;  %2698 = vmatpush1.msra.mxu1 %v6046_v29 }
 0x47c   :  { %2628 = vmatprep.subr.mxu0 %v6049_v35  ;;  %2699 = vmatprep.subr.mxu1 %v6052_v52 }
 0x47d   :  { %2629 = vmatpush1.msra.mxu0 %v6055_v13  ;;  %2700 = vmatpush1.msra.mxu1 %v6058_v55 }
 0x47e   :  { %2630 = vmatprep.subr.mxu0 %v6061_v28  ;;  %2701 = vmatprep.subr.mxu1 %v6064_v22 }
 0x47f   :  { %2631 = vmatpush1.msra.mxu0 %v6067_v14  ;;  %2702 = vmatpush1.msra.mxu1 %v6070_v23 }
 0x480   :  { %2632 = vmatprep.subr.mxu0 %v6073_v27  ;;  %2703 = vmatprep.subr.mxu1 %v6076_v31 }
 0x481   :  { %2633 = vmatpush1.msra.mxu0 %v6079_v37  ;;  %2704 = vmatpush1.msra.mxu1 %v6082_v2 }
 0x482   :  { %2634 = vmatprep.subr.mxu0 %v6085_v47  ;;  %2705 = vmatprep.subr.mxu1 %v6088_v18 }
 0x483   :  { %2635 = vmatpush1.msra.mxu0 %v6091_v10  ;;  %2706 = vmatpush1.msra.mxu1 %v6094_v59 }
 0x484   :  { %2636 = vmatprep.subr.mxu0 %v6097_v39  ;;  %2707 = vmatprep.subr.mxu1 %v6100_v3 }
 0x485   :  { %2637 = vmatpush1.msra.mxu0 %v6103_v11  ;;  %2708 = vmatpush1.msra.mxu1 %v6106_v26 }
 0x486   :  { %2638 = vmatprep.subr.mxu0 %v6109_v53  ;;  %2709 = vmatprep.subr.mxu1 %v6112_v6 }
 0x487   :  { %2639 = vmatpush1.msra.mxu0 %v6115_v4  ;;  %2710 = vmatpush1.msra.mxu1 %v6118_v51 }
 0x488   :  { %2640 = vmatprep.subr.mxu0 %v6121_v30  ;;  %2711 = vmatprep.subr.mxu1 %v6124_v62 }
 0x489   :  { %2641 = vmatpush1.msra.mxu0 %v6127_v38  ;;  %2712 = vmatpush1.msra.mxu1 %v6130_v40  ;;  %v7568_v40 = vld [vmem:[#allocation39_spill] sm:$0xff]  ;;  %v7569_v38 = vld [vmem:[#allocation38_spill] sm:$0xff] }
 0x48a   :  { %2642 = vmatprep.subr.mxu0 %v6133_v41  ;;  %2713 = vmatprep.subr.mxu1 %v6136_v42 }
 0x48b   :  { %2643 = vmatpush1.msra.mxu0 %v6139_v0  ;;  %2714 = vmatpush1.msra.mxu1 %v6142_v43  ;;  %v6160_v43 = vld [vmem:[#allocation14 + $0x18] sm:$0xff] }
 0x48c   :  { %2644 = vmatprep.subr.mxu0 %v6145_v7  ;;  %2715 = vmatprep.subr.mxu1 %v6148_v16  ;;  %7562 = vst [vmem:[#allocation56_spill] sm:$0xff] %v6160_v43  ;;  %v6163_v7 = vld [vmem:[#allocation14] sm:$0xff]  ;;  %v6166_v16 = vld [vmem:[#allocation14 + $0x10] sm:$0xff] }
 0x48d   :  { %2645 = vmatpush1.msra.mxu0 %v6151_v25  ;;  %2716 = vmatpush1.msra.mxu1 %v6154_v1  ;;  %7563 = vst [vmem:[#allocation57_spill] sm:$0xff] %v6163_v7  ;;  %7564 = vst [vmem:[#allocation58_spill] sm:$0xff] %v6166_v16  ;;  %v6171_v1 = vld [vmem:[#allocation14 + $0x3e8] sm:$0xff] }
 0x48e   :  { %2646 = vmatprep.subr.mxu0 %v6157_v21  ;;  %2717 = vmatprep.subr.mxu1 %v6160_v43  ;;  %7565 = vst [vmem:[#allocation59_spill] sm:$0xff] %v6171_v1  ;;  %v6174_v21 = vld [vmem:[#allocation14 + $0x3f8] sm:$0xff]  ;;  %v7567_v25 = vld [vmem:[#allocation37_spill] sm:$0xff] }
 0x48f   :  { %2647 = vmatpush1.msra.mxu0 %v6163_v7  ;;  %2718 = vmatpush1.msra.mxu1 %v6166_v16  ;;  %7566 = vst [vmem:[#allocation60_spill] sm:$0xff] %v6174_v21 }
 0x490   :  { %2680 = vmatprep.mubr.f32.mxu0 %v7116_v61  ;;  %2751 = vmatprep.mubr.f32.mxu1 %v7116_v61 }
 0x491   :  { %2767 = vmatprep.subr.mxu0 %v6171_v1  ;;  %2838 = vmatprep.subr.mxu1 %v6174_v21  ;;  %v7570_v1 = vld [vmem:[#allocation40_spill] sm:$0xff] }
 0x50e   :  { %v2340_v43 = vpop.f32.mrf.mxu0  ;;  %v2411_v7 = vpop.f32.mrf.mxu1 }
 0x50f   :  { %v2416_v0 = vadd.f32 %v2340_v43, %v7567_v25  ;;  %v2418_v62 = vadd.f32 %v2411_v7, %v7569_v38  ;;  %v7571_v38 = vld [vmem:[#allocation116_spill] sm:$0xff]  ;;  %v7572_v7 = vld [vmem:[#allocation118_spill] sm:$0xff] }
 0x510   :  { %v2342_v42 = vpop.f32.mrf.mxu0  ;;  %v2413_v51 = vpop.f32.mrf.mxu1 }
 0x511   :  { %v2571_v41 = vmul.f32 0.5, %v2416_v0  ;;  %v2417_v16 = vadd.f32 %v2342_v42, %v7568_v40  ;;  %v2419_v4 = vadd.f32 %v2413_v51, %v7570_v1 }
 0x513   :  { %3847 = vtanh.f32 %v2571_v41  ;;  %v2575_v30 = vmul.f32 0.5, %v2417_v16  ;;  %v2580_v6 = vmul.f32 0.5, %v2419_v4 }
 0x515   :  { %3849 = vtanh.f32 %v2575_v30 }
 0x516   :  { %3851 = vtanh.f32 %v2418_v62 }
 0x517   :  { %3853 = vtanh.f32 %v2580_v6  ;;  %v7573_v6 = vld [vmem:[#allocation117_spill] sm:$0xff] }
 0x520   :  { %v3848_v53 = vpop.eup %3847 }
 0x521   :  { %v2573_v21 = vmul.f32 0.5, %v3848_v53 }
 0x522   :  { %v3850_v26 = vpop.eup %3849 }
 0x523   :  { %v2574_v11 = vadd.f32 0.5, %v2573_v21  ;;  %v2577_v43 = vmul.f32 0.5, %v3850_v26  ;;  %v3852_v25 = vpop.eup %3851 }
 0x524   :  { %v3854_v62 = vpop.eup %3853 }
 0x525   :  { %v2578_v0 = vadd.f32 0.5, %v2577_v43  ;;  %v2585_v3 = vmul.f32 %v3852_v25, %v2574_v11  ;;  %v2582_v26 = vmul.f32 0.5, %v3854_v62  ;;  %v7574_v25 = vld [vmem:[#allocation119_spill] sm:$0xff]  ;;  %v6195_v62 = vld [vmem:[#allocation14 + $0x3c8] sm:$0xff] }
 0x527   :  { %v2584_v40 = vmul.f32 %v2578_v0, %v5902_v17  ;;  %v2583_v17 = vadd.f32 0.5, %v2582_v26  ;;  %v6216_v26 = vld [vmem:[#allocation14 + $0x3b0] sm:$0xff] }
 0x528   :  { %7575 = vst [vmem:[#allocation61_spill] sm:$0xff] %v6216_v26 }
 0x529   :  { %v6182_v41 = vadd.f32 %v2585_v3, %v2584_v40  ;;  %v6189_v40 = vld [vmem:[#allocation14 + $0x3e0] sm:$0xff] }
 0x52b   :  { %3855 = vtanh.f32 %v6182_v41 }
 0x52f   :  { %v2491_v30 = vpop.f32.mrf.mxu0  ;;  %v2562_v4 = vpop.f32.mrf.mxu1 }
 0x530   :  { %v2567_v51 = vadd.f32 %v2491_v30, %v7571_v38  ;;  %v2569_v1 = vadd.f32 %v2562_v4, %v7573_v6  ;;  %v6192_v30 = vld [vmem:[#allocation14 + $0x3f0] sm:$0xff]  ;;  %v6198_v38 = vld [vmem:[#allocation14 + $0x3d8] sm:$0xff] }
 0x531   :  { %v2493_v42 = vpop.f32.mrf.mxu0  ;;  %v2564_v21 = vpop.f32.mrf.mxu1  ;;  %v6204_v4 = vld [vmem:[#allocation14 + $0x3d0] sm:$0xff] }
 0x532   :  { %v2589_v53 = vmul.f32 0.5, %v2567_v51  ;;  %v2568_v16 = vadd.f32 %v2493_v42, %v7572_v7  ;;  %v2570_v0 = vadd.f32 %v2564_v21, %v7574_v25  ;;  %v6201_v51 = vld [vmem:[#allocation14 + $0x3c0] sm:$0xff]  ;;  %v6207_v42 = vld [vmem:[#allocation14 + $0x3a8] sm:$0xff]  ;;  %v6228_v21 = vld [vmem:[#allocation14 + $0x390] sm:$0xff] }
 0x533   :  { %7579 = vst [vmem:[#allocation65_spill] sm:$0xff] %v6228_v21  ;;  %v6231_v25 = vld [vmem:[#allocation14 + $0x368] sm:$0xff] }
 0x534   :  { %3857 = vtanh.f32 %v2589_v53  ;;  %v2593_v11 = vmul.f32 0.5, %v2568_v16  ;;  %v6210_v53 = vld [vmem:[#allocation14 + $0x3b8] sm:$0xff]  ;;  %v2598_v7 = vmul.f32 0.5, %v2570_v0  ;;  %v6213_v16 = vld [vmem:[#allocation14 + $0x3a0] sm:$0xff]  ;;  %7580 = vst [vmem:[#allocation66_spill] sm:$0xff] %v6231_v25 }
 0x535   :  { %v6234_v0 = vld [vmem:[#allocation14 + $0x378] sm:$0xff] }
 0x536   :  { %3859 = vtanh.f32 %v2593_v11  ;;  %v6222_v11 = vld [vmem:[#allocation14 + $0x398] sm:$0xff]  ;;  %7581 = vst [vmem:[#allocation67_spill] sm:$0xff] %v6234_v0 }
 0x537   :  { %3861 = vtanh.f32 %v2569_v1  ;;  %v6219_v1 = vld [vmem:[#allocation14 + $0x388] sm:$0xff]  ;;  %7577 = vst [vmem:[#allocation63_spill] sm:$0xff] %v6222_v11 }
 0x538   :  { %v3856_v3 = vpop.eup %3855  ;;  %7576 = vst [vmem:[#allocation62_spill] sm:$0xff] %v6219_v1  ;;  %3863 = vtanh.f32 %v2598_v7  ;;  %v6249_v7 = vld [vmem:[#allocation14 + $0x340] sm:$0xff] }
 0x539   :  { %v2588_v43 = vmul.f32 %v3856_v3, %v2583_v17  ;;  %v6225_v3 = vld [vmem:[#allocation14 + $0x380] sm:$0xff] }
 0x53a   :  { %7578 = vst [vmem:[#allocation64_spill] sm:$0xff] %v6225_v3 }
 0x53b   :  { %2608 = vst [vmem:[#allocation17 + $0x20] sm:$0xff] %v2588_v43  ;;  %2681 = vmatmul.mubr.f32.vlgmr.msra.gmra.mxu0 %v2588_v43  ;;  %2752 = vmatmul.mubr.f32.vlgmr.msra.gmra.mxu1 %v2588_v43 }
 0x53c   :  { %2768 = vmatpush1.msra.mxu0 %v6189_v40  ;;  %2839 = vmatpush1.msra.mxu1 %v6192_v30 }
 0x53d   :  { %2769 = vmatprep.subr.mxu0 %v6195_v62  ;;  %2840 = vmatprep.subr.mxu1 %v6198_v38 }
 0x53e   :  { %2770 = vmatpush1.msra.mxu0 %v6201_v51  ;;  %2841 = vmatpush1.msra.mxu1 %v6204_v4 }
 0x53f   :  { %2771 = vmatprep.subr.mxu0 %v6207_v42  ;;  %2842 = vmatprep.subr.mxu1 %v6210_v53 }
 0x540   :  { %2772 = vmatpush1.msra.mxu0 %v6213_v16  ;;  %2843 = vmatpush1.msra.mxu1 %v6216_v26  ;;  %v6243_v26 = vld [vmem:[#allocation14 + $0x348] sm:$0xff] }
 0x541   :  { %v3858_v6 = vpop.eup %3857  ;;  %2773 = vmatprep.subr.mxu0 %v6219_v1  ;;  %2844 = vmatprep.subr.mxu1 %v6222_v11  ;;  %7584 = vst [vmem:[#allocation70_spill] sm:$0xff] %v6243_v26 }
 0x542   :  { %v2591_v17 = vmul.f32 0.5, %v3858_v6  ;;  %2774 = vmatpush1.msra.mxu0 %v6225_v3  ;;  %2845 = vmatpush1.msra.mxu1 %v6228_v21  ;;  %v6237_v6 = vld [vmem:[#allocation14 + $0x360] sm:$0xff]  ;;  %v6240_v3 = vld [vmem:[#allocation14 + $0x370] sm:$0xff] }
 0x543   :  { %v3860_v43 = vpop.eup %3859  ;;  %2775 = vmatprep.subr.mxu0 %v6231_v25  ;;  %2846 = vmatprep.subr.mxu1 %v6234_v0  ;;  %7582 = vst [vmem:[#allocation68_spill] sm:$0xff] %v6237_v6  ;;  %7583 = vst [vmem:[#allocation69_spill] sm:$0xff] %v6240_v3  ;;  %v6246_v25 = vld [vmem:[#allocation14 + $0x358] sm:$0xff] }
 0x544   :  { %v2592_v1 = vadd.f32 0.5, %v2591_v17  ;;  %v2595_v11 = vmul.f32 0.5, %v3860_v43  ;;  %2776 = vmatpush1.msra.mxu0 %v6237_v6  ;;  %2847 = vmatpush1.msra.mxu1 %v6240_v3  ;;  %v3862_v21 = vpop.eup %3861  ;;  %7585 = vst [vmem:[#allocation71_spill] sm:$0xff] %v6246_v25  ;;  %v6252_v6 = vld [vmem:[#allocation14 + $0x350] sm:$0xff]  ;;  %v6255_v3 = vld [vmem:[#allocation14 + $0x328] sm:$0xff]  ;;  %v6258_v0 = vld [vmem:[#allocation14 + $0x338] sm:$0xff] }
 0x545   :  { %2777 = vmatprep.subr.mxu0 %v6243_v26  ;;  %2848 = vmatprep.subr.mxu1 %v6246_v25  ;;  %7586 = vst [vmem:[#allocation72_spill] sm:$0xff] %v6252_v6  ;;  %7587 = vst [vmem:[#allocation73_spill] sm:$0xff] %v6255_v3 }
 0x546   :  { %v2596_v17 = vadd.f32 0.5, %v2595_v11  ;;  %v2603_v43 = vmul.f32 %v3862_v21, %v2592_v1  ;;  %2778 = vmatpush1.msra.mxu0 %v6249_v7  ;;  %2849 = vmatpush1.msra.mxu1 %v6252_v6  ;;  %7588 = vst [vmem:[#allocation74_spill] sm:$0xff] %v6258_v0  ;;  %v6262_v11 = vld [vmem:[#allocation14 + $0x320] sm:$0xff]  ;;  %v6265_v1 = vld [vmem:[#allocation14 + $0x330] sm:$0xff]  ;;  %v6268_v21 = vld [vmem:[#allocation14 + $0x308] sm:$0xff] }
 0x547   :  { %2779 = vmatprep.subr.mxu0 %v6255_v3  ;;  %2850 = vmatprep.subr.mxu1 %v6258_v0  ;;  %7589 = vst [vmem:[#allocation75_spill] sm:$0xff] %v6262_v11  ;;  %7590 = vst [vmem:[#allocation76_spill] sm:$0xff] %v6265_v1  ;;  %v6271_v6 = vld [vmem:[#allocation14 + $0x318] sm:$0xff]  ;;  %v6276_v0 = vld [vmem:[#allocation14 + $0x300] sm:$0xff] }
 0x548   :  { %v2602_v25 = vmul.f32 %v2596_v17, %v5938_v48  ;;  %2780 = vmatpush1.msra.mxu0 %v6262_v11  ;;  %2851 = vmatpush1.msra.mxu1 %v6265_v1  ;;  %7591 = vst [vmem:[#allocation77_spill] sm:$0xff] %v6268_v21  ;;  %7592 = vst [vmem:[#allocation78_spill] sm:$0xff] %v6271_v6  ;;  %v6279_v48 = vld [vmem:[#allocation14 + $0x310] sm:$0xff]  ;;  %v6282_v17 = vld [vmem:[#allocation14 + $0x2e8] sm:$0xff] }
 0x549   :  { %2781 = vmatprep.subr.mxu0 %v6268_v21  ;;  %2852 = vmatprep.subr.mxu1 %v6271_v6  ;;  %7593 = vst [vmem:[#allocation79_spill] sm:$0xff] %v6276_v0  ;;  %7594 = vst [vmem:[#allocation80_spill] sm:$0xff] %v6279_v48  ;;  %v6285_v1 = vld [vmem:[#allocation14 + $0x2f8] sm:$0xff]  ;;  %v6319_v6 = vld [vmem:[#allocation14 + $0x288] sm:$0xff] }
 0x54a   :  { %v6274_v3 = vadd.f32 %v2603_v43, %v2602_v25  ;;  %2782 = vmatpush1.msra.mxu0 %v6276_v0  ;;  %2853 = vmatpush1.msra.mxu1 %v6279_v48  ;;  %7595 = vst [vmem:[#allocation81_spill] sm:$0xff] %v6282_v17  ;;  %7596 = vst [vmem:[#allocation82_spill] sm:$0xff] %v6285_v1  ;;  %v6289_v25 = vld [vmem:[#allocation14 + $0x2e0] sm:$0xff]  ;;  %v6292_v43 = vld [vmem:[#allocation14 + $0x2f0] sm:$0xff] }
 0x54b   :  { %2783 = vmatprep.subr.mxu0 %v6282_v17  ;;  %2854 = vmatprep.subr.mxu1 %v6285_v1  ;;  %7597 = vst [vmem:[#allocation83_spill] sm:$0xff] %v6289_v25  ;;  %7598 = vst [vmem:[#allocation84_spill] sm:$0xff] %v6292_v43  ;;  %v6295_v0 = vld [vmem:[#allocation14 + $0x2c8] sm:$0xff]  ;;  %v6298_v48 = vld [vmem:[#allocation14 + $0x2d8] sm:$0xff] }
 0x54c   :  { %3865 = vtanh.f32 %v6274_v3  ;;  %2784 = vmatpush1.msra.mxu0 %v6289_v25  ;;  %2855 = vmatpush1.msra.mxu1 %v6292_v43  ;;  %7599 = vst [vmem:[#allocation85_spill] sm:$0xff] %v6295_v0  ;;  %7600 = vst [vmem:[#allocation86_spill] sm:$0xff] %v6298_v48  ;;  %v6301_v17 = vld [vmem:[#allocation14 + $0x2c0] sm:$0xff]  ;;  %v6304_v1 = vld [vmem:[#allocation14 + $0x2d0] sm:$0xff] }
 0x54d   :  { %2785 = vmatprep.subr.mxu0 %v6295_v0  ;;  %2856 = vmatprep.subr.mxu1 %v6298_v48  ;;  %7601 = vst [vmem:[#allocation87_spill] sm:$0xff] %v6301_v17  ;;  %7602 = vst [vmem:[#allocation88_spill] sm:$0xff] %v6304_v1  ;;  %v6307_v25 = vld [vmem:[#allocation14 + $0x2a8] sm:$0xff]  ;;  %v6310_v43 = vld [vmem:[#allocation14 + $0x2b8] sm:$0xff] }
 0x54e   :  { %2786 = vmatpush1.msra.mxu0 %v6301_v17  ;;  %2857 = vmatpush1.msra.mxu1 %v6304_v1  ;;  %7603 = vst [vmem:[#allocation33_spill] sm:$0xff] %v6307_v25  ;;  %7604 = vst [vmem:[#allocation35_spill] sm:$0xff] %v6310_v43  ;;  %v6313_v0 = vld [vmem:[#allocation14 + $0x2a0] sm:$0xff]  ;;  %v6316_v48 = vld [vmem:[#allocation14 + $0x2b0] sm:$0xff]  ;;  %v3864_v17 = vpop.eup %3863 }
 0x54f   :  { %2787 = vmatprep.subr.mxu0 %v6307_v25  ;;  %2858 = vmatprep.subr.mxu1 %v6310_v43  ;;  %7605 = vst [vmem:[#allocation34_spill] sm:$0xff] %v6313_v0  ;;  %7606 = vst [vmem:[#allocation36_spill] sm:$0xff] %v6316_v48  ;;  %v6322_v1 = vld [vmem:[#allocation14 + $0x298] sm:$0xff]  ;;  %v6325_v25 = vld [vmem:[#allocation14 + $0x280] sm:$0xff] }
 0x550   :  { %2788 = vmatpush1.msra.mxu0 %v6313_v0  ;;  %2859 = vmatpush1.msra.mxu1 %v6316_v48  ;;  %7607 = vst [vmem:[#allocation120_spill] sm:$0xff] %v6319_v6  ;;  %7608 = vst [vmem:[#allocation122_spill] sm:$0xff] %v6322_v1  ;;  %v6328_v43 = vld [vmem:[#allocation14 + $0x290] sm:$0xff]  ;;  %v6331_v0 = vld [vmem:[#allocation14 + $0x268] sm:$0xff] }
 0x551   :  { %2789 = vmatprep.subr.mxu0 %v6319_v6  ;;  %2860 = vmatprep.subr.mxu1 %v6322_v1  ;;  %7609 = vst [vmem:[#allocation121_spill] sm:$0xff] %v6325_v25  ;;  %7610 = vst [vmem:[#allocation123_spill] sm:$0xff] %v6328_v43  ;;  %v6334_v48 = vld [vmem:[#allocation14 + $0x278] sm:$0xff]  ;;  %v2600_v6 = vmul.f32 0.5, %v3864_v17  ;;  %v6337_v21 = vld [vmem:[#allocation14 + $0x260] sm:$0xff] }
 0x552   :  { %2790 = vmatpush1.msra.mxu0 %v6325_v25  ;;  %2861 = vmatpush1.msra.mxu1 %v6328_v43  ;;  %7611 = vst [vmem:[#allocation130_spill] sm:$0xff] %v6331_v0  ;;  %7612 = vst [vmem:[#allocation132_spill] sm:$0xff] %v6334_v48  ;;  %v6340_v1 = vld [vmem:[#allocation14 + $0x270] sm:$0xff]  ;;  %v6343_v25 = vld [vmem:[#allocation14 + $0x248] sm:$0xff] }
 0x553   :  { %2791 = vmatprep.subr.mxu0 %v6331_v0  ;;  %2862 = vmatprep.subr.mxu1 %v6334_v48  ;;  %7613 = vst [vmem:[#allocation133_spill] sm:$0xff] %v6337_v21  ;;  %7614 = vst [vmem:[#allocation134_spill] sm:$0xff] %v6340_v1  ;;  %v6346_v43 = vld [vmem:[#allocation14 + $0x258] sm:$0xff]  ;;  %v6349_v0 = vld [vmem:[#allocation14 + $0x240] sm:$0xff] }
 0x554   :  { %2792 = vmatpush1.msra.mxu0 %v6337_v21  ;;  %2863 = vmatpush1.msra.mxu1 %v6340_v1  ;;  %7615 = vst [vmem:[#allocation135_spill] sm:$0xff] %v6343_v25  ;;  %7616 = vst [vmem:[#allocation136_spill] sm:$0xff] %v6346_v43  ;;  %v6352_v17 = vld [vmem:[#allocation14 + $0x250] sm:$0xff]  ;;  %v6355_v21 = vld [vmem:[#allocation14 + $0x228] sm:$0xff] }
 0x555   :  { %2793 = vmatprep.subr.mxu0 %v6343_v25  ;;  %2864 = vmatprep.subr.mxu1 %v6346_v43  ;;  %7617 = vst [vmem:[#allocation137_spill] sm:$0xff] %v6349_v0  ;;  %7618 = vst [vmem:[#allocation138_spill] sm:$0xff] %v6352_v17  ;;  %v6358_v1 = vld [vmem:[#allocation14 + $0x238] sm:$0xff]  ;;  %v2601_v25 = vadd.f32 0.5, %v2600_v6  ;;  %v6361_v48 = vld [vmem:[#allocation14 + $0x220] sm:$0xff] }
 0x556   :  { %2794 = vmatpush1.msra.mxu0 %v6349_v0  ;;  %2865 = vmatpush1.msra.mxu1 %v6352_v17  ;;  %7619 = vst [vmem:[#allocation139_spill] sm:$0xff] %v6355_v21  ;;  %7620 = vst [vmem:[#allocation140_spill] sm:$0xff] %v6361_v48  ;;  %v6364_v43 = vld [vmem:[#allocation14 + $0x230] sm:$0xff]  ;;  %v6367_v11 = vld [vmem:[#allocation14 + $0x208] sm:$0xff] }
 0x557   :  { %2795 = vmatprep.subr.mxu0 %v6355_v21  ;;  %2866 = vmatprep.subr.mxu1 %v6358_v1  ;;  %v6370_v17 = vld [vmem:[#allocation14 + $0x218] sm:$0xff]  ;;  %v6373_v21 = vld [vmem:[#allocation14 + $0x200] sm:$0xff] }
 0x558   :  { %2796 = vmatpush1.msra.mxu0 %v6361_v48  ;;  %2867 = vmatpush1.msra.mxu1 %v6364_v43  ;;  %v6377_v48 = vld [vmem:[#allocation14 + $0x210] sm:$0xff] }
 0x559   :  { %v3866_v0 = vpop.eup %3865  ;;  %2797 = vmatprep.subr.mxu0 %v6367_v11  ;;  %2868 = vmatprep.subr.mxu1 %v6370_v17 }
 0x55a   :  { %2798 = vmatpush1.msra.mxu0 %v6373_v21  ;;  %2831 = vmatprep.mubr.f32.mxu0 %v7116_v61  ;;  %v2606_v6 = vmul.f32 %v3866_v0, %v2601_v25  ;;  %v7621_v0 = vld [vmem:[#allocation156_spill] sm:$0xff]  ;;  %v7622_v25 = vld [vmem:[#allocation157_spill] sm:$0xff] }
 0x55b   :  { %2869 = vmatpush1.msra.mxu1 %v6377_v48  ;;  %2902 = vmatprep.mubr.f32.mxu1 %v7116_v61 }
 0x55c   :  { %2610 = vst [vmem:[#allocation18 + $0x18] sm:$0xff] %v2606_v6  ;;  %2832 = vmatmul.mubr.f32.vlgmr.msra.gmra.mxu0 %v2606_v6  ;;  %2903 = vmatmul.mubr.f32.vlgmr.msra.gmra.mxu1 %v2606_v6  ;;  %v7623_v6 = vld [vmem:[#allocation158_spill] sm:$0xff] }
 0x55d   :  { %2958 = vmatprep.subr.mxu0 %v5977_v56  ;;  %3029 = vmatprep.subr.mxu1 %v5980_v36 }
 0x55e   :  { %2959 = vmatpush1.msra.mxu0 %v5983_v24  ;;  %3030 = vmatpush1.msra.mxu1 %v5986_v19 }
 0x55f   :  { %2960 = vmatprep.subr.mxu0 %v5989_v5  ;;  %3031 = vmatprep.subr.mxu1 %v5992_v32 }
 0x560   :  { %2961 = vmatpush1.msra.mxu0 %v5995_v15  ;;  %3032 = vmatpush1.msra.mxu1 %v5998_v44 }
 0x561   :  { %2962 = vmatprep.subr.mxu0 %v6001_v57  ;;  %3033 = vmatprep.subr.mxu1 %v6004_v8 }
 0x562   :  { %2963 = vmatpush1.msra.mxu0 %v6007_v54  ;;  %3034 = vmatpush1.msra.mxu1 %v6010_v46 }
 0x563   :  { %2964 = vmatprep.subr.mxu0 %v6013_v34  ;;  %3035 = vmatprep.subr.mxu1 %v6016_v12 }
 0x564   :  { %2965 = vmatpush1.msra.mxu0 %v6019_v45  ;;  %3036 = vmatpush1.msra.mxu1 %v6022_v58 }
 0x565   :  { %2966 = vmatprep.subr.mxu0 %v6025_v49  ;;  %3037 = vmatprep.subr.mxu1 %v6028_v60 }
 0x566   :  { %2967 = vmatpush1.msra.mxu0 %v6031_v33  ;;  %3038 = vmatpush1.msra.mxu1 %v6034_v9 }
 0x567   :  { %2968 = vmatprep.subr.mxu0 %v6037_v63  ;;  %3039 = vmatprep.subr.mxu1 %v6040_v20 }
 0x568   :  { %2969 = vmatpush1.msra.mxu0 %v6043_v50  ;;  %3040 = vmatpush1.msra.mxu1 %v6046_v29 }
 0x569   :  { %2970 = vmatprep.subr.mxu0 %v6049_v35  ;;  %3041 = vmatprep.subr.mxu1 %v6052_v52 }
 0x56a   :  { %2971 = vmatpush1.msra.mxu0 %v6055_v13  ;;  %3042 = vmatpush1.msra.mxu1 %v6058_v55 }
 0x56b   :  { %2972 = vmatprep.subr.mxu0 %v6061_v28  ;;  %3043 = vmatprep.subr.mxu1 %v6064_v22  ;;  %v7649_v22 = vld [vmem:[#allocation95_spill] sm:$0xff] }
 0x56c   :  { %2973 = vmatpush1.msra.mxu0 %v6067_v14  ;;  %3044 = vmatpush1.msra.mxu1 %v6070_v23 }
 0x56d   :  { %2974 = vmatprep.subr.mxu0 %v6073_v27  ;;  %3045 = vmatprep.subr.mxu1 %v6076_v31  ;;  %v7624_v31 = vld [vmem:[#allocation159_spill] sm:$0xff]  ;;  %v7647_v27 = vld [vmem:[#allocation94_spill] sm:$0xff] }
 0x56e   :  { %2975 = vmatpush1.msra.mxu0 %v6079_v37  ;;  %3046 = vmatpush1.msra.mxu1 %v6082_v2  ;;  %v7625_v37 = vld [vmem:[#allocation161_spill] sm:$0xff]  ;;  %v7626_v2 = vld [vmem:[#allocation162_spill] sm:$0xff] }
 0x56f   :  { %2976 = vmatprep.subr.mxu0 %v6085_v47  ;;  %3047 = vmatprep.subr.mxu1 %v6088_v18  ;;  %v7627_v47 = vld [vmem:[#allocation163_spill] sm:$0xff] }
 0x570   :  { %2977 = vmatpush1.msra.mxu0 %v6091_v10  ;;  %3048 = vmatpush1.msra.mxu1 %v6094_v59  ;;  %v7628_v18 = vld [vmem:[#allocation43_spill] sm:$0xff]  ;;  %v7629_v10 = vld [vmem:[#allocation44_spill] sm:$0xff]  ;;  %v7630_v59 = vld [vmem:[#allocation45_spill] sm:$0xff] }
 0x571   :  { %2978 = vmatprep.subr.mxu0 %v6097_v39  ;;  %3049 = vmatprep.subr.mxu1 %v7621_v0  ;;  %v7631_v39 = vld [vmem:[#allocation46_spill] sm:$0xff]  ;;  %v7632_v0 = vld [vmem:[#allocation47_spill] sm:$0xff] }
 0x572   :  { %2979 = vmatpush1.msra.mxu0 %v7622_v25  ;;  %3050 = vmatpush1.msra.mxu1 %v7623_v6  ;;  %v7633_v25 = vld [vmem:[#allocation48_spill] sm:$0xff]  ;;  %v7634_v6 = vld [vmem:[#allocation49_spill] sm:$0xff] }
 0x573   :  { %2980 = vmatprep.subr.mxu0 %v7624_v31  ;;  %3051 = vmatprep.subr.mxu1 %v7625_v37  ;;  %v7635_v31 = vld [vmem:[#allocation50_spill] sm:$0xff]  ;;  %v7636_v37 = vld [vmem:[#allocation51_spill] sm:$0xff] }
 0x574   :  { %2981 = vmatpush1.msra.mxu0 %v7626_v2  ;;  %3052 = vmatpush1.msra.mxu1 %v7627_v47  ;;  %v7637_v2 = vld [vmem:[#allocation52_spill] sm:$0xff]  ;;  %v7638_v47 = vld [vmem:[#allocation53_spill] sm:$0xff] }
 0x575   :  { %2982 = vmatprep.subr.mxu0 %v7628_v18  ;;  %3053 = vmatprep.subr.mxu1 %v7629_v10  ;;  %v7639_v18 = vld [vmem:[#allocation54_spill] sm:$0xff]  ;;  %v7640_v10 = vld [vmem:[#allocation55_spill] sm:$0xff] }
 0x576   :  { %2983 = vmatpush1.msra.mxu0 %v7630_v59  ;;  %3054 = vmatpush1.msra.mxu1 %v7631_v39  ;;  %v7641_v59 = vld [vmem:[#allocation56_spill] sm:$0xff]  ;;  %v7642_v39 = vld [vmem:[#allocation57_spill] sm:$0xff] }
 0x577   :  { %2984 = vmatprep.subr.mxu0 %v7632_v0  ;;  %3055 = vmatprep.subr.mxu1 %v7633_v25  ;;  %v7643_v0 = vld [vmem:[#allocation58_spill] sm:$0xff] }
 0x578   :  { %2985 = vmatpush1.msra.mxu0 %v7634_v6  ;;  %3056 = vmatpush1.msra.mxu1 %v7635_v31  ;;  %v7644_v31 = vld [vmem:[#allocation59_spill] sm:$0xff] }
 0x579   :  { %2986 = vmatprep.subr.mxu0 %v7636_v37  ;;  %3057 = vmatprep.subr.mxu1 %v7637_v2  ;;  %v7645_v37 = vld [vmem:[#allocation60_spill] sm:$0xff] }
 0x57a   :  { %2987 = vmatpush1.msra.mxu0 %v7638_v47  ;;  %3058 = vmatpush1.msra.mxu1 %v7639_v18  ;;  %v7646_v47 = vld [vmem:[#allocation41_spill] sm:$0xff] }
 0x57b   :  { %2988 = vmatprep.subr.mxu0 %v7640_v10  ;;  %3059 = vmatprep.subr.mxu1 %v7641_v59 }
 0x57c   :  { %2989 = vmatpush1.msra.mxu0 %v7642_v39  ;;  %3060 = vmatpush1.msra.mxu1 %v7643_v0  ;;  %v7648_v39 = vld [vmem:[#allocation42_spill] sm:$0xff] }
 0x57d   :  { %3022 = vmatprep.mubr.f32.mxu0 %v7116_v61  ;;  %3093 = vmatprep.mubr.f32.mxu1 %v7116_v61 }
 0x57e   :  { %3109 = vmatprep.subr.mxu0 %v7644_v31  ;;  %3180 = vmatprep.subr.mxu1 %v7645_v37 }
 0x5fb   :  { %v2682_v2 = vpop.f32.mrf.mxu0  ;;  %v2753_v18 = vpop.f32.mrf.mxu1 }
 0x5fc   :  { %v2758_v6 = vadd.f32 %v2682_v2, %v7646_v47  ;;  %v2760_v23 = vadd.f32 %v2753_v18, %v7648_v39  ;;  %v7651_v39 = vld [vmem:[#allocation114_spill] sm:$0xff] }
 0x5fd   :  { %v2684_v25 = vpop.f32.mrf.mxu0  ;;  %v2755_v14 = vpop.f32.mrf.mxu1 }
 0x5fe   :  { %v2913_v10 = vmul.f32 0.5, %v2758_v6  ;;  %v2759_v59 = vadd.f32 %v2684_v25, %v7647_v27  ;;  %v2761_v28 = vadd.f32 %v2755_v14, %v7649_v22 }
 0x600   :  { %3867 = vtanh.f32 %v2913_v10  ;;  %v2917_v0 = vmul.f32 0.5, %v2759_v59  ;;  %v2922_v31 = vmul.f32 0.5, %v2761_v28  ;;  %v7650_v59 = vld [vmem:[#allocation112_spill] sm:$0xff] }
 0x602   :  { %3869 = vtanh.f32 %v2917_v0 }
 0x603   :  { %3871 = vtanh.f32 %v2760_v23 }
 0x604   :  { %3873 = vtanh.f32 %v2922_v31  ;;  %v7652_v31 = vld [vmem:[#allocation113_spill] sm:$0xff] }
 0x60d   :  { %v3868_v55 = vpop.eup %3867 }
 0x60e   :  { %v2915_v37 = vmul.f32 0.5, %v3868_v55 }
 0x60f   :  { %v3870_v13 = vpop.eup %3869 }
 0x610   :  { %v2916_v52 = vadd.f32 0.5, %v2915_v37  ;;  %v2919_v2 = vmul.f32 0.5, %v3870_v13  ;;  %v3872_v47 = vpop.eup %3871 }
 0x611   :  { %v3874_v18 = vpop.eup %3873 }
 0x612   :  { %v2920_v6 = vadd.f32 0.5, %v2919_v2  ;;  %v2927_v35 = vmul.f32 %v3872_v47, %v2916_v52  ;;  %v2924_v13 = vmul.f32 0.5, %v3874_v18  ;;  %v7653_v47 = vld [vmem:[#allocation115_spill] sm:$0xff] }
 0x614   :  { %v2926_v27 = vmul.f32 %v2920_v6, %v6182_v41  ;;  %v2925_v41 = vadd.f32 0.5, %v2924_v13  ;;  %v7660_v13 = vld [vmem:[#allocation67_spill] sm:$0xff] }
 0x616   :  { %v6454_v10 = vadd.f32 %v2927_v35, %v2926_v27 }
 0x618   :  { %3875 = vtanh.f32 %v6454_v10 }
 0x61c   :  { %v2833_v23 = vpop.f32.mrf.mxu0  ;;  %v2904_v28 = vpop.f32.mrf.mxu1 }
 0x61d   :  { %v2909_v22 = vadd.f32 %v2833_v23, %v7650_v59  ;;  %v2911_v0 = vadd.f32 %v2904_v28, %v7652_v31  ;;  %v7654_v23 = vld [vmem:[#allocation61_spill] sm:$0xff]  ;;  %v7655_v59 = vld [vmem:[#allocation62_spill] sm:$0xff] }
 0x61e   :  { %v2835_v14 = vpop.f32.mrf.mxu0  ;;  %v2906_v25 = vpop.f32.mrf.mxu1 }
 0x61f   :  { %v2931_v55 = vmul.f32 0.5, %v2909_v22  ;;  %v2910_v37 = vadd.f32 %v2835_v14, %v7651_v39  ;;  %v2912_v6 = vadd.f32 %v2906_v25, %v7653_v47  ;;  %v7656_v22 = vld [vmem:[#allocation63_spill] sm:$0xff]  ;;  %v7657_v14 = vld [vmem:[#allocation64_spill] sm:$0xff] }
 0x620   :  { %v7663_v25 = vld [vmem:[#allocation71_spill] sm:$0xff] }
 0x621   :  { %3877 = vtanh.f32 %v2931_v55  ;;  %v2935_v52 = vmul.f32 0.5, %v2910_v37  ;;  %v2940_v27 = vmul.f32 0.5, %v2912_v6  ;;  %v7658_v55 = vld [vmem:[#allocation65_spill] sm:$0xff]  ;;  %v7659_v37 = vld [vmem:[#allocation66_spill] sm:$0xff]  ;;  %v7664_v6 = vld [vmem:[#allocation72_spill] sm:$0xff] }
 0x623   :  { %3879 = vtanh.f32 %v2935_v52  ;;  %v7661_v52 = vld [vmem:[#allocation68_spill] sm:$0xff] }
 0x624   :  { %3881 = vtanh.f32 %v2911_v0 }
 0x625   :  { %v3876_v35 = vpop.eup %3875  ;;  %3883 = vtanh.f32 %v2940_v27 }
 0x626   :  { %v2930_v2 = vmul.f32 %v3876_v35, %v2925_v41  ;;  %v7662_v41 = vld [vmem:[#allocation69_spill] sm:$0xff] }
 0x628   :  { %2950 = vst [vmem:[#allocation17 + $0x28] sm:$0xff] %v2930_v2  ;;  %3023 = vmatmul.mubr.f32.vlgmr.msra.gmra.mxu0 %v2930_v2  ;;  %3094 = vmatmul.mubr.f32.vlgmr.msra.gmra.mxu1 %v2930_v2 }
 0x629   :  { %3110 = vmatpush1.msra.mxu0 %v6189_v40  ;;  %3181 = vmatpush1.msra.mxu1 %v6192_v30 }
 0x62a   :  { %3111 = vmatprep.subr.mxu0 %v6195_v62  ;;  %3182 = vmatprep.subr.mxu1 %v6198_v38 }
 0x62b   :  { %3112 = vmatpush1.msra.mxu0 %v6201_v51  ;;  %3183 = vmatpush1.msra.mxu1 %v6204_v4 }
 0x62c   :  { %3113 = vmatprep.subr.mxu0 %v6207_v42  ;;  %3184 = vmatprep.subr.mxu1 %v6210_v53 }
 0x62d   :  { %3114 = vmatpush1.msra.mxu0 %v6213_v16  ;;  %3185 = vmatpush1.msra.mxu1 %v7654_v23 }
 0x62e   :  { %v3878_v18 = vpop.eup %3877  ;;  %3115 = vmatprep.subr.mxu0 %v7655_v59  ;;  %3186 = vmatprep.subr.mxu1 %v7656_v22 }
 0x62f   :  { %v2933_v28 = vmul.f32 0.5, %v3878_v18  ;;  %3116 = vmatpush1.msra.mxu0 %v7657_v14  ;;  %3187 = vmatpush1.msra.mxu1 %v7658_v55  ;;  %v7665_v18 = vld [vmem:[#allocation73_spill] sm:$0xff] }
 0x630   :  { %v3880_v39 = vpop.eup %3879  ;;  %3117 = vmatprep.subr.mxu0 %v7659_v37  ;;  %3188 = vmatprep.subr.mxu1 %v7660_v13 }
 0x631   :  { %v2934_v31 = vadd.f32 0.5, %v2933_v28  ;;  %v2937_v0 = vmul.f32 0.5, %v3880_v39  ;;  %3118 = vmatpush1.msra.mxu0 %v7661_v52  ;;  %3189 = vmatpush1.msra.mxu1 %v7662_v41  ;;  %v3882_v35 = vpop.eup %3881  ;;  %v7666_v28 = vld [vmem:[#allocation74_spill] sm:$0xff]  ;;  %v7667_v39 = vld [vmem:[#allocation75_spill] sm:$0xff]  ;;  %v7668_v41 = vld [vmem:[#allocation76_spill] sm:$0xff] }
 0x632   :  { %3119 = vmatprep.subr.mxu0 %v6243_v26  ;;  %3190 = vmatprep.subr.mxu1 %v7663_v25  ;;  %v7669_v52 = vld [vmem:[#allocation77_spill] sm:$0xff]  ;;  %v7670_v26 = vld [vmem:[#allocation78_spill] sm:$0xff] }
 0x633   :  { %v2938_v2 = vadd.f32 0.5, %v2937_v0  ;;  %v2945_v47 = vmul.f32 %v3882_v35, %v2934_v31  ;;  %3120 = vmatpush1.msra.mxu0 %v6249_v7  ;;  %3191 = vmatpush1.msra.mxu1 %v7664_v6  ;;  %v7671_v31 = vld [vmem:[#allocation79_spill] sm:$0xff]  ;;  %v7672_v35 = vld [vmem:[#allocation80_spill] sm:$0xff]  ;;  %v7673_v6 = vld [vmem:[#allocation81_spill] sm:$0xff] }
 0x634   :  { %3121 = vmatprep.subr.mxu0 %v7665_v18  ;;  %3192 = vmatprep.subr.mxu1 %v7666_v28  ;;  %v7674_v18 = vld [vmem:[#allocation82_spill] sm:$0xff] }
 0x635   :  { %v2944_v27 = vmul.f32 %v2938_v2, %v6274_v3  ;;  %3122 = vmatpush1.msra.mxu0 %v7667_v39  ;;  %3193 = vmatpush1.msra.mxu1 %v7668_v41  ;;  %v7675_v3 = vld [vmem:[#allocation83_spill] sm:$0xff]  ;;  %v7676_v2 = vld [vmem:[#allocation84_spill] sm:$0xff]  ;;  %v7677_v41 = vld [vmem:[#allocation85_spill] sm:$0xff] }
 0x636   :  { %3123 = vmatprep.subr.mxu0 %v7669_v52  ;;  %3194 = vmatprep.subr.mxu1 %v7670_v26  ;;  %v7678_v52 = vld [vmem:[#allocation86_spill] sm:$0xff]  ;;  %v3884_v26 = vpop.eup %3883  ;;  %v7691_v39 = vld [vmem:[#allocation133_spill] sm:$0xff] }
 0x637   :  { %v6490_v0 = vadd.f32 %v2945_v47, %v2944_v27  ;;  %3124 = vmatpush1.msra.mxu0 %v7671_v31  ;;  %3195 = vmatpush1.msra.mxu1 %v7672_v35  ;;  %v7679_v47 = vld [vmem:[#allocation87_spill] sm:$0xff]  ;;  %v7680_v27 = vld [vmem:[#allocation88_spill] sm:$0xff]  ;;  %v7681_v31 = vld [vmem:[#allocation33_spill] sm:$0xff] }
 0x638   :  { %3125 = vmatprep.subr.mxu0 %v7673_v6  ;;  %3196 = vmatprep.subr.mxu1 %v7674_v18  ;;  %v7682_v35 = vld [vmem:[#allocation35_spill] sm:$0xff]  ;;  %v7683_v6 = vld [vmem:[#allocation34_spill] sm:$0xff]  ;;  %v7684_v18 = vld [vmem:[#allocation36_spill] sm:$0xff] }
 0x639   :  { %3885 = vtanh.f32 %v6490_v0  ;;  %3126 = vmatpush1.msra.mxu0 %v7675_v3  ;;  %3197 = vmatpush1.msra.mxu1 %v7676_v2  ;;  %v7685_v3 = vld [vmem:[#allocation120_spill] sm:$0xff]  ;;  %v7686_v2 = vld [vmem:[#allocation122_spill] sm:$0xff] }
 0x63a   :  { %3127 = vmatprep.subr.mxu0 %v7677_v41  ;;  %3198 = vmatprep.subr.mxu1 %v7678_v52  ;;  %v7687_v41 = vld [vmem:[#allocation121_spill] sm:$0xff]  ;;  %v7688_v52 = vld [vmem:[#allocation123_spill] sm:$0xff] }
 0x63b   :  { %3128 = vmatpush1.msra.mxu0 %v7679_v47  ;;  %3199 = vmatpush1.msra.mxu1 %v7680_v27  ;;  %v7689_v47 = vld [vmem:[#allocation130_spill] sm:$0xff]  ;;  %v7690_v27 = vld [vmem:[#allocation132_spill] sm:$0xff] }
 0x63c   :  { %3129 = vmatprep.subr.mxu0 %v7681_v31  ;;  %3200 = vmatprep.subr.mxu1 %v7682_v35  ;;  %v2942_v31 = vmul.f32 0.5, %v3884_v26  ;;  %v7692_v35 = vld [vmem:[#allocation134_spill] sm:$0xff] }
 0x63d   :  { %3130 = vmatpush1.msra.mxu0 %v7683_v6  ;;  %3201 = vmatpush1.msra.mxu1 %v7684_v18  ;;  %v7693_v6 = vld [vmem:[#allocation135_spill] sm:$0xff]  ;;  %v7694_v18 = vld [vmem:[#allocation136_spill] sm:$0xff] }
 0x63e   :  { %3131 = vmatprep.subr.mxu0 %v7685_v3  ;;  %3202 = vmatprep.subr.mxu1 %v7686_v2  ;;  %v7695_v3 = vld [vmem:[#allocation137_spill] sm:$0xff]  ;;  %v7696_v2 = vld [vmem:[#allocation138_spill] sm:$0xff] }
 0x63f   :  { %3132 = vmatpush1.msra.mxu0 %v7687_v41  ;;  %3203 = vmatpush1.msra.mxu1 %v7688_v52  ;;  %v7697_v41 = vld [vmem:[#allocation139_spill] sm:$0xff]  ;;  %v7698_v52 = vld [vmem:[#allocation140_spill] sm:$0xff] }
 0x640   :  { %3133 = vmatprep.subr.mxu0 %v7689_v47  ;;  %3204 = vmatprep.subr.mxu1 %v7690_v27  ;;  %v2943_v47 = vadd.f32 0.5, %v2942_v31  ;;  %v7723_v31 = vld [vmem:[#allocation43_spill] sm:$0xff] }
 0x641   :  { %3134 = vmatpush1.msra.mxu0 %v7691_v39  ;;  %3205 = vmatpush1.msra.mxu1 %v7692_v35 }
 0x642   :  { %3135 = vmatprep.subr.mxu0 %v7693_v6  ;;  %3206 = vmatprep.subr.mxu1 %v7694_v18 }
 0x643   :  { %3136 = vmatpush1.msra.mxu0 %v7695_v3  ;;  %3207 = vmatpush1.msra.mxu1 %v7696_v2 }
 0x644   :  { %3137 = vmatprep.subr.mxu0 %v7697_v41  ;;  %3208 = vmatprep.subr.mxu1 %v6358_v1 }
 0x645   :  { %3138 = vmatpush1.msra.mxu0 %v7698_v52  ;;  %3209 = vmatpush1.msra.mxu1 %v6364_v43 }
 0x646   :  { %v3886_v26 = vpop.eup %3885  ;;  %3139 = vmatprep.subr.mxu0 %v6367_v11  ;;  %3210 = vmatprep.subr.mxu1 %v6370_v17 }
 0x647   :  { %3140 = vmatpush1.msra.mxu0 %v6373_v21  ;;  %3173 = vmatprep.mubr.f32.mxu0 %v7116_v61  ;;  %v2948_v3 = vmul.f32 %v3886_v26, %v2943_v47  ;;  %v7725_v47 = vld [vmem:[#allocation45_spill] sm:$0xff]  ;;  %v7726_v26 = vld [vmem:[#allocation46_spill] sm:$0xff] }
 0x648   :  { %3211 = vmatpush1.msra.mxu1 %v6377_v48  ;;  %3244 = vmatprep.mubr.f32.mxu1 %v7116_v61 }
 0x649   :  { %2952 = vst [vmem:[#allocation18 + $0x10] sm:$0xff] %v2948_v3  ;;  %3174 = vmatmul.mubr.f32.vlgmr.msra.gmra.mxu0 %v2948_v3  ;;  %3245 = vmatmul.mubr.f32.vlgmr.msra.gmra.mxu1 %v2948_v3  ;;  %v7724_v3 = vld [vmem:[#allocation44_spill] sm:$0xff] }
 0x64a   :  { %3300 = vmatprep.subr.mxu0 %v5977_v56  ;;  %3371 = vmatprep.subr.mxu1 %v5980_v36  ;;  %v7699_v56 = vld [vmem:[#allocation29_spill] sm:$0xff]  ;;  %v7700_v36 = vld [vmem:[#allocation31_spill] sm:$0xff] }
 0x64b   :  { %3301 = vmatpush1.msra.mxu0 %v5983_v24  ;;  %3372 = vmatpush1.msra.mxu1 %v5986_v19  ;;  %v7701_v24 = vld [vmem:[#allocation30_spill] sm:$0xff]  ;;  %v7702_v19 = vld [vmem:[#allocation32_spill] sm:$0xff] }
 0x64c   :  { %3302 = vmatprep.subr.mxu0 %v5989_v5  ;;  %3373 = vmatprep.subr.mxu1 %v5992_v32  ;;  %v7703_v5 = vld [vmem:[#allocation124_spill] sm:$0xff]  ;;  %v7704_v32 = vld [vmem:[#allocation126_spill] sm:$0xff] }
 0x64d   :  { %3303 = vmatpush1.msra.mxu0 %v5995_v15  ;;  %3374 = vmatpush1.msra.mxu1 %v5998_v44  ;;  %v7705_v15 = vld [vmem:[#allocation125_spill] sm:$0xff]  ;;  %v7706_v44 = vld [vmem:[#allocation127_spill] sm:$0xff] }
 0x64e   :  { %3304 = vmatprep.subr.mxu0 %v6001_v57  ;;  %3375 = vmatprep.subr.mxu1 %v6004_v8  ;;  %v7707_v57 = vld [vmem:[#allocation89_spill] sm:$0xff]  ;;  %v7708_v8 = vld [vmem:[#allocation90_spill] sm:$0xff] }
 0x64f   :  { %3305 = vmatpush1.msra.mxu0 %v6007_v54  ;;  %3376 = vmatpush1.msra.mxu1 %v6010_v46  ;;  %v7709_v54 = vld [vmem:[#allocation91_spill] sm:$0xff]  ;;  %v7710_v46 = vld [vmem:[#allocation92_spill] sm:$0xff] }
 0x650   :  { %3306 = vmatprep.subr.mxu0 %v6013_v34  ;;  %3377 = vmatprep.subr.mxu1 %v6016_v12  ;;  %v7711_v34 = vld [vmem:[#allocation93_spill] sm:$0xff]  ;;  %v7712_v12 = vld [vmem:[#allocation128_spill] sm:$0xff] }
 0x651   :  { %3307 = vmatpush1.msra.mxu0 %v6019_v45  ;;  %3378 = vmatpush1.msra.mxu1 %v6022_v58  ;;  %v7713_v45 = vld [vmem:[#allocation129_spill] sm:$0xff]  ;;  %v7714_v58 = vld [vmem:[#allocation131_spill] sm:$0xff] }
 0x652   :  { %3308 = vmatprep.subr.mxu0 %v6025_v49  ;;  %3379 = vmatprep.subr.mxu1 %v6028_v60  ;;  %v7715_v49 = vld [vmem:[#allocation155_spill] sm:$0xff]  ;;  %v7716_v60 = vld [vmem:[#allocation156_spill] sm:$0xff] }
 0x653   :  { %3309 = vmatpush1.msra.mxu0 %v6031_v33  ;;  %3380 = vmatpush1.msra.mxu1 %v6034_v9  ;;  %v7717_v33 = vld [vmem:[#allocation157_spill] sm:$0xff]  ;;  %v7718_v9 = vld [vmem:[#allocation158_spill] sm:$0xff] }
 0x654   :  { %3310 = vmatprep.subr.mxu0 %v6037_v63  ;;  %3381 = vmatprep.subr.mxu1 %v6040_v20  ;;  %v7719_v63 = vld [vmem:[#allocation159_spill] sm:$0xff]  ;;  %v7720_v20 = vld [vmem:[#allocation161_spill] sm:$0xff] }
 0x655   :  { %3311 = vmatpush1.msra.mxu0 %v6043_v50  ;;  %3382 = vmatpush1.msra.mxu1 %v6046_v29  ;;  %v7721_v50 = vld [vmem:[#allocation162_spill] sm:$0xff]  ;;  %v7722_v29 = vld [vmem:[#allocation163_spill] sm:$0xff] }
 0x656   :  { %3312 = vmatprep.subr.mxu0 %v7699_v56  ;;  %3383 = vmatprep.subr.mxu1 %v7700_v36  ;;  %v7727_v56 = vld [vmem:[#allocation47_spill] sm:$0xff]  ;;  %v7728_v36 = vld [vmem:[#allocation48_spill] sm:$0xff] }
 0x657   :  { %3313 = vmatpush1.msra.mxu0 %v7701_v24  ;;  %3384 = vmatpush1.msra.mxu1 %v7702_v19  ;;  %v7729_v24 = vld [vmem:[#allocation49_spill] sm:$0xff]  ;;  %v7730_v19 = vld [vmem:[#allocation50_spill] sm:$0xff] }
 0x658   :  { %3314 = vmatprep.subr.mxu0 %v7703_v5  ;;  %3385 = vmatprep.subr.mxu1 %v7704_v32  ;;  %v7731_v5 = vld [vmem:[#allocation51_spill] sm:$0xff]  ;;  %v7732_v32 = vld [vmem:[#allocation52_spill] sm:$0xff] }
 0x659   :  { %3315 = vmatpush1.msra.mxu0 %v7705_v15  ;;  %3386 = vmatpush1.msra.mxu1 %v7706_v44  ;;  %v7733_v15 = vld [vmem:[#allocation53_spill] sm:$0xff]  ;;  %v7734_v44 = vld [vmem:[#allocation54_spill] sm:$0xff] }
 0x65a   :  { %3316 = vmatprep.subr.mxu0 %v7707_v57  ;;  %3387 = vmatprep.subr.mxu1 %v7708_v8  ;;  %v7735_v57 = vld [vmem:[#allocation55_spill] sm:$0xff]  ;;  %v7736_v8 = vld [vmem:[#allocation56_spill] sm:$0xff] }
 0x65b   :  { %3317 = vmatpush1.msra.mxu0 %v7709_v54  ;;  %3388 = vmatpush1.msra.mxu1 %v7710_v46  ;;  %v7737_v54 = vld [vmem:[#allocation57_spill] sm:$0xff]  ;;  %v7738_v46 = vld [vmem:[#allocation58_spill] sm:$0xff] }
 0x65c   :  { %3318 = vmatprep.subr.mxu0 %v7711_v34  ;;  %3389 = vmatprep.subr.mxu1 %v7712_v12  ;;  %v7739_v34 = vld [vmem:[#allocation59_spill] sm:$0xff]  ;;  %v7740_v12 = vld [vmem:[#allocation60_spill] sm:$0xff] }
 0x65d   :  { %3319 = vmatpush1.msra.mxu0 %v7713_v45  ;;  %3390 = vmatpush1.msra.mxu1 %v7714_v58  ;;  %v7741_v58 = vld [vmem:[#allocation96_spill] sm:$0xff] }
 0x65e   :  { %3320 = vmatprep.subr.mxu0 %v7715_v49  ;;  %3391 = vmatprep.subr.mxu1 %v7716_v60 }
 0x65f   :  { %3321 = vmatpush1.msra.mxu0 %v7717_v33  ;;  %3392 = vmatpush1.msra.mxu1 %v7718_v9 }
 0x660   :  { %3322 = vmatprep.subr.mxu0 %v7719_v63  ;;  %3393 = vmatprep.subr.mxu1 %v7720_v20  ;;  %v7742_v63 = vld [vmem:[#allocation98_spill] sm:$0xff] }
 0x661   :  { %3323 = vmatpush1.msra.mxu0 %v7721_v50  ;;  %3394 = vmatpush1.msra.mxu1 %v7722_v29  ;;  %v7743_v50 = vld [vmem:[#allocation97_spill] sm:$0xff] }
 0x662   :  { %3324 = vmatprep.subr.mxu0 %v7723_v31  ;;  %3395 = vmatprep.subr.mxu1 %v7724_v3 }
 0x663   :  { %3325 = vmatpush1.msra.mxu0 %v7725_v47  ;;  %3396 = vmatpush1.msra.mxu1 %v7726_v26  ;;  %v7744_v47 = vld [vmem:[#allocation99_spill] sm:$0xff] }
 0x664   :  { %3326 = vmatprep.subr.mxu0 %v7727_v56  ;;  %3397 = vmatprep.subr.mxu1 %v7728_v36 }
 0x665   :  { %3327 = vmatpush1.msra.mxu0 %v7729_v24  ;;  %3398 = vmatpush1.msra.mxu1 %v7730_v19 }
 0x666   :  { %3328 = vmatprep.subr.mxu0 %v7731_v5  ;;  %3399 = vmatprep.subr.mxu1 %v7732_v32 }
 0x667   :  { %3329 = vmatpush1.msra.mxu0 %v7733_v15  ;;  %3400 = vmatpush1.msra.mxu1 %v7734_v44 }
 0x668   :  { %3330 = vmatprep.subr.mxu0 %v7735_v57  ;;  %3401 = vmatprep.subr.mxu1 %v7736_v8 }
 0x669   :  { %3331 = vmatpush1.msra.mxu0 %v7737_v54  ;;  %3402 = vmatpush1.msra.mxu1 %v7738_v46 }
 0x66a   :  { %3364 = vmatprep.mubr.f32.mxu0 %v7116_v61  ;;  %3435 = vmatprep.mubr.f32.mxu1 %v7116_v61 }
 0x66b   :  { %3450 = vmatprep.subr.mxu0 %v7739_v34  ;;  %3521 = vmatprep.subr.mxu1 %v7740_v12  ;;  %v7745_v12 = vld [vmem:[#allocation108_spill] sm:$0xff] }
 0x6e8   :  { %v3024_v45 = vpop.f32.mrf.mxu0  ;;  %v3095_v60 = vpop.f32.mrf.mxu1 }
 0x6e9   :  { %v3100_v49 = vadd.f32 %v3024_v45, %v7741_v58  ;;  %v3102_v29 = vadd.f32 %v3095_v60, %v7743_v50 }
 0x6ea   :  { %v3026_v33 = vpop.f32.mrf.mxu0  ;;  %v3097_v3 = vpop.f32.mrf.mxu1 }
 0x6eb   :  { %v3255_v9 = vmul.f32 0.5, %v3100_v49  ;;  %v3101_v20 = vadd.f32 %v3026_v33, %v7742_v63  ;;  %v3103_v26 = vadd.f32 %v3097_v3, %v7744_v47  ;;  %v7746_v33 = vld [vmem:[#allocation110_spill] sm:$0xff] }
 0x6ed   :  { %3887 = vtanh.f32 %v3255_v9  ;;  %v3259_v31 = vmul.f32 0.5, %v3101_v20  ;;  %v3264_v56 = vmul.f32 0.5, %v3103_v26  ;;  %v7747_v20 = vld [vmem:[#allocation109_spill] sm:$0xff]  ;;  %v7748_v26 = vld [vmem:[#allocation111_spill] sm:$0xff] }
 0x6ef   :  { %3889 = vtanh.f32 %v3259_v31 }
 0x6f0   :  { %3891 = vtanh.f32 %v3102_v29 }
 0x6f1   :  { %3893 = vtanh.f32 %v3264_v56 }
 0x6fa   :  { %v3888_v36 = vpop.eup %3887 }
 0x6fb   :  { %v3257_v24 = vmul.f32 0.5, %v3888_v36 }
 0x6fc   :  { %v3890_v19 = vpop.eup %3889 }
 0x6fd   :  { %v3258_v5 = vadd.f32 0.5, %v3257_v24  ;;  %v3261_v32 = vmul.f32 0.5, %v3890_v19  ;;  %v3892_v15 = vpop.eup %3891  ;;  %v7756_v24 = vld [vmem:[#allocation77_spill] sm:$0xff]  ;;  %v7757_v19 = vld [vmem:[#allocation78_spill] sm:$0xff] }
 0x6fe   :  { %v3894_v34 = vpop.eup %3893 }
 0x6ff   :  { %v3262_v44 = vadd.f32 0.5, %v3261_v32  ;;  %v3269_v57 = vmul.f32 %v3892_v15, %v3258_v5  ;;  %v3266_v63 = vmul.f32 0.5, %v3894_v34  ;;  %v7758_v5 = vld [vmem:[#allocation79_spill] sm:$0xff]  ;;  %v7760_v32 = vld [vmem:[#allocation81_spill] sm:$0xff]  ;;  %v7761_v15 = vld [vmem:[#allocation82_spill] sm:$0xff] }
 0x700   :  { %v7768_v34 = vld [vmem:[#allocation33_spill] sm:$0xff] }
 0x701   :  { %v3268_v8 = vmul.f32 %v3262_v44, %v6454_v10  ;;  %v3267_v10 = vadd.f32 0.5, %v3266_v63  ;;  %v7764_v44 = vld [vmem:[#allocation85_spill] sm:$0xff]  ;;  %v7775_v63 = vld [vmem:[#allocation123_spill] sm:$0xff] }
 0x703   :  { %v6602_v54 = vadd.f32 %v3269_v57, %v3268_v8  ;;  %v7765_v57 = vld [vmem:[#allocation86_spill] sm:$0xff]  ;;  %v7766_v8 = vld [vmem:[#allocation87_spill] sm:$0xff] }
 0x705   :  { %3895 = vtanh.f32 %v6602_v54 }
 0x709   :  { %v3175_v46 = vpop.f32.mrf.mxu0  ;;  %v3246_v58 = vpop.f32.mrf.mxu1 }
 0x70a   :  { %v3251_v45 = vadd.f32 %v3175_v46, %v7745_v12  ;;  %v3253_v50 = vadd.f32 %v3246_v58, %v7747_v20  ;;  %v7767_v46 = vld [vmem:[#allocation88_spill] sm:$0xff]  ;;  %v7769_v12 = vld [vmem:[#allocation35_spill] sm:$0xff]  ;;  %v7776_v20 = vld [vmem:[#allocation130_spill] sm:$0xff] }
 0x70b   :  { %v3177_v49 = vpop.f32.mrf.mxu0  ;;  %v3248_v3 = vpop.f32.mrf.mxu1  ;;  %v7771_v58 = vld [vmem:[#allocation36_spill] sm:$0xff] }
 0x70c   :  { %v3273_v60 = vmul.f32 0.5, %v3251_v45  ;;  %v3252_v9 = vadd.f32 %v3177_v49, %v7746_v33  ;;  %v3254_v56 = vadd.f32 %v3248_v3, %v7748_v26  ;;  %v7770_v45 = vld [vmem:[#allocation34_spill] sm:$0xff] }
 0x70d   :  { %v7773_v33 = vld [vmem:[#allocation122_spill] sm:$0xff] }
 0x70e   :  { %3897 = vtanh.f32 %v3273_v60  ;;  %v3277_v29 = vmul.f32 0.5, %v3252_v9  ;;  %v3282_v36 = vmul.f32 0.5, %v3254_v56  ;;  %v7772_v60 = vld [vmem:[#allocation120_spill] sm:$0xff]  ;;  %v7774_v9 = vld [vmem:[#allocation121_spill] sm:$0xff] }
 0x710   :  { %3899 = vtanh.f32 %v3277_v29  ;;  %v7777_v29 = vld [vmem:[#allocation137_spill] sm:$0xff] }
 0x711   :  { %3901 = vtanh.f32 %v3253_v50 }
 0x712   :  { %v3896_v31 = vpop.eup %3895  ;;  %3903 = vtanh.f32 %v3282_v36 }
 0x713   :  { %v3272_v47 = vmul.f32 %v3896_v31, %v3267_v10  ;;  %v7781_v31 = vld [vmem:[#allocation103_spill] sm:$0xff] }
 0x715   :  { %3292 = vst [vmem:[#allocation17 + $0x30] sm:$0xff] %v3272_v47  ;;  %3365 = vmatmul.mubr.f32.vlgmr.msra.gmra.mxu0 %v3272_v47  ;;  %3436 = vmatmul.mubr.f32.vlgmr.msra.gmra.mxu1 %v3272_v47 }
 0x716   :  { %3451 = vmatpush1.msra.mxu0 %v6189_v40  ;;  %3522 = vmatpush1.msra.mxu1 %v6192_v30 }
 0x717   :  { %3452 = vmatprep.subr.mxu0 %v6195_v62  ;;  %3523 = vmatprep.subr.mxu1 %v6198_v38 }
 0x718   :  { %3453 = vmatpush1.msra.mxu0 %v6201_v51  ;;  %3524 = vmatpush1.msra.mxu1 %v6204_v4  ;;  %v7749_v4 = vld [vmem:[#allocation68_spill] sm:$0xff] }
 0x719   :  { %3454 = vmatprep.subr.mxu0 %v6207_v42  ;;  %3525 = vmatprep.subr.mxu1 %v6210_v53  ;;  %v7750_v42 = vld [vmem:[#allocation69_spill] sm:$0xff] }
 0x71a   :  { %3455 = vmatpush1.msra.mxu0 %v6213_v16  ;;  %3526 = vmatpush1.msra.mxu1 %v7654_v23  ;;  %v7751_v16 = vld [vmem:[#allocation70_spill] sm:$0xff] }
 0x71b   :  { %v3898_v40 = vpop.eup %3897  ;;  %3456 = vmatprep.subr.mxu0 %v7655_v59  ;;  %3527 = vmatprep.subr.mxu1 %v7656_v22  ;;  %v7752_v22 = vld [vmem:[#allocation72_spill] sm:$0xff] }
 0x71c   :  { %v3275_v30 = vmul.f32 0.5, %v3898_v40  ;;  %3457 = vmatpush1.msra.mxu0 %v7657_v14  ;;  %3528 = vmatpush1.msra.mxu1 %v7658_v55  ;;  %v7753_v14 = vld [vmem:[#allocation73_spill] sm:$0xff] }
 0x71d   :  { %v3900_v62 = vpop.eup %3899  ;;  %3458 = vmatprep.subr.mxu0 %v7659_v37  ;;  %3529 = vmatprep.subr.mxu1 %v7660_v13  ;;  %v7754_v37 = vld [vmem:[#allocation75_spill] sm:$0xff]  ;;  %v7755_v13 = vld [vmem:[#allocation76_spill] sm:$0xff] }
 0x71e   :  { %v3276_v38 = vadd.f32 0.5, %v3275_v30  ;;  %v3279_v51 = vmul.f32 0.5, %v3900_v62  ;;  %3459 = vmatpush1.msra.mxu0 %v7749_v4  ;;  %3530 = vmatpush1.msra.mxu1 %v7750_v42  ;;  %v3902_v53 = vpop.eup %3901 }
 0x71f   :  { %3460 = vmatprep.subr.mxu0 %v7751_v16  ;;  %3531 = vmatprep.subr.mxu1 %v7663_v25  ;;  %v3904_v49 = vpop.eup %3903  ;;  %v7782_v16 = vld [vmem:[#allocation104_spill] sm:$0xff] }
 0x720   :  { %v3280_v23 = vadd.f32 0.5, %v3279_v51  ;;  %v3287_v59 = vmul.f32 %v3902_v53, %v3276_v38  ;;  %3461 = vmatpush1.msra.mxu0 %v6249_v7  ;;  %3532 = vmatpush1.msra.mxu1 %v7752_v22  ;;  %v7759_v7 = vld [vmem:[#allocation80_spill] sm:$0xff]  ;;  %v3284_v50 = vmul.f32 0.5, %v3904_v49 }
 0x721   :  { %3462 = vmatprep.subr.mxu0 %v7753_v14  ;;  %3533 = vmatprep.subr.mxu1 %v7666_v28  ;;  %v7762_v28 = vld [vmem:[#allocation83_spill] sm:$0xff] }
 0x722   :  { %v3286_v55 = vmul.f32 %v3280_v23, %v6490_v0  ;;  %3463 = vmatpush1.msra.mxu0 %v7754_v37  ;;  %3534 = vmatpush1.msra.mxu1 %v7755_v13  ;;  %v7763_v0 = vld [vmem:[#allocation84_spill] sm:$0xff]  ;;  %v3285_v10 = vadd.f32 0.5, %v3284_v50 }
 0x723   :  { %3464 = vmatprep.subr.mxu0 %v7756_v24  ;;  %3535 = vmatprep.subr.mxu1 %v7757_v19  ;;  %v7784_v24 = vld [vmem:[#allocation105_spill] sm:$0xff] }
 0x724   :  { %v6638_v25 = vadd.f32 %v3287_v59, %v3286_v55  ;;  %3465 = vmatpush1.msra.mxu0 %v7758_v5  ;;  %3536 = vmatpush1.msra.mxu1 %v7759_v7  ;;  %v7783_v55 = vld [vmem:[#allocation106_spill] sm:$0xff] }
 0x725   :  { %3466 = vmatprep.subr.mxu0 %v7760_v32  ;;  %3537 = vmatprep.subr.mxu1 %v7761_v15 }
 0x726   :  { %3905 = vtanh.f32 %v6638_v25  ;;  %3467 = vmatpush1.msra.mxu0 %v7762_v28  ;;  %3538 = vmatpush1.msra.mxu1 %v7763_v0  ;;  %v7785_v28 = vld [vmem:[#allocation107_spill] sm:$0xff] }
 0x727   :  { %3468 = vmatprep.subr.mxu0 %v7764_v44  ;;  %3539 = vmatprep.subr.mxu1 %v7765_v57 }
 0x728   :  { %3469 = vmatpush1.msra.mxu0 %v7766_v8  ;;  %3540 = vmatpush1.msra.mxu1 %v7767_v46 }
 0x729   :  { %3470 = vmatprep.subr.mxu0 %v7768_v34  ;;  %3541 = vmatprep.subr.mxu1 %v7769_v12 }
 0x72a   :  { %3471 = vmatpush1.msra.mxu0 %v7770_v45  ;;  %3542 = vmatpush1.msra.mxu1 %v7771_v58 }
 0x72b   :  { %3472 = vmatprep.subr.mxu0 %v7772_v60  ;;  %3543 = vmatprep.subr.mxu1 %v7773_v33 }
 0x72c   :  { %3473 = vmatpush1.msra.mxu0 %v7774_v9  ;;  %3544 = vmatpush1.msra.mxu1 %v7775_v63 }
 0x72d   :  { %3474 = vmatprep.subr.mxu0 %v7776_v20  ;;  %3545 = vmatprep.subr.mxu1 %v7690_v27 }
 0x72e   :  { %3475 = vmatpush1.msra.mxu0 %v7691_v39  ;;  %3546 = vmatpush1.msra.mxu1 %v7692_v35  ;;  %v7779_v35 = vld [vmem:[#allocation102_spill] sm:$0xff] }
 0x72f   :  { %3476 = vmatprep.subr.mxu0 %v7693_v6  ;;  %3547 = vmatprep.subr.mxu1 %v7694_v18 }
 0x730   :  { %3477 = vmatpush1.msra.mxu0 %v7777_v29  ;;  %3548 = vmatpush1.msra.mxu1 %v7696_v2 }
 0x731   :  { %3478 = vmatprep.subr.mxu0 %v7697_v41  ;;  %3549 = vmatprep.subr.mxu1 %v6358_v1 }
 0x732   :  { %3479 = vmatpush1.msra.mxu0 %v7698_v52  ;;  %3550 = vmatpush1.msra.mxu1 %v6364_v43  ;;  %v7778_v52 = vld [vmem:[#allocation100_spill] sm:$0xff] }
 0x733   :  { %v3906_v39 = vpop.eup %3905  ;;  %3480 = vmatprep.subr.mxu0 %v6367_v11  ;;  %3551 = vmatprep.subr.mxu1 %v6370_v17 }
 0x734   :  { %3481 = vmatpush1.msra.mxu0 %v6373_v21  ;;  %3514 = vmatprep.mubr.f32.mxu0 %v7116_v61  ;;  %v3290_v6 = vmul.f32 %v3906_v39, %v3285_v10  ;;  %v7780_v21 = vld [vmem:[#allocation101_spill] sm:$0xff] }
 0x735   :  { %3552 = vmatpush1.msra.mxu1 %v6377_v48  ;;  %3585 = vmatprep.mubr.f32.mxu1 %v7116_v61 }
 0x736   :  { %3294 = vst [vmem:[#allocation18 + $0x8] sm:$0xff] %v3290_v6  ;;  %3515 = vmatmul.mubr.f32.vlgmr.msra.gmra.mxu0 %v3290_v6  ;;  %3586 = vmatmul.mubr.f32.vlgmr.msra.gmra.mxu1 %v3290_v6 }
 0x7d5   :  { %v3366_v1 = vpop.f32.mrf.mxu0  ;;  %v3437_v41 = vpop.f32.mrf.mxu1 }
 0x7d6   :  { %v3442_v43 = vadd.f32 %v3366_v1, %v7778_v52  ;;  %v3444_v2 = vadd.f32 %v3437_v41, %v7780_v21 }
 0x7d7   :  { %v3368_v18 = vpop.f32.mrf.mxu0  ;;  %v3439_v48 = vpop.f32.mrf.mxu1 }
 0x7d8   :  { %v3596_v11 = vmul.f32 0.5, %v3442_v43  ;;  %v3443_v17 = vadd.f32 %v3368_v18, %v7779_v35  ;;  %v3445_v61 = vadd.f32 %v3439_v48, %v7781_v31 }
 0x7da   :  { %3907 = vtanh.f32 %v3596_v11  ;;  %v3600_v27 = vmul.f32 0.5, %v3443_v17  ;;  %v3605_v3 = vmul.f32 0.5, %v3445_v61 }
 0x7dc   :  { %3909 = vtanh.f32 %v3600_v27 }
 0x7dd   :  { %3911 = vtanh.f32 %v3444_v2 }
 0x7de   :  { %3913 = vtanh.f32 %v3605_v3 }
 0x7e7   :  { %v3908_v47 = vpop.eup %3907 }
 0x7e8   :  { %v3598_v26 = vmul.f32 0.5, %v3908_v47 }
 0x7e9   :  { %v3910_v56 = vpop.eup %3909 }
 0x7ea   :  { %v3599_v36 = vadd.f32 0.5, %v3598_v26  ;;  %v3602_v40 = vmul.f32 0.5, %v3910_v56  ;;  %v3912_v30 = vpop.eup %3911 }
 0x7eb   :  { %v3914_v53 = vpop.eup %3913 }
 0x7ec   :  { %v3603_v62 = vadd.f32 0.5, %v3602_v40  ;;  %v3610_v38 = vmul.f32 %v3912_v30, %v3599_v36  ;;  %v3607_v13 = vmul.f32 0.5, %v3914_v53 }
 0x7ee   :  { %v3609_v51 = vmul.f32 %v3603_v62, %v6602_v54  ;;  %v3608_v54 = vadd.f32 0.5, %v3607_v13 }
 0x7f0   :  { %v3611_v4 = vadd.f32 %v3610_v38, %v3609_v51 }
 0x7f2   :  { %3915 = vtanh.f32 %v3611_v4  ;;  %3642 = vst [vmem:[#allocation21] sm:$0xff] %v3611_v4 }
 0x7f6   :  { %v3516_v42 = vpop.f32.mrf.mxu0  ;;  %v3587_v59 = vpop.f32.mrf.mxu1 }
 0x7f7   :  { %v3592_v23 = vadd.f32 %v3516_v42, %v7782_v16  ;;  %v3594_v19 = vadd.f32 %v3587_v59, %v7784_v24 }
 0x7f8   :  { %v3518_v22 = vpop.f32.mrf.mxu0  ;;  %v3589_v15 = vpop.f32.mrf.mxu1 }
 0x7f9   :  { %v3614_v14 = vmul.f32 0.5, %v3592_v23  ;;  %v3593_v37 = vadd.f32 %v3518_v22, %v7783_v55  ;;  %v3595_v0 = vadd.f32 %v3589_v15, %v7785_v28 }
 0x7fb   :  { %3917 = vtanh.f32 %v3614_v14  ;;  %v3618_v5 = vmul.f32 0.5, %v3593_v37 }
 0x7fd   :  { %3919 = vtanh.f32 %v3618_v5 }
 0x7fe   :  { %3921 = vtanh.f32 %v3594_v19 }
 0x7ff   :  { %v3916_v7 = vpop.eup %3915 }
 0x800   :  { %v3613_v32 = vmul.f32 %v3916_v7, %v3608_v54 }
 0x802   :  { %3633 = vst [vmem:[#allocation17 + $0x38] sm:$0xff] %v3613_v32  ;;  %3639 = vst [vmem:[#allocation20] sm:$0xff] %v3613_v32 }
 0x803   :  { %4294 = shalt.err (!%p4291_p1)
}
 0x804   :  { %3656 = dma.vmem_to_hbm [thread:$0]  %s3651_s4, 1024, %s6716_s5, [#allocation10], %s4376_s30, %s4376_s30, %s4377_s9   ;;  %v3623_v44 = vmul.f32 0.5, %v3595_v0 }
 0x805   :  { %s4388_s16 = smov [#allocation21]  }
 0x806   :  { %3923 = vtanh.f32 %v3623_v44  ;;  %s3690_s17 = sshll.u32 %s4388_s16, 4  ;;  %s3691_s17 = int_to_ptr.vmem [resolvable:$true] %s3690_s17 }
 0x807   :  { %s4303_s18 = scalar_lea.vmem %s3691_s17, 256  ;;  %p4308_p3 = scmp.lt.s32.totalorder %s3691_s17, %s3691_s17 }
 0x808   :  { %v3918_v57 = vpop.eup %3917  ;;  %p4304_p2 = scmp.ne.s32.totalorder %s3691_s17, %s4303_s18  ;;  %p4309_p4 = scmp.lt.s32.totalorder %s4303_s18, %s4303_s18 }
 0x809   :  { %v3616_v8 = vmul.f32 0.5, %v3918_v57 }
 0x80a   :  { %v3920_v46 = vpop.eup %3919  ;;  %p4310_p5 = por %p4309_p4, %p4308_p3 }
 0x80b   :  { %v3617_v34 = vadd.f32 0.5, %v3616_v8  ;;  %v3620_v12 = vmul.f32 0.5, %v3920_v46  ;;  %v3922_v45 = vpop.eup %3921 }
 0x80c   :  { %p4311_p6 = pnand %p4310_p5, %p4304_p2 }
 0x80d   :  { %v3621_v58 = vadd.f32 0.5, %v3620_v12  ;;  %v3628_v49 = vmul.f32 %v3922_v45, %v3617_v34 }
 0x80f   :  { %v3627_v60 = vmul.f32 %v3621_v58, %v6638_v25 }
 0x811   :  { %v3629_v33 = vadd.f32 %v3628_v49, %v3627_v60 }
 0x813   :  { %3925 = vtanh.f32 %v3629_v33  ;;  %3644 = vst [vmem:[#allocation21 + $0x8] sm:$0xff] %v3629_v33 }
 0x814   :  { %4314 = shalt.err (!%p4311_p6)
}
 0x815   :  { %3696 = dma.vmem_to_hbm [thread:$0]  %s3691_s17, 256, %s6719_s8, [#allocation22], %s4376_s30, %s4376_s30, %s4377_s9   ;;  %v3924_v9 = vpop.eup %3923 }
 0x816   :  { %v3625_v25 = vmul.f32 0.5, %v3924_v9  ;;  %s4389_s20 = smov [#allocation18]   ;;  %s4390_s21 = smov [#allocation20]  }
 0x817   :  { %s3666_s1 = sshll.u32 %s4389_s20, 4  ;;  %s3678_s22 = sshll.u32 %s4390_s21, 4  ;;  %s3667_s1 = int_to_ptr.vmem [resolvable:$true] %s3666_s1  ;;  %s3679_s22 = int_to_ptr.vmem [resolvable:$true] %s3678_s22 }
 0x818   :  { %v3626_v63 = vadd.f32 0.5, %v3625_v25  ;;  %s4323_s23 = scalar_lea.vmem %s3667_s1, 1024  ;;  %p4328_p8 = scmp.lt.s32.totalorder %s3667_s1, %s3667_s1 }
 0x819   :  { %p4324_p7 = scmp.ne.s32.totalorder %s3667_s1, %s4323_s23  ;;  %p4329_p9 = scmp.lt.s32.totalorder %s4323_s23, %s4323_s23 }
 0x81b   :  { %p4330_p10 = por %p4329_p9, %p4328_p8 }
 0x81d   :  { %p4331_p11 = pnand %p4330_p10, %p4324_p7 }
 0x820   :  { %v3926_v20 = vpop.eup %3925 }
 0x821   :  { %v3631_v50 = vmul.f32 %v3926_v20, %v3626_v63 }
 0x823   :  { %3634 = vst [vmem:[#allocation18] sm:$0xff] %v3631_v50  ;;  %3641 = vst [vmem:[#allocation20 + $0x8] sm:$0xff] %v3631_v50 }
 0x824   :  { %4334 = shalt.err (!%p4331_p11)
}
 0x825   :  { %3672 = dma.vmem_to_hbm [thread:$0]  %s3667_s1, 1024, %s6717_s6, [#allocation19], %s4376_s30, %s4376_s30, %s4377_s9  }
 0x826   :  { %s4343_s25 = scalar_lea.vmem %s3679_s22, 256  ;;  %p4348_p13 = scmp.lt.s32.totalorder %s3679_s22, %s3679_s22 }
 0x827   :  { %p4344_p12 = scmp.ne.s32.totalorder %s3679_s22, %s4343_s25  ;;  %p4349_p0 = scmp.lt.s32.totalorder %s4343_s25, %s4343_s25 }
 0x829   :  { %p4350_p1 = por %p4349_p0, %p4348_p13 }
 0x82b   :  { %p4351_p2 = pnand %p4350_p1, %p4344_p12 }
 0x82d   :  { %4354 = shalt.err (!%p4351_p2)
}
 0x82e   :  { %3684 = dma.vmem_to_hbm [thread:$0]  %s3679_s22, 256, %s6718_s7, [#allocation19], %s4376_s30, %s4376_s30, %s4377_s9  }
 0x82f   :  { %4369 = dma.done.wait [#allocation10], 1024  }
 0x830   :  { %4370 = vsyncadd [#allocation10], 4294966272 }
 0x831   :  { %4371 = dma.done.wait [#allocation19], 1280  }
 0x832   :  { %4372 = vsyncadd [#allocation19], 4294966016 }
 0x833   :  { %4373 = dma.done.wait [#allocation22], 256  }
 0x834   :  { %4374 = vsyncadd [#allocation22], 4294967040 }
 0x835   :  { %3709 = vsyncpa [#allocation9], 1 }
 0x836   :  { %3710 = vsyncpa [#allocation12], 1 }
 0x837   :  { %3711 = vsyncpa [#allocation15], 1 }
 0x838   :  { %3712 = vsyncpa [#allocation10], 1 }
 0x839   :  { %3713 = vsyncpa [#allocation19], 1 }
 0x83a   :  { %3714 = vsyncpa [#allocation22], 1 }

</bundles_post_ra>
